<compile_context>
chip_gen: v7x
topology: tpu7x:2x2x1
jax: 0.10.0
libtpu: 0.0.40
codegen_flags: <defaults>
</compile_context>

<pallas_src>
import jax
import jax.numpy as jnp
import numpy as np
from jax import lax
from jax.experimental import pallas as pl
from jax.experimental.pallas import tpu as pltpu


# ---------------------------------------------------------------------------
# Generation-aware VMEM budgeting (v5e/v6e: 128 MiB physical, v7x: 64 MiB/TC)
# ---------------------------------------------------------------------------
def _tpu_vmem_capacity_bytes():
    try:
        info = pltpu.get_tpu_info()
        cap = getattr(info, "vmem_capacity_bytes", None)
        if cap:
            return int(cap)
    except Exception:
        pass
    return 64 * 1024 * 1024            # conservative default (v7x per-TC)


_VMEM_CAP_BYTES = _tpu_vmem_capacity_bytes()
# explicit scoped-VMEM limit: ~48 MiB on v7x (64 MiB cap), ~96 MiB on v5e/v6e
_VMEM_LIMIT_BYTES = min((_VMEM_CAP_BYTES * 3) // 4, 100 * 1024 * 1024)
# per-step working-set target used by the tile pickers
_TILE_BUDGET_BYTES = max(8 * 1024 * 1024, _VMEM_LIMIT_BYTES // 3)

# Cin at/above which per-kernel-row K-packing (lane-axis concatenate) is
# dropped in favour of 9 plain matmuls with K=Cin.  128 keeps v5e's MXU depth
# fully used; can be raised to 256 on v6e/v7x if those layers show XLU/vld
# pressure.
_UNPACK_MIN_CIN = 128
# Cin at/below which the whole 3x3 window is im2col'ed into ONE matmul (K=9*Cin)
_IM2COL_MAX_CIN = 4

_PAD_OFF = 8    # sublane-aligned offset of the valid data in the padded scratch


# ---------------------------------------------------------------------------
# Capability probe: single-buffered constant BlockSpecs (pipeline_mode)
# ---------------------------------------------------------------------------
_BUFFERED1_OK = None


def _buffered1_supported():
    """True iff this JAX/libtpu supports single-buffering a BlockSpec whose
    index map is constant across the grid (pipeline_mode=pl.Buffered(1)).
    Saves the double-buffer copy of the (large) conv weights in VMEM."""
    global _BUFFERED1_OK
    if _BUFFERED1_OK is None:
        try:
            def probe(a_ref, b_ref, o_ref):
                o_ref[...] = a_ref[...] + b_ref[...]

            a = jnp.arange(8 * 128, dtype=jnp.float32).reshape(8, 128)
            b = jnp.ones((8, 128), jnp.float32)
            y = pl.pallas_call(
                probe,
                out_shape=jax.ShapeDtypeStruct((8, 128), jnp.float32),
                grid=(2,),
                in_specs=[
                    pl.BlockSpec((8, 128), lambda i: (0, 0),
                                 pipeline_mode=pl.Buffered(1)),
                    pl.BlockSpec((8, 128), lambda i: (0, 0)),
                ],
                out_specs=pl.BlockSpec((8, 128), lambda i: (0, 0)),
            )(a, b)
            jax.block_until_ready(y)
            _BUFFERED1_OK = bool(jnp.allclose(y, a + b))
        except Exception:
            _BUFFERED1_OK = False
    return _BUFFERED1_OK


# ---------------------------------------------------------------------------
# Tile / chunk selection
# ---------------------------------------------------------------------------
def _pick_row_chunk(TH, W, pool, target_m=512):
    """Rows per in-kernel chunk: each chunk's matmul M (= chunk*W) targets
    ~`target_m` rows so partial sums stay local (registers / MRB on v7x) and
    the conv result is stored exactly once per chunk."""
    step = 2 if pool else 1
    cands = [c for c in range(step, TH + 1, step)
             if TH % c == 0 and (not pool or c % 2 == 0)]
    if not cands:
        return TH
    fits = [c for c in cands if c * W <= target_m] or [min(cands)]
    return max(fits)


def _pick_row_tile(H, W, Cin, Cout, pool, *, n_batch=1, act_bytes=2,
                   budget=None, w_bufs=2):
    """Largest row tile TH dividing H whose per-step VMEM working set
    (double-buffered activation/halo/output blocks + weight buffers + padded
    scratch + per-chunk transients) fits the budget.  Prefers an even total
    grid (balances v7x's two TensorCores) and >= 2 row tiles (DMA overlap)."""
    budget = budget or _TILE_BUDGET_BYTES
    w_scr = W + 2 * _PAD_OFF
    step = 2 if pool else 1
    cands = [th for th in range(step, H + 1, step)
             if H % th == 0 and (not pool or th % 2 == 0)]
    if not cands:
        return H

    if Cin <= _IM2COL_MAX_CIN:
        kdepth = 9 * Cin
    elif Cin < _UNPACK_MIN_CIN:
        kdepth = 3 * Cin
    else:
        kdepth = Cin

    def est(th):
        ch = _pick_row_chunk(th, W, pool)
        x_blk = th * W * Cin * act_bytes
        halo = 2 * W * Cin * act_bytes
        oh, ow = (th // 2, W // 2) if pool else (th, W)
        o_blk = oh * ow * Cout * act_bytes
        w_blk = 9 * Cin * Cout * act_bytes + Cout * 4
        pad = (th + 2) * w_scr * Cin * act_bytes
        trans = 2 * ch * W * (Cout * 4 + kdepth * act_bytes)
        return 2 * (x_blk + halo + o_blk) + w_bufs * w_blk + pad + trans

    fits = [th for th in cands if est(th) <= budget] or [min(cands)]

    def score(th):
        nt = H // th
        return ((n_batch * nt) % 2 == 0,   # even grid -> both v7x TCs busy
                nt >= 2,                   # >=2 row tiles -> pipeline overlap
                th)                        # then the largest tile
    return max(fits, key=score)


def _pick_pool_tile(H, W, C, act_bytes=2, budget=None):
    budget = budget or _TILE_BUDGET_BYTES
    cands = [th for th in range(2, H + 1, 2) if H % th == 0]
    if not cands:
        return H

    def est(th):
        return 2 * (th * W * C + (th // 2) * (W // 2) * C) * act_bytes

    fits = [th for th in cands if est(th) <= budget] or [min(cands)]
    return max(fits)


# ---------------------------------------------------------------------------
# Conv 3x3 (stride 1, pad 1) + bias + ReLU [+ fused 2x2/s2 max-pool] kernel
# ---------------------------------------------------------------------------
def _make_conv3x3_relu_kernel(TH, W, Cin, Cout, fuse_pool, mode, CH, dtype):
    Wo = W // 2
    off = _PAD_OFF
    n_chunks = TH // CH

    def kernel(xc_ref, xt_ref, xb_ref, w_ref, b_ref, o_ref, xpad_ref):
        # xc_ref : (1, TH, W, Cin)   center rows of this stripe
        # xt_ref : (1, 1, W, Cin)    row above the stripe (clamped at border)
        # xb_ref : (1, 1, W, Cin)    row below the stripe (clamped at border)
        # w_ref  : weights, layout depends on `mode` (im2col / pack / unpack)
        # b_ref  : (1, Cout)         f32 bias
        # o_ref  : (1, TH, W, Cout)  or (1, TH//2, W//2, Cout) with fused pool
        # xpad_ref: VMEM (TH+2, W+2*off, Cin) padded stripe; valid data lives
        #           at sublane offset `off` so the center copy is an aligned vst
        t = pl.program_id(1)
        nt = pl.num_programs(1)

        # ---- assemble the padded stripe; zero ONLY the border strips -------
        zcol = jnp.zeros((TH + 2, 1, Cin), dtype)
        xpad_ref[pl.ds(0, TH + 2), pl.ds(off - 1, 1), :] = zcol   # left pad col
        xpad_ref[pl.ds(0, TH + 2), pl.ds(off + W, 1), :] = zcol   # right pad col
        # center rows: sublane-aligned bulk copy
        xpad_ref[pl.ds(1, TH), pl.ds(off, W), :] = xc_ref[0]

        zrow = jnp.zeros((1, W, Cin), dtype)

        @pl.when(t > 0)
        def _():
            xpad_ref[pl.ds(0, 1), pl.ds(off, W), :] = xt_ref[0]

        @pl.when(t == 0)            # image-top zero padding
        def _():
            xpad_ref[pl.ds(0, 1), pl.ds(off, W), :] = zrow

        @pl.when(t < nt - 1)
        def _():
            xpad_ref[pl.ds(TH + 1, 1), pl.ds(off, W), :] = xb_ref[0]

        @pl.when(t == nt - 1)       # image-bottom zero padding
        def _():
            xpad_ref[pl.ds(TH + 1, 1), pl.ds(off, W), :] = zrow

        bias = b_ref[...]           # (1, Cout) f32, folded into the epilogue

        # ---- M-chunked conv: each chunk's taps accumulate into ONE local
        #      value and the result is stored to the output exactly once ------
        for c in range(n_chunks):
            r0 = c * CH
            xp = xpad_ref[pl.ds(r0, CH + 2), :, :]      # (CH+2, W+2*off, Cin)

            if mode == "im2col":
                # tiny Cin (first conv): ONE matmul with K = 9*Cin
                parts = []
                for kh in range(3):
                    strip = xp[kh:kh + CH]
                    for kw in range(3):
                        parts.append(strip[:, off - 1 + kw:off - 1 + kw + W, :])
                taps = jnp.concatenate(parts, axis=-1).reshape(CH * W, 9 * Cin)
                acc = jnp.dot(taps, w_ref[...],
                              preferred_element_type=jnp.float32)
            elif mode == "pack":
                # K packed per kernel row: 3 matmuls with K = 3*Cin
                acc = None
                for kh in range(3):
                    strip = xp[kh:kh + CH]
                    taps = jnp.concatenate(
                        [strip[:, off - 1:off - 1 + W, :],
                         strip[:, off:off + W, :],
                         strip[:, off + 1:off + 1 + W, :]],
                        axis=-1).reshape(CH * W, 3 * Cin)
                    m = jnp.dot(taps, w_ref[kh],
                                preferred_element_type=jnp.float32)
                    acc = m if acc is None else acc + m
            else:
                # large Cin: 9 matmuls with K = Cin (no lane-axis concatenate)
                acc = None
                for kh in range(3):
                    strip = xp[kh:kh + CH]
                    for kw in range(3):
                        tap = strip[:, off - 1 + kw:off - 1 + kw + W, :]
                        m = jnp.dot(tap.reshape(CH * W, Cin),
                                    w_ref[kh * 3 + kw],
                                    preferred_element_type=jnp.float32)
                        acc = m if acc is None else acc + m

            y = jnp.maximum(acc + bias, 0.0)            # bias + fused ReLU

            if fuse_pool:
                # fused 2x2/s2 max-pool: sublane-axis reductions, Cout stays
                # on the lane axis (no cross-lane relayout / masked slicing)
                yw = y.reshape(CH, Wo, 2, Cout).max(axis=2)         # pool W
                yp = yw.reshape(CH // 2, 2, Wo, Cout).max(axis=1)   # pool H
                o_ref[pl.ds(0, 1), pl.ds(r0 // 2, CH // 2), :, :] = (
                    yp.reshape(1, CH // 2, Wo, Cout).astype(o_ref.dtype))
            else:
                o_ref[pl.ds(0, 1), pl.ds(r0, CH), :, :] = (
                    y.reshape(1, CH, W, Cout).astype(o_ref.dtype))

    return kernel


def conv3x3_relu(x_nhwc, w_hwio, b, *, pool=False, row_tile=None,
                 compute_dtype=jnp.bfloat16):
    """3x3 conv (stride 1, pad 1) + bias + ReLU (+ optional fused 2x2 max-pool).

    x: (N, H, W, Cin) -> (N, H, W, Cout)  or  (N, H//2, W//2, Cout) if pool.
    """
    N, H, W, Cin = x_nhwc.shape
    Cout = w_hwio.shape[-1]
    if pool:
        assert H % 2 == 0 and W % 2 == 0, (H, W)

    act_bytes = np.dtype(compute_dtype).itemsize
    single_buf_w = _buffered1_supported()
    TH = row_tile or _pick_row_tile(H, W, Cin, Cout, pool, n_batch=N,
                                    act_bytes=act_bytes,
                                    w_bufs=1 if single_buf_w else 2)
    assert H % TH == 0, (H, TH)
    if pool:
        assert TH % 2 == 0, TH
    CH = _pick_row_chunk(TH, W, pool)
    W_scr = W + 2 * _PAD_OFF

    # Pick the conv mode and the matching weight layout (see module header).
    if Cin <= _IM2COL_MAX_CIN:
        mode = "im2col"
        w = w_hwio.astype(compute_dtype).reshape(9 * Cin, Cout)
        w_shape, w_idx = (9 * Cin, Cout), (lambda n, t: (0, 0))
    elif Cin < _UNPACK_MIN_CIN:
        mode = "pack"
        w = w_hwio.astype(compute_dtype).reshape(3, 3 * Cin, Cout)
        w_shape, w_idx = (3, 3 * Cin, Cout), (lambda n, t: (0, 0, 0))
    else:
        mode = "unpack"
        w = w_hwio.astype(compute_dtype).reshape(9, Cin, Cout)
        w_shape, w_idx = (9, Cin, Cout), (lambda n, t: (0, 0, 0))

    x = x_nhwc.astype(compute_dtype)
    b2 = b.astype(jnp.float32).reshape(1, Cout)

    nt = H // TH
    if pool:
        Wo = W // 2
        out_shape = jax.ShapeDtypeStruct((N, H // 2, Wo, Cout), compute_dtype)
        out_spec = pl.BlockSpec((1, TH // 2, Wo, Cout), lambda n, t: (n, t, 0, 0))
        out_elems = N * (H // 2) * Wo * Cout
    else:
        out_shape = jax.ShapeDtypeStruct((N, H, W, Cout), compute_dtype)
        out_spec = pl.BlockSpec((1, TH, W, Cout), lambda n, t: (n, t, 0, 0))
        out_elems = N * H * W * Cout

    def const_spec(shape, idx):
        # weight / bias: constant index map across the grid -> single buffer
        if single_buf_w:
            return pl.BlockSpec(shape, idx, pipeline_mode=pl.Buffered(1))
        return pl.BlockSpec(shape, idx)

    cost = pl.CostEstimate(
        flops=2 * 9 * Cin * Cout * N * H * W,
        bytes_accessed=(N * H * W * Cin + 9 * Cin * Cout + out_elems) * act_bytes
                       + Cout * 4,
        transcendentals=0)

    return pl.pallas_call(
        _make_conv3x3_relu_kernel(TH, W, Cin, Cout, pool, mode, CH,
                                  compute_dtype),
        out_shape=out_shape,
        grid=(N, nt),
        in_specs=[
            # center stripe
            pl.BlockSpec((1, TH, W, Cin), lambda n, t: (n, t, 0, 0)),
            # 1-row halo above / below (block size 1 => block index == row
            # index; clamped at the image border, kernel zero-fills there)
            pl.BlockSpec((1, 1, W, Cin),
                         lambda n, t: (n, jnp.maximum(t * TH - 1, 0), 0, 0)),
            pl.BlockSpec((1, 1, W, Cin),
                         lambda n, t: (n, jnp.minimum(t * TH + TH, H - 1), 0, 0)),
            const_spec(w_shape, w_idx),
            const_spec((1, Cout), lambda n, t: (0, 0)),
        ],
        out_specs=out_spec,
        scratch_shapes=[pltpu.VMEM((TH + 2, W_scr, Cin), compute_dtype)],
        compiler_params=pltpu.CompilerParams(
            dimension_semantics=("parallel", "parallel"),
            vmem_limit_bytes=_VMEM_LIMIT_BYTES),
        cost_estimate=cost,
    )(x, x, x, w, b2)


# ---------------------------------------------------------------------------
# Standalone MaxPool 2x2, stride 2 kernel (row-tiled; only used for an 'M' not
# directly preceded by a conv — normally the pool is fused into the conv)
# ---------------------------------------------------------------------------
def _make_maxpool2x2_kernel(TH, W, C):
    Ho, Wo = TH // 2, W // 2

    def kernel(x_ref, o_ref):
        x = x_ref[0]                                    # (TH, W, C)
        xw = x.reshape(TH, Wo, 2, C).max(axis=2)        # pool along W
        xp = xw.reshape(Ho, 2, Wo, C).max(axis=1)       # pool along H
        o_ref[...] = xp.reshape(1, Ho, Wo, C)

    return kernel


def maxpool2x2(x_nhwc, row_tile=None):
    N, H, W, C = x_nhwc.shape
    Ho, Wo = H // 2, W // 2
    if H % 2 or W % 2:                 # PyTorch MaxPool2d(2,2) floors odd dims
        x_nhwc = x_nhwc[:, :2 * Ho, :2 * Wo, :]
        H, W = 2 * Ho, 2 * Wo
    TH = row_tile or _pick_pool_tile(H, W, C,
                                     act_bytes=np.dtype(x_nhwc.dtype).itemsize)
    assert H % TH == 0 and TH % 2 == 0, (H, TH)
    return pl.pallas_call(
        _make_maxpool2x2_kernel(TH, W, C),
        out_shape=jax.ShapeDtypeStruct((N, Ho, Wo, C), x_nhwc.dtype),
        grid=(N, H // TH),
        in_specs=[pl.BlockSpec((1, TH, W, C), lambda n, t: (n, t, 0, 0))],
        out_specs=pl.BlockSpec((1, TH // 2, Wo, C), lambda n, t: (n, t, 0, 0)),
        compiler_params=pltpu.CompilerParams(
            dimension_semantics=("parallel", "parallel"),
            vmem_limit_bytes=_VMEM_LIMIT_BYTES),
    )(x_nhwc)


# ---------------------------------------------------------------------------
# VGG_features: parameter init + forward
# ---------------------------------------------------------------------------
def init_vgg_params(key, cfg, in_channels):
    """Kaiming-normal (fan_out, relu) conv weights, zero bias — matches
    VGG_features._initialize_weights (batch_norm=False)."""
    params = []
    c_in = in_channels
    for v in cfg:
        if v == 'M':
            continue
        key, wk = jax.random.split(key)
        fan_out = v * 3 * 3
        std = float(np.sqrt(2.0 / fan_out))
        w = std * jax.random.normal(wk, (3, 3, c_in, v), dtype=jnp.float32)  # HWIO
        b = jnp.zeros((v,), dtype=jnp.float32)
        params.append((w, b))
        c_in = v
    return params


def vgg_features_forward(x_nchw, cfg, params, compute_dtype=jnp.bfloat16):
    """Forward pass matching VGG_features(cfg, batch_norm=False).forward.
    Input NCHW (PyTorch convention), output NCHW (f32)."""
    x = jnp.transpose(x_nchw, (0, 2, 3, 1)).astype(compute_dtype)   # NCHW -> NHWC
    pi = 0
    i = 0
    while i < len(cfg):
        v = cfg[i]
        if v == 'M':
            x = maxpool2x2(x)
            i += 1
        else:
            w, b = params[pi]
            pi += 1
            _, H, W, _ = x.shape
            fuse = (i + 1 < len(cfg) and cfg[i + 1] == 'M'
                    and H % 2 == 0 and W % 2 == 0)
            x = conv3x3_relu(x, w, b, pool=fuse, compute_dtype=compute_dtype)
            i += 2 if fuse else 1
    return jnp.transpose(x, (0, 3, 1, 2)).astype(jnp.float32)       # NHWC -> NCHW


# ---------------------------------------------------------------------------
# Pure-JAX reference (same bf16 compute / f32 accumulation, for correctness)
# ---------------------------------------------------------------------------
def vgg_features_reference(x_nchw, cfg, params, compute_dtype=jnp.bfloat16):
    x = jnp.transpose(x_nchw, (0, 2, 3, 1)).astype(compute_dtype)
    pi = 0
    for v in cfg:
        if v == 'M':
            N, H, W, C = x.shape
            x = x.reshape(N, H // 2, 2, W // 2, 2, C).max(axis=(2, 4))
        else:
            w, b = params[pi]
            pi += 1
            y = lax.conv_general_dilated(
                x, w.astype(compute_dtype), window_strides=(1, 1), padding='SAME',
                dimension_numbers=('NHWC', 'HWIO', 'NHWC'),
                preferred_element_type=jnp.float32)
            y = jnp.maximum(y + b.astype(jnp.float32), 0.0)
            x = y.astype(compute_dtype)
    return jnp.transpose(x, (0, 3, 1, 2)).astype(jnp.float32)


if __name__ == "__main__":
    # Small VGG-style cfg: conv(8) -> conv(8) -> M -> conv(16) -> M
    # (exercises the im2col, K-packed, fused-pool and non-pool conv paths)
    cfg = [8, 8, 'M', 16, 'M']
    in_channels = 4
    N, H, W = 2, 16, 16

    key = jax.random.PRNGKey(0)
    key, xk = jax.random.split(key)
    x = jax.random.normal(xk, (N, in_channels, H, W), dtype=jnp.float32)  # NCHW

    params = init_vgg_params(key, cfg, in_channels)

    _buffered1_supported()      # warm the single-buffer capability probe

    fwd = jax.jit(lambda xx, pp: vgg_features_forward(xx, cfg, pp))
    out = jax.block_until_ready(fwd(x, params))

    ref = jax.block_until_ready(vgg_features_reference(x, cfg, params))
    assert out.shape == (N, 16, H // 4, W // 4), out.shape
    np.testing.assert_allclose(np.asarray(out), np.asarray(ref),
                               rtol=2e-2, atol=2e-2)

    print("KERNEL_OK")
</pallas_src>

<mosaic_0001>
module attributes {stable_mosaic.version = 11 : i64} {
  func.func @probe(%arg0: i32, %arg1: memref<8x128xf32, #tpu.memory_space<vmem>>, %arg2: memref<8x128xf32, #tpu.memory_space<vmem>>, %arg3: memref<8x128xf32, #tpu.memory_space<vmem>>) attributes {dimension_semantics = [#tpu.dimension_semantics<arbitrary>], iteration_bounds = array<i64: 2>, scalar_prefetch = 0 : i64, scratch_operands = 0 : i64, tpu.core_type = #tpu.core_type<tc>, window_params = [{pipeline_mode = #tpu.pipeline_mode<synchronous>, transform_indices = @transform_0, window_bounds = array<i64: 8, 128>}, {pipeline_mode = #tpu.pipeline_mode<synchronous>, transform_indices = @transform_1, window_bounds = array<i64: 8, 128>}, {pipeline_mode = #tpu.pipeline_mode<synchronous>, transform_indices = @transform_2, window_bounds = array<i64: 8, 128>}]} {
    %c0 = arith.constant 0 : index
    %c0_0 = arith.constant 0 : index
    %0 = vector.load %arg1[%c0, %c0_0] : memref<8x128xf32, #tpu.memory_space<vmem>>, vector<8x128xf32>
    %c0_1 = arith.constant 0 : index
    %c0_2 = arith.constant 0 : index
    %1 = vector.load %arg2[%c0_1, %c0_2] : memref<8x128xf32, #tpu.memory_space<vmem>>, vector<8x128xf32>
    %2 = arith.addf %0, %1 : vector<8x128xf32>
    %c0_3 = arith.constant 0 : index
    %c0_4 = arith.constant 0 : index
    %3 = vector.load %arg3[%c0_3, %c0_4] : memref<8x128xf32, #tpu.memory_space<vmem>>, vector<8x128xf32>
    tpu.vector_store %arg3[%c0_3, %c0_4], %2 {strides = array<i32>} : memref<8x128xf32, #tpu.memory_space<vmem>>, vector<8x128xf32>,
    return
  }
  func.func @transform_0(%arg0: i32) -> (i32, i32) {
    %c0_i32 = arith.constant 0 : i32
    %c0_i32_0 = arith.constant 0 : i32
    %c0_i32_1 = arith.constant 0 : i32
    return %c0_i32, %c0_i32_0 : i32, i32
  }
  func.func @transform_1(%arg0: i32) -> (i32, i32) {
    %c0_i32 = arith.constant 0 : i32
    %c0_i32_0 = arith.constant 0 : i32
    %c0_i32_1 = arith.constant 0 : i32
    return %c0_i32, %c0_i32_0 : i32, i32
  }
  func.func @transform_2(%arg0: i32) -> (i32, i32) {
    %c0_i32 = arith.constant 0 : i32
    %c0_i32_0 = arith.constant 0 : i32
    %c0_i32_1 = arith.constant 0 : i32
    return %c0_i32, %c0_i32_0 : i32, i32
  }
}

module attributes {stable_mosaic.version = 11 : i64} {
  func.func @kernel(%arg0: i32, %arg1: i32, %arg2: memref<1x8x16x4xbf16, #tpu.memory_space<vmem>>, %arg3: memref<1x1x16x4xbf16, #tpu.memory_space<vmem>>, %arg4: memref<1x1x16x4xbf16, #tpu.memory_space<vmem>>, %arg5: memref<36x8xbf16, #tpu.memory_space<vmem>>, %arg6: memref<1x8xf32, #tpu.memory_space<vmem>>, %arg7: memref<1x8x16x8xbf16, #tpu.memory_space<vmem>>, %arg8: memref<10x32x4xbf16, #tpu.memory_space<vmem>>) attributes {dimension_semantics = [#tpu.dimension_semantics<parallel>, #tpu.dimension_semantics<parallel>], iteration_bounds = array<i64: 2, 2>, scalar_prefetch = 0 : i64, scratch_operands = 1 : i64, tpu.core_type = #tpu.core_type<tc>, window_params = [{transform_indices = @transform_0, window_bounds = array<i64: 1, 8, 16, 4>}, {transform_indices = @transform_1, window_bounds = array<i64: 1, 1, 16, 4>}, {transform_indices = @transform_2, window_bounds = array<i64: 1, 1, 16, 4>}, {pipeline_mode = #tpu.pipeline_mode<synchronous>, transform_indices = @transform_3, window_bounds = array<i64: 36, 8>}, {pipeline_mode = #tpu.pipeline_mode<synchronous>, transform_indices = @transform_4, window_bounds = array<i64: 1, 8>}, {transform_indices = @transform_5, window_bounds = array<i64: 1, 8, 16, 8>}]} {
    %cst = arith.constant 0.000000e+00 : bf16
    %0 = vector.broadcast %cst : bf16 to vector<10x1x4xbf16>
    %c0 = arith.constant 0 : index
    %c7 = arith.constant 7 : index
    %c0_0 = arith.constant 0 : index
    %1 = vector.load %arg8[%c0, %c7, %c0_0] : memref<10x32x4xbf16, #tpu.memory_space<vmem>>, vector<10x1x4xbf16>
    tpu.vector_store %arg8[%c0, %c7, %c0_0], %0 {strides = array<i32>} : memref<10x32x4xbf16, #tpu.memory_space<vmem>>, vector<10x1x4xbf16>,
    %c0_1 = arith.constant 0 : index
    %c24 = arith.constant 24 : index
    %c0_2 = arith.constant 0 : index
    %2 = vector.load %arg8[%c0_1, %c24, %c0_2] : memref<10x32x4xbf16, #tpu.memory_space<vmem>>, vector<10x1x4xbf16>
    tpu.vector_store %arg8[%c0_1, %c24, %c0_2], %0 {strides = array<i32>} : memref<10x32x4xbf16, #tpu.memory_space<vmem>>, vector<10x1x4xbf16>,
    %c0_3 = arith.constant 0 : index
    %c0_4 = arith.constant 0 : index
    %c0_5 = arith.constant 0 : index
    %c0_6 = arith.constant 0 : index
    %3 = vector.load %arg2[%c0_3, %c0_4, %c0_5, %c0_6] : memref<1x8x16x4xbf16, #tpu.memory_space<vmem>>, vector<1x8x16x4xbf16>
    %4 = vector.shape_cast %3 : vector<1x8x16x4xbf16> to vector<8x16x4xbf16>
    %c1 = arith.constant 1 : index
    %c8 = arith.constant 8 : index
    %c0_7 = arith.constant 0 : index
    %5 = vector.load %arg8[%c1, %c8, %c0_7] : memref<10x32x4xbf16, #tpu.memory_space<vmem>>, vector<8x16x4xbf16>
    tpu.vector_store %arg8[%c1, %c8, %c0_7], %4 {strides = array<i32>} : memref<10x32x4xbf16, #tpu.memory_space<vmem>>, vector<8x16x4xbf16>,
    %cst_8 = arith.constant 0.000000e+00 : bf16
    %6 = vector.broadcast %cst_8 : bf16 to vector<1x16x4xbf16>
    %c0_i32 = arith.constant 0 : i32
    %7 = arith.cmpi sgt, %arg1, %c0_i32 : i32
    %8 = arith.extui %7 : i1 to i32
    %c0_i32_9 = arith.constant 0 : i32
    %9 = arith.cmpi ne, %8, %c0_i32_9 : i32
    scf.if %9 {
      %c0_28 = arith.constant 0 : index
      %c0_29 = arith.constant 0 : index
      %c0_30 = arith.constant 0 : index
      %c0_31 = arith.constant 0 : index
      %44 = vector.load %arg3[%c0_28, %c0_29, %c0_30, %c0_31] : memref<1x1x16x4xbf16, #tpu.memory_space<vmem>>, vector<1x1x16x4xbf16>
      %45 = vector.shape_cast %44 : vector<1x1x16x4xbf16> to vector<1x16x4xbf16>
      %c0_32 = arith.constant 0 : index
      %c8_33 = arith.constant 8 : index
      %c0_34 = arith.constant 0 : index
      %46 = vector.load %arg8[%c0_32, %c8_33, %c0_34] : memref<10x32x4xbf16, #tpu.memory_space<vmem>>, vector<1x16x4xbf16>
      tpu.vector_store %arg8[%c0_32, %c8_33, %c0_34], %45 {strides = array<i32>} : memref<10x32x4xbf16, #tpu.memory_space<vmem>>, vector<1x16x4xbf16>,
    } else {
    }
    %c0_i32_10 = arith.constant 0 : i32
    %10 = arith.cmpi eq, %arg1, %c0_i32_10 : i32
    %11 = arith.extui %10 : i1 to i32
    %c0_i32_11 = arith.constant 0 : i32
    %12 = arith.cmpi ne, %11, %c0_i32_11 : i32
    scf.if %12 {
      %c0_28 = arith.constant 0 : index
      %c8_29 = arith.constant 8 : index
      %c0_30 = arith.constant 0 : index
      %44 = vector.load %arg8[%c0_28, %c8_29, %c0_30] : memref<10x32x4xbf16, #tpu.memory_space<vmem>>, vector<1x16x4xbf16>
      tpu.vector_store %arg8[%c0_28, %c8_29, %c0_30], %6 {strides = array<i32>} : memref<10x32x4xbf16, #tpu.memory_space<vmem>>, vector<1x16x4xbf16>,
    } else {
    }
    %c1_i32 = arith.constant 1 : i32
    %13 = arith.cmpi slt, %arg1, %c1_i32 : i32
    %14 = arith.extui %13 : i1 to i32
    %c0_i32_12 = arith.constant 0 : i32
    %15 = arith.cmpi ne, %14, %c0_i32_12 : i32
    scf.if %15 {
      %c0_28 = arith.constant 0 : index
      %c0_29 = arith.constant 0 : index
      %c0_30 = arith.constant 0 : index
      %c0_31 = arith.constant 0 : index
      %44 = vector.load %arg4[%c0_28, %c0_29, %c0_30, %c0_31] : memref<1x1x16x4xbf16, #tpu.memory_space<vmem>>, vector<1x1x16x4xbf16>
      %45 = vector.shape_cast %44 : vector<1x1x16x4xbf16> to vector<1x16x4xbf16>
      %c9 = arith.constant 9 : index
      %c8_32 = arith.constant 8 : index
      %c0_33 = arith.constant 0 : index
      %46 = vector.load %arg8[%c9, %c8_32, %c0_33] : memref<10x32x4xbf16, #tpu.memory_space<vmem>>, vector<1x16x4xbf16>
      tpu.vector_store %arg8[%c9, %c8_32, %c0_33], %45 {strides = array<i32>} : memref<10x32x4xbf16, #tpu.memory_space<vmem>>, vector<1x16x4xbf16>,
    } else {
    }
    %c1_i32_13 = arith.constant 1 : i32
    %16 = arith.cmpi eq, %arg1, %c1_i32_13 : i32
    %17 = arith.extui %16 : i1 to i32
    %c0_i32_14 = arith.constant 0 : i32
    %18 = arith.cmpi ne, %17, %c0_i32_14 : i32
    scf.if %18 {
      %c9 = arith.constant 9 : index
      %c8_28 = arith.constant 8 : index
      %c0_29 = arith.constant 0 : index
      %44 = vector.load %arg8[%c9, %c8_28, %c0_29] : memref<10x32x4xbf16, #tpu.memory_space<vmem>>, vector<1x16x4xbf16>
      tpu.vector_store %arg8[%c9, %c8_28, %c0_29], %6 {strides = array<i32>} : memref<10x32x4xbf16, #tpu.memory_space<vmem>>, vector<1x16x4xbf16>,
    } else {
    }
    %c0_15 = arith.constant 0 : index
    %c0_16 = arith.constant 0 : index
    %19 = vector.load %arg6[%c0_15, %c0_16] : memref<1x8xf32, #tpu.memory_space<vmem>>, vector<1x8xf32>
    %c0_17 = arith.constant 0 : index
    %c0_18 = arith.constant 0 : index
    %c0_19 = arith.constant 0 : index
    %20 = vector.load %arg8[%c0_17, %c0_18, %c0_19] : memref<10x32x4xbf16, #tpu.memory_space<vmem>>, vector<10x32x4xbf16>
    %21 = vector.extract_strided_slice %20 {offsets = [0, 0, 0], sizes = [8, 32, 4], strides = [1, 1, 1]} : vector<10x32x4xbf16> to vector<8x32x4xbf16>
    %22 = vector.extract_strided_slice %21 {offsets = [0, 7, 0], sizes = [8, 16, 4], strides = [1, 1, 1]} : vector<8x32x4xbf16> to vector<8x16x4xbf16>
    %23 = vector.extract_strided_slice %21 {offsets = [0, 8, 0], sizes = [8, 16, 4], strides = [1, 1, 1]} : vector<8x32x4xbf16> to vector<8x16x4xbf16>
    %24 = vector.extract_strided_slice %21 {offsets = [0, 9, 0], sizes = [8, 16, 4], strides = [1, 1, 1]} : vector<8x32x4xbf16> to vector<8x16x4xbf16>
    %25 = vector.extract_strided_slice %20 {offsets = [1, 0, 0], sizes = [8, 32, 4], strides = [1, 1, 1]} : vector<10x32x4xbf16> to vector<8x32x4xbf16>
    %26 = vector.extract_strided_slice %25 {offsets = [0, 7, 0], sizes = [8, 16, 4], strides = [1, 1, 1]} : vector<8x32x4xbf16> to vector<8x16x4xbf16>
    %27 = vector.extract_strided_slice %25 {offsets = [0, 8, 0], sizes = [8, 16, 4], strides = [1, 1, 1]} : vector<8x32x4xbf16> to vector<8x16x4xbf16>
    %28 = vector.extract_strided_slice %25 {offsets = [0, 9, 0], sizes = [8, 16, 4], strides = [1, 1, 1]} : vector<8x32x4xbf16> to vector<8x16x4xbf16>
    %29 = vector.extract_strided_slice %20 {offsets = [2, 0, 0], sizes = [8, 32, 4], strides = [1, 1, 1]} : vector<10x32x4xbf16> to vector<8x32x4xbf16>
    %30 = vector.extract_strided_slice %29 {offsets = [0, 7, 0], sizes = [8, 16, 4], strides = [1, 1, 1]} : vector<8x32x4xbf16> to vector<8x16x4xbf16>
    %31 = vector.extract_strided_slice %29 {offsets = [0, 8, 0], sizes = [8, 16, 4], strides = [1, 1, 1]} : vector<8x32x4xbf16> to vector<8x16x4xbf16>
    %32 = vector.extract_strided_slice %29 {offsets = [0, 9, 0], sizes = [8, 16, 4], strides = [1, 1, 1]} : vector<8x32x4xbf16> to vector<8x16x4xbf16>
    %33 = tpu.concatenate %22, %23, %24, %26, %27, %28, %30, %31, %32 in 2 : vector<8x16x4xbf16>, vector<8x16x4xbf16>, vector<8x16x4xbf16>, vector<8x16x4xbf16>, vector<8x16x4xbf16>, vector<8x16x4xbf16>, vector<8x16x4xbf16>, vector<8x16x4xbf16>, vector<8x16x4xbf16> -> vector<8x16x36xbf16>
    %34 = vector.shape_cast %33 : vector<8x16x36xbf16> to vector<128x36xbf16>
    %c0_20 = arith.constant 0 : index
    %c0_21 = arith.constant 0 : index
    %35 = vector.load %arg5[%c0_20, %c0_21] : memref<36x8xbf16, #tpu.memory_space<vmem>>, vector<36x8xbf16>
    %cst_22 = arith.constant dense<0.000000e+00> : vector<128x8xf32>
    %36 = tpu.matmul %34, %35, %cst_22 {dimension_numbers = #tpu.dot_dimension_numbers<[1], [0], [0], [1], [0, 0, 1, 1], [], []>} : vector<128x36xbf16>, vector<36x8xbf16>, vector<128x8xf32> -> vector<128x8xf32>
    %37 = vector.broadcast %19 : vector<1x8xf32> to vector<128x8xf32>
    %38 = arith.addf %36, %37 : vector<128x8xf32>
    %cst_23 = arith.constant 0.000000e+00 : f32
    %39 = vector.broadcast %cst_23 : f32 to vector<128x8xf32>
    %40 = arith.maximumf %38, %39 : vector<128x8xf32>
    %41 = vector.shape_cast %40 : vector<128x8xf32> to vector<1x8x16x8xf32>
    %42 = arith.truncf %41 : vector<1x8x16x8xf32> to vector<1x8x16x8xbf16>
    %c0_24 = arith.constant 0 : index
    %c0_25 = arith.constant 0 : index
    %c0_26 = arith.constant 0 : index
    %c0_27 = arith.constant 0 : index
    %43 = vector.load %arg7[%c0_24, %c0_25, %c0_26, %c0_27] : memref<1x8x16x8xbf16, #tpu.memory_space<vmem>>, vector<1x8x16x8xbf16>
    tpu.vector_store %arg7[%c0_24, %c0_25, %c0_26, %c0_27], %42 {strides = array<i32>} : memref<1x8x16x8xbf16, #tpu.memory_space<vmem>>, vector<1x8x16x8xbf16>,
    return
  }
  func.func @transform_0(%arg0: i32, %arg1: i32) -> (i32, i32, i32, i32) {
    %c0_i32 = arith.constant 0 : i32
    %c0_i32_0 = arith.constant 0 : i32
    %c0_i32_1 = arith.constant 0 : i32
    return %arg0, %arg1, %c0_i32, %c0_i32_0 : i32, i32, i32, i32
  }
  func.func @transform_1(%arg0: i32, %arg1: i32) -> (i32, i32, i32, i32) {
    %c8_i32 = arith.constant 8 : i32
    %0 = arith.muli %arg1, %c8_i32 : i32
    %c1_i32 = arith.constant 1 : i32
    %1 = arith.subi %0, %c1_i32 : i32
    %c0_i32 = arith.constant 0 : i32
    %2 = arith.maxsi %1, %c0_i32 : i32
    %c0_i32_0 = arith.constant 0 : i32
    %c0_i32_1 = arith.constant 0 : i32
    %c0_i32_2 = arith.constant 0 : i32
    return %arg0, %2, %c0_i32_0, %c0_i32_1 : i32, i32, i32, i32
  }
  func.func @transform_2(%arg0: i32, %arg1: i32) -> (i32, i32, i32, i32) {
    %c8_i32 = arith.constant 8 : i32
    %0 = arith.muli %arg1, %c8_i32 : i32
    %c8_i32_0 = arith.constant 8 : i32
    %1 = arith.addi %0, %c8_i32_0 : i32
    %c15_i32 = arith.constant 15 : i32
    %2 = arith.minsi %1, %c15_i32 : i32
    %c0_i32 = arith.constant 0 : i32
    %c0_i32_1 = arith.constant 0 : i32
    %c0_i32_2 = arith.constant 0 : i32
    return %arg0, %2, %c0_i32, %c0_i32_1 : i32, i32, i32, i32
  }
  func.func @transform_3(%arg0: i32, %arg1: i32) -> (i32, i32) {
    %c0_i32 = arith.constant 0 : i32
    %c0_i32_0 = arith.constant 0 : i32
    %c0_i32_1 = arith.constant 0 : i32
    return %c0_i32, %c0_i32_0 : i32, i32
  }
  func.func @transform_4(%arg0: i32, %arg1: i32) -> (i32, i32) {
    %c0_i32 = arith.constant 0 : i32
    %c0_i32_0 = arith.constant 0 : i32
    %c0_i32_1 = arith.constant 0 : i32
    return %c0_i32, %c0_i32_0 : i32, i32
  }
  func.func @transform_5(%arg0: i32, %arg1: i32) -> (i32, i32, i32, i32) {
    %c0_i32 = arith.constant 0 : i32
    %c0_i32_0 = arith.constant 0 : i32
    %c0_i32_1 = arith.constant 0 : i32
    return %arg0, %arg1, %c0_i32, %c0_i32_0 : i32, i32, i32, i32
  }
}

module attributes {stable_mosaic.version = 11 : i64} {
  func.func @kernel(%arg0: i32, %arg1: i32, %arg2: memref<1x8x16x8xbf16, #tpu.memory_space<vmem>>, %arg3: memref<1x1x16x8xbf16, #tpu.memory_space<vmem>>, %arg4: memref<1x1x16x8xbf16, #tpu.memory_space<vmem>>, %arg5: memref<3x24x8xbf16, #tpu.memory_space<vmem>>, %arg6: memref<1x8xf32, #tpu.memory_space<vmem>>, %arg7: memref<1x4x8x8xbf16, #tpu.memory_space<vmem>>, %arg8: memref<10x32x8xbf16, #tpu.memory_space<vmem>>) attributes {dimension_semantics = [#tpu.dimension_semantics<parallel>, #tpu.dimension_semantics<parallel>], iteration_bounds = array<i64: 2, 2>, scalar_prefetch = 0 : i64, scratch_operands = 1 : i64, tpu.core_type = #tpu.core_type<tc>, window_params = [{transform_indices = @transform_0, window_bounds = array<i64: 1, 8, 16, 8>}, {transform_indices = @transform_1, window_bounds = array<i64: 1, 1, 16, 8>}, {transform_indices = @transform_2, window_bounds = array<i64: 1, 1, 16, 8>}, {pipeline_mode = #tpu.pipeline_mode<synchronous>, transform_indices = @transform_3, window_bounds = array<i64: 3, 24, 8>}, {pipeline_mode = #tpu.pipeline_mode<synchronous>, transform_indices = @transform_4, window_bounds = array<i64: 1, 8>}, {transform_indices = @transform_5, window_bounds = array<i64: 1, 4, 8, 8>}]} {
    %cst = arith.constant 0.000000e+00 : bf16
    %0 = vector.broadcast %cst : bf16 to vector<10x1x8xbf16>
    %c0 = arith.constant 0 : index
    %c7 = arith.constant 7 : index
    %c0_0 = arith.constant 0 : index
    %1 = vector.load %arg8[%c0, %c7, %c0_0] : memref<10x32x8xbf16, #tpu.memory_space<vmem>>, vector<10x1x8xbf16>
    tpu.vector_store %arg8[%c0, %c7, %c0_0], %0 {strides = array<i32>} : memref<10x32x8xbf16, #tpu.memory_space<vmem>>, vector<10x1x8xbf16>,
    %c0_1 = arith.constant 0 : index
    %c24 = arith.constant 24 : index
    %c0_2 = arith.constant 0 : index
    %2 = vector.load %arg8[%c0_1, %c24, %c0_2] : memref<10x32x8xbf16, #tpu.memory_space<vmem>>, vector<10x1x8xbf16>
    tpu.vector_store %arg8[%c0_1, %c24, %c0_2], %0 {strides = array<i32>} : memref<10x32x8xbf16, #tpu.memory_space<vmem>>, vector<10x1x8xbf16>,
    %c0_3 = arith.constant 0 : index
    %c0_4 = arith.constant 0 : index
    %c0_5 = arith.constant 0 : index
    %c0_6 = arith.constant 0 : index
    %3 = vector.load %arg2[%c0_3, %c0_4, %c0_5, %c0_6] : memref<1x8x16x8xbf16, #tpu.memory_space<vmem>>, vector<1x8x16x8xbf16>
    %4 = vector.shape_cast %3 : vector<1x8x16x8xbf16> to vector<8x16x8xbf16>
    %c1 = arith.constant 1 : index
    %c8 = arith.constant 8 : index
    %c0_7 = arith.constant 0 : index
    %5 = vector.load %arg8[%c1, %c8, %c0_7] : memref<10x32x8xbf16, #tpu.memory_space<vmem>>, vector<8x16x8xbf16>
    tpu.vector_store %arg8[%c1, %c8, %c0_7], %4 {strides = array<i32>} : memref<10x32x8xbf16, #tpu.memory_space<vmem>>, vector<8x16x8xbf16>,
    %cst_8 = arith.constant 0.000000e+00 : bf16
    %6 = vector.broadcast %cst_8 : bf16 to vector<1x16x8xbf16>
    %c0_i32 = arith.constant 0 : i32
    %7 = arith.cmpi sgt, %arg1, %c0_i32 : i32
    %8 = arith.extui %7 : i1 to i32
    %c0_i32_9 = arith.constant 0 : i32
    %9 = arith.cmpi ne, %8, %c0_i32_9 : i32
    scf.if %9 {
      %c0_38 = arith.constant 0 : index
      %c0_39 = arith.constant 0 : index
      %c0_40 = arith.constant 0 : index
      %c0_41 = arith.constant 0 : index
      %61 = vector.load %arg3[%c0_38, %c0_39, %c0_40, %c0_41] : memref<1x1x16x8xbf16, #tpu.memory_space<vmem>>, vector<1x1x16x8xbf16>
      %62 = vector.shape_cast %61 : vector<1x1x16x8xbf16> to vector<1x16x8xbf16>
      %c0_42 = arith.constant 0 : index
      %c8_43 = arith.constant 8 : index
      %c0_44 = arith.constant 0 : index
      %63 = vector.load %arg8[%c0_42, %c8_43, %c0_44] : memref<10x32x8xbf16, #tpu.memory_space<vmem>>, vector<1x16x8xbf16>
      tpu.vector_store %arg8[%c0_42, %c8_43, %c0_44], %62 {strides = array<i32>} : memref<10x32x8xbf16, #tpu.memory_space<vmem>>, vector<1x16x8xbf16>,
    } else {
    }
    %c0_i32_10 = arith.constant 0 : i32
    %10 = arith.cmpi eq, %arg1, %c0_i32_10 : i32
    %11 = arith.extui %10 : i1 to i32
    %c0_i32_11 = arith.constant 0 : i32
    %12 = arith.cmpi ne, %11, %c0_i32_11 : i32
    scf.if %12 {
      %c0_38 = arith.constant 0 : index
      %c8_39 = arith.constant 8 : index
      %c0_40 = arith.constant 0 : index
      %61 = vector.load %arg8[%c0_38, %c8_39, %c0_40] : memref<10x32x8xbf16, #tpu.memory_space<vmem>>, vector<1x16x8xbf16>
      tpu.vector_store %arg8[%c0_38, %c8_39, %c0_40], %6 {strides = array<i32>} : memref<10x32x8xbf16, #tpu.memory_space<vmem>>, vector<1x16x8xbf16>,
    } else {
    }
    %c1_i32 = arith.constant 1 : i32
    %13 = arith.cmpi slt, %arg1, %c1_i32 : i32
    %14 = arith.extui %13 : i1 to i32
    %c0_i32_12 = arith.constant 0 : i32
    %15 = arith.cmpi ne, %14, %c0_i32_12 : i32
    scf.if %15 {
      %c0_38 = arith.constant 0 : index
      %c0_39 = arith.constant 0 : index
      %c0_40 = arith.constant 0 : index
      %c0_41 = arith.constant 0 : index
      %61 = vector.load %arg4[%c0_38, %c0_39, %c0_40, %c0_41] : memref<1x1x16x8xbf16, #tpu.memory_space<vmem>>, vector<1x1x16x8xbf16>
      %62 = vector.shape_cast %61 : vector<1x1x16x8xbf16> to vector<1x16x8xbf16>
      %c9 = arith.constant 9 : index
      %c8_42 = arith.constant 8 : index
      %c0_43 = arith.constant 0 : index
      %63 = vector.load %arg8[%c9, %c8_42, %c0_43] : memref<10x32x8xbf16, #tpu.memory_space<vmem>>, vector<1x16x8xbf16>
      tpu.vector_store %arg8[%c9, %c8_42, %c0_43], %62 {strides = array<i32>} : memref<10x32x8xbf16, #tpu.memory_space<vmem>>, vector<1x16x8xbf16>,
    } else {
    }
    %c1_i32_13 = arith.constant 1 : i32
    %16 = arith.cmpi eq, %arg1, %c1_i32_13 : i32
    %17 = arith.extui %16 : i1 to i32
    %c0_i32_14 = arith.constant 0 : i32
    %18 = arith.cmpi ne, %17, %c0_i32_14 : i32
    scf.if %18 {
      %c9 = arith.constant 9 : index
      %c8_38 = arith.constant 8 : index
      %c0_39 = arith.constant 0 : index
      %61 = vector.load %arg8[%c9, %c8_38, %c0_39] : memref<10x32x8xbf16, #tpu.memory_space<vmem>>, vector<1x16x8xbf16>
      tpu.vector_store %arg8[%c9, %c8_38, %c0_39], %6 {strides = array<i32>} : memref<10x32x8xbf16, #tpu.memory_space<vmem>>, vector<1x16x8xbf16>,
    } else {
    }
    %c0_15 = arith.constant 0 : index
    %c0_16 = arith.constant 0 : index
    %19 = vector.load %arg6[%c0_15, %c0_16] : memref<1x8xf32, #tpu.memory_space<vmem>>, vector<1x8xf32>
    %c0_17 = arith.constant 0 : index
    %c0_18 = arith.constant 0 : index
    %c0_19 = arith.constant 0 : index
    %20 = vector.load %arg8[%c0_17, %c0_18, %c0_19] : memref<10x32x8xbf16, #tpu.memory_space<vmem>>, vector<10x32x8xbf16>
    %21 = vector.extract_strided_slice %20 {offsets = [0, 0, 0], sizes = [8, 32, 8], strides = [1, 1, 1]} : vector<10x32x8xbf16> to vector<8x32x8xbf16>
    %22 = vector.extract_strided_slice %21 {offsets = [0, 7, 0], sizes = [8, 16, 8], strides = [1, 1, 1]} : vector<8x32x8xbf16> to vector<8x16x8xbf16>
    %23 = vector.extract_strided_slice %21 {offsets = [0, 8, 0], sizes = [8, 16, 8], strides = [1, 1, 1]} : vector<8x32x8xbf16> to vector<8x16x8xbf16>
    %24 = vector.extract_strided_slice %21 {offsets = [0, 9, 0], sizes = [8, 16, 8], strides = [1, 1, 1]} : vector<8x32x8xbf16> to vector<8x16x8xbf16>
    %25 = tpu.concatenate %22, %23, %24 in 2 : vector<8x16x8xbf16>, vector<8x16x8xbf16>, vector<8x16x8xbf16> -> vector<8x16x24xbf16>
    %26 = vector.shape_cast %25 : vector<8x16x24xbf16> to vector<128x24xbf16>
    %c0_20 = arith.constant 0 : index
    %c0_21 = arith.constant 0 : index
    %c0_22 = arith.constant 0 : index
    %27 = vector.load %arg5[%c0_20, %c0_21, %c0_22] : memref<3x24x8xbf16, #tpu.memory_space<vmem>>, vector<1x24x8xbf16>
    %28 = vector.shape_cast %27 : vector<1x24x8xbf16> to vector<24x8xbf16>
    %cst_23 = arith.constant dense<0.000000e+00> : vector<128x8xf32>
    %29 = tpu.matmul %26, %28, %cst_23 {dimension_numbers = #tpu.dot_dimension_numbers<[1], [0], [0], [1], [0, 0, 1, 1], [], []>} : vector<128x24xbf16>, vector<24x8xbf16>, vector<128x8xf32> -> vector<128x8xf32>
    %30 = vector.extract_strided_slice %20 {offsets = [1, 0, 0], sizes = [8, 32, 8], strides = [1, 1, 1]} : vector<10x32x8xbf16> to vector<8x32x8xbf16>
    %31 = vector.extract_strided_slice %30 {offsets = [0, 7, 0], sizes = [8, 16, 8], strides = [1, 1, 1]} : vector<8x32x8xbf16> to vector<8x16x8xbf16>
    %32 = vector.extract_strided_slice %30 {offsets = [0, 8, 0], sizes = [8, 16, 8], strides = [1, 1, 1]} : vector<8x32x8xbf16> to vector<8x16x8xbf16>
    %33 = vector.extract_strided_slice %30 {offsets = [0, 9, 0], sizes = [8, 16, 8], strides = [1, 1, 1]} : vector<8x32x8xbf16> to vector<8x16x8xbf16>
    %34 = tpu.concatenate %31, %32, %33 in 2 : vector<8x16x8xbf16>, vector<8x16x8xbf16>, vector<8x16x8xbf16> -> vector<8x16x24xbf16>
    %35 = vector.shape_cast %34 : vector<8x16x24xbf16> to vector<128x24xbf16>
    %c1_24 = arith.constant 1 : index
    %c0_25 = arith.constant 0 : index
    %c0_26 = arith.constant 0 : index
    %36 = vector.load %arg5[%c1_24, %c0_25, %c0_26] : memref<3x24x8xbf16, #tpu.memory_space<vmem>>, vector<1x24x8xbf16>
    %37 = vector.shape_cast %36 : vector<1x24x8xbf16> to vector<24x8xbf16>
    %cst_27 = arith.constant dense<0.000000e+00> : vector<128x8xf32>
    %38 = tpu.matmul %35, %37, %cst_27 {dimension_numbers = #tpu.dot_dimension_numbers<[1], [0], [0], [1], [0, 0, 1, 1], [], []>} : vector<128x24xbf16>, vector<24x8xbf16>, vector<128x8xf32> -> vector<128x8xf32>
    %39 = arith.addf %29, %38 : vector<128x8xf32>
    %40 = vector.extract_strided_slice %20 {offsets = [2, 0, 0], sizes = [8, 32, 8], strides = [1, 1, 1]} : vector<10x32x8xbf16> to vector<8x32x8xbf16>
    %41 = vector.extract_strided_slice %40 {offsets = [0, 7, 0], sizes = [8, 16, 8], strides = [1, 1, 1]} : vector<8x32x8xbf16> to vector<8x16x8xbf16>
    %42 = vector.extract_strided_slice %40 {offsets = [0, 8, 0], sizes = [8, 16, 8], strides = [1, 1, 1]} : vector<8x32x8xbf16> to vector<8x16x8xbf16>
    %43 = vector.extract_strided_slice %40 {offsets = [0, 9, 0], sizes = [8, 16, 8], strides = [1, 1, 1]} : vector<8x32x8xbf16> to vector<8x16x8xbf16>
    %44 = tpu.concatenate %41, %42, %43 in 2 : vector<8x16x8xbf16>, vector<8x16x8xbf16>, vector<8x16x8xbf16> -> vector<8x16x24xbf16>
    %45 = vector.shape_cast %44 : vector<8x16x24xbf16> to vector<128x24xbf16>
    %c2 = arith.constant 2 : index
    %c0_28 = arith.constant 0 : index
    %c0_29 = arith.constant 0 : index
    %46 = vector.load %arg5[%c2, %c0_28, %c0_29] : memref<3x24x8xbf16, #tpu.memory_space<vmem>>, vector<1x24x8xbf16>
    %47 = vector.shape_cast %46 : vector<1x24x8xbf16> to vector<24x8xbf16>
    %cst_30 = arith.constant dense<0.000000e+00> : vector<128x8xf32>
    %48 = tpu.matmul %45, %47, %cst_30 {dimension_numbers = #tpu.dot_dimension_numbers<[1], [0], [0], [1], [0, 0, 1, 1], [], []>} : vector<128x24xbf16>, vector<24x8xbf16>, vector<128x8xf32> -> vector<128x8xf32>
    %49 = arith.addf %39, %48 : vector<128x8xf32>
    %50 = vector.broadcast %19 : vector<1x8xf32> to vector<128x8xf32>
    %51 = arith.addf %49, %50 : vector<128x8xf32>
    %cst_31 = arith.constant 0.000000e+00 : f32
    %52 = vector.broadcast %cst_31 : f32 to vector<128x8xf32>
    %53 = arith.maximumf %51, %52 : vector<128x8xf32>
    %54 = vector.shape_cast %53 : vector<128x8xf32> to vector<8x8x2x8xf32>
    %cst_32 = arith.constant dense<0xFF800000> : vector<8x8x8xf32>
    %55 = vector.multi_reduction <maximumf>, %54, %cst_32 [2] : vector<8x8x2x8xf32> to vector<8x8x8xf32>
    %56 = vector.shape_cast %55 : vector<8x8x8xf32> to vector<4x2x8x8xf32>
    %cst_33 = arith.constant dense<0xFF800000> : vector<4x8x8xf32>
    %57 = vector.multi_reduction <maximumf>, %56, %cst_33 [1] : vector<4x2x8x8xf32> to vector<4x8x8xf32>
    %58 = vector.shape_cast %57 : vector<4x8x8xf32> to vector<1x4x8x8xf32>
    %59 = arith.truncf %58 : vector<1x4x8x8xf32> to vector<1x4x8x8xbf16>
    %c0_34 = arith.constant 0 : index
    %c0_35 = arith.constant 0 : index
    %c0_36 = arith.constant 0 : index
    %c0_37 = arith.constant 0 : index
    %60 = vector.load %arg7[%c0_34, %c0_35, %c0_36, %c0_37] : memref<1x4x8x8xbf16, #tpu.memory_space<vmem>>, vector<1x4x8x8xbf16>
    tpu.vector_store %arg7[%c0_34, %c0_35, %c0_36, %c0_37], %59 {strides = array<i32>} : memref<1x4x8x8xbf16, #tpu.memory_space<vmem>>, vector<1x4x8x8xbf16>,
    return
  }
  func.func @transform_0(%arg0: i32, %arg1: i32) -> (i32, i32, i32, i32) {
    %c0_i32 = arith.constant 0 : i32
    %c0_i32_0 = arith.constant 0 : i32
    %c0_i32_1 = arith.constant 0 : i32
    return %arg0, %arg1, %c0_i32, %c0_i32_0 : i32, i32, i32, i32
  }
  func.func @transform_1(%arg0: i32, %arg1: i32) -> (i32, i32, i32, i32) {
    %c8_i32 = arith.constant 8 : i32
    %0 = arith.muli %arg1, %c8_i32 : i32
    %c1_i32 = arith.constant 1 : i32
    %1 = arith.subi %0, %c1_i32 : i32
    %c0_i32 = arith.constant 0 : i32
    %2 = arith.maxsi %1, %c0_i32 : i32
    %c0_i32_0 = arith.constant 0 : i32
    %c0_i32_1 = arith.constant 0 : i32
    %c0_i32_2 = arith.constant 0 : i32
    return %arg0, %2, %c0_i32_0, %c0_i32_1 : i32, i32, i32, i32
  }
  func.func @transform_2(%arg0: i32, %arg1: i32) -> (i32, i32, i32, i32) {
    %c8_i32 = arith.constant 8 : i32
    %0 = arith.muli %arg1, %c8_i32 : i32
    %c8_i32_0 = arith.constant 8 : i32
    %1 = arith.addi %0, %c8_i32_0 : i32
    %c15_i32 = arith.constant 15 : i32
    %2 = arith.minsi %1, %c15_i32 : i32
    %c0_i32 = arith.constant 0 : i32
    %c0_i32_1 = arith.constant 0 : i32
    %c0_i32_2 = arith.constant 0 : i32
    return %arg0, %2, %c0_i32, %c0_i32_1 : i32, i32, i32, i32
  }
  func.func @transform_3(%arg0: i32, %arg1: i32) -> (i32, i32, i32) {
    %c0_i32 = arith.constant 0 : i32
    %c0_i32_0 = arith.constant 0 : i32
    %c0_i32_1 = arith.constant 0 : i32
    %c0_i32_2 = arith.constant 0 : i32
    return %c0_i32, %c0_i32_0, %c0_i32_1 : i32, i32, i32
  }
  func.func @transform_4(%arg0: i32, %arg1: i32) -> (i32, i32) {
    %c0_i32 = arith.constant 0 : i32
    %c0_i32_0 = arith.constant 0 : i32
    %c0_i32_1 = arith.constant 0 : i32
    return %c0_i32, %c0_i32_0 : i32, i32
  }
  func.func @transform_5(%arg0: i32, %arg1: i32) -> (i32, i32, i32, i32) {
    %c0_i32 = arith.constant 0 : i32
    %c0_i32_0 = arith.constant 0 : i32
    %c0_i32_1 = arith.constant 0 : i32
    return %arg0, %arg1, %c0_i32, %c0_i32_0 : i32, i32, i32, i32
  }
}

module attributes {stable_mosaic.version = 11 : i64} {
  func.func @kernel(%arg0: i32, %arg1: i32, %arg2: memref<1x4x8x8xbf16, #tpu.memory_space<vmem>>, %arg3: memref<1x1x8x8xbf16, #tpu.memory_space<vmem>>, %arg4: memref<1x1x8x8xbf16, #tpu.memory_space<vmem>>, %arg5: memref<3x24x16xbf16, #tpu.memory_space<vmem>>, %arg6: memref<1x16xf32, #tpu.memory_space<vmem>>, %arg7: memref<1x2x4x16xbf16, #tpu.memory_space<vmem>>, %arg8: memref<6x24x8xbf16, #tpu.memory_space<vmem>>) attributes {dimension_semantics = [#tpu.dimension_semantics<parallel>, #tpu.dimension_semantics<parallel>], iteration_bounds = array<i64: 2, 2>, scalar_prefetch = 0 : i64, scratch_operands = 1 : i64, tpu.core_type = #tpu.core_type<tc>, window_params = [{transform_indices = @transform_0, window_bounds = array<i64: 1, 4, 8, 8>}, {transform_indices = @transform_1, window_bounds = array<i64: 1, 1, 8, 8>}, {transform_indices = @transform_2, window_bounds = array<i64: 1, 1, 8, 8>}, {pipeline_mode = #tpu.pipeline_mode<synchronous>, transform_indices = @transform_3, window_bounds = array<i64: 3, 24, 16>}, {pipeline_mode = #tpu.pipeline_mode<synchronous>, transform_indices = @transform_4, window_bounds = array<i64: 1, 16>}, {transform_indices = @transform_5, window_bounds = array<i64: 1, 2, 4, 16>}]} {
    %cst = arith.constant 0.000000e+00 : bf16
    %0 = vector.broadcast %cst : bf16 to vector<6x1x8xbf16>
    %c0 = arith.constant 0 : index
    %c7 = arith.constant 7 : index
    %c0_0 = arith.constant 0 : index
    %1 = vector.load %arg8[%c0, %c7, %c0_0] : memref<6x24x8xbf16, #tpu.memory_space<vmem>>, vector<6x1x8xbf16>
    tpu.vector_store %arg8[%c0, %c7, %c0_0], %0 {strides = array<i32>} : memref<6x24x8xbf16, #tpu.memory_space<vmem>>, vector<6x1x8xbf16>,
    %c0_1 = arith.constant 0 : index
    %c16 = arith.constant 16 : index
    %c0_2 = arith.constant 0 : index
    %2 = vector.load %arg8[%c0_1, %c16, %c0_2] : memref<6x24x8xbf16, #tpu.memory_space<vmem>>, vector<6x1x8xbf16>
    tpu.vector_store %arg8[%c0_1, %c16, %c0_2], %0 {strides = array<i32>} : memref<6x24x8xbf16, #tpu.memory_space<vmem>>, vector<6x1x8xbf16>,
    %c0_3 = arith.constant 0 : index
    %c0_4 = arith.constant 0 : index
    %c0_5 = arith.constant 0 : index
    %c0_6 = arith.constant 0 : index
    %3 = vector.load %arg2[%c0_3, %c0_4, %c0_5, %c0_6] : memref<1x4x8x8xbf16, #tpu.memory_space<vmem>>, vector<1x4x8x8xbf16>
    %4 = vector.shape_cast %3 : vector<1x4x8x8xbf16> to vector<4x8x8xbf16>
    %c1 = arith.constant 1 : index
    %c8 = arith.constant 8 : index
    %c0_7 = arith.constant 0 : index
    %5 = vector.load %arg8[%c1, %c8, %c0_7] : memref<6x24x8xbf16, #tpu.memory_space<vmem>>, vector<4x8x8xbf16>
    tpu.vector_store %arg8[%c1, %c8, %c0_7], %4 {strides = array<i32>} : memref<6x24x8xbf16, #tpu.memory_space<vmem>>, vector<4x8x8xbf16>,
    %cst_8 = arith.constant 0.000000e+00 : bf16
    %6 = vector.broadcast %cst_8 : bf16 to vector<1x8x8xbf16>
    %c0_i32 = arith.constant 0 : i32
    %7 = arith.cmpi sgt, %arg1, %c0_i32 : i32
    %8 = arith.extui %7 : i1 to i32
    %c0_i32_9 = arith.constant 0 : i32
    %9 = arith.cmpi ne, %8, %c0_i32_9 : i32
    scf.if %9 {
      %c0_38 = arith.constant 0 : index
      %c0_39 = arith.constant 0 : index
      %c0_40 = arith.constant 0 : index
      %c0_41 = arith.constant 0 : index
      %61 = vector.load %arg3[%c0_38, %c0_39, %c0_40, %c0_41] : memref<1x1x8x8xbf16, #tpu.memory_space<vmem>>, vector<1x1x8x8xbf16>
      %62 = vector.shape_cast %61 : vector<1x1x8x8xbf16> to vector<1x8x8xbf16>
      %c0_42 = arith.constant 0 : index
      %c8_43 = arith.constant 8 : index
      %c0_44 = arith.constant 0 : index
      %63 = vector.load %arg8[%c0_42, %c8_43, %c0_44] : memref<6x24x8xbf16, #tpu.memory_space<vmem>>, vector<1x8x8xbf16>
      tpu.vector_store %arg8[%c0_42, %c8_43, %c0_44], %62 {strides = array<i32>} : memref<6x24x8xbf16, #tpu.memory_space<vmem>>, vector<1x8x8xbf16>,
    } else {
    }
    %c0_i32_10 = arith.constant 0 : i32
    %10 = arith.cmpi eq, %arg1, %c0_i32_10 : i32
    %11 = arith.extui %10 : i1 to i32
    %c0_i32_11 = arith.constant 0 : i32
    %12 = arith.cmpi ne, %11, %c0_i32_11 : i32
    scf.if %12 {
      %c0_38 = arith.constant 0 : index
      %c8_39 = arith.constant 8 : index
      %c0_40 = arith.constant 0 : index
      %61 = vector.load %arg8[%c0_38, %c8_39, %c0_40] : memref<6x24x8xbf16, #tpu.memory_space<vmem>>, vector<1x8x8xbf16>
      tpu.vector_store %arg8[%c0_38, %c8_39, %c0_40], %6 {strides = array<i32>} : memref<6x24x8xbf16, #tpu.memory_space<vmem>>, vector<1x8x8xbf16>,
    } else {
    }
    %c1_i32 = arith.constant 1 : i32
    %13 = arith.cmpi slt, %arg1, %c1_i32 : i32
    %14 = arith.extui %13 : i1 to i32
    %c0_i32_12 = arith.constant 0 : i32
    %15 = arith.cmpi ne, %14, %c0_i32_12 : i32
    scf.if %15 {
      %c0_38 = arith.constant 0 : index
      %c0_39 = arith.constant 0 : index
      %c0_40 = arith.constant 0 : index
      %c0_41 = arith.constant 0 : index
      %61 = vector.load %arg4[%c0_38, %c0_39, %c0_40, %c0_41] : memref<1x1x8x8xbf16, #tpu.memory_space<vmem>>, vector<1x1x8x8xbf16>
      %62 = vector.shape_cast %61 : vector<1x1x8x8xbf16> to vector<1x8x8xbf16>
      %c5 = arith.constant 5 : index
      %c8_42 = arith.constant 8 : index
      %c0_43 = arith.constant 0 : index
      %63 = vector.load %arg8[%c5, %c8_42, %c0_43] : memref<6x24x8xbf16, #tpu.memory_space<vmem>>, vector<1x8x8xbf16>
      tpu.vector_store %arg8[%c5, %c8_42, %c0_43], %62 {strides = array<i32>} : memref<6x24x8xbf16, #tpu.memory_space<vmem>>, vector<1x8x8xbf16>,
    } else {
    }
    %c1_i32_13 = arith.constant 1 : i32
    %16 = arith.cmpi eq, %arg1, %c1_i32_13 : i32
    %17 = arith.extui %16 : i1 to i32
    %c0_i32_14 = arith.constant 0 : i32
    %18 = arith.cmpi ne, %17, %c0_i32_14 : i32
    scf.if %18 {
      %c5 = arith.constant 5 : index
      %c8_38 = arith.constant 8 : index
      %c0_39 = arith.constant 0 : index
      %61 = vector.load %arg8[%c5, %c8_38, %c0_39] : memref<6x24x8xbf16, #tpu.memory_space<vmem>>, vector<1x8x8xbf16>
      tpu.vector_store %arg8[%c5, %c8_38, %c0_39], %6 {strides = array<i32>} : memref<6x24x8xbf16, #tpu.memory_space<vmem>>, vector<1x8x8xbf16>,
    } else {
    }
    %c0_15 = arith.constant 0 : index
    %c0_16 = arith.constant 0 : index
    %19 = vector.load %arg6[%c0_15, %c0_16] : memref<1x16xf32, #tpu.memory_space<vmem>>, vector<1x16xf32>
    %c0_17 = arith.constant 0 : index
    %c0_18 = arith.constant 0 : index
    %c0_19 = arith.constant 0 : index
    %20 = vector.load %arg8[%c0_17, %c0_18, %c0_19] : memref<6x24x8xbf16, #tpu.memory_space<vmem>>, vector<6x24x8xbf16>
    %21 = vector.extract_strided_slice %20 {offsets = [0, 0, 0], sizes = [4, 24, 8], strides = [1, 1, 1]} : vector<6x24x8xbf16> to vector<4x24x8xbf16>
    %22 = vector.extract_strided_slice %21 {offsets = [0, 7, 0], sizes = [4, 8, 8], strides = [1, 1, 1]} : vector<4x24x8xbf16> to vector<4x8x8xbf16>
    %23 = vector.extract_strided_slice %21 {offsets = [0, 8, 0], sizes = [4, 8, 8], strides = [1, 1, 1]} : vector<4x24x8xbf16> to vector<4x8x8xbf16>
    %24 = vector.extract_strided_slice %21 {offsets = [0, 9, 0], sizes = [4, 8, 8], strides = [1, 1, 1]} : vector<4x24x8xbf16> to vector<4x8x8xbf16>
    %25 = tpu.concatenate %22, %23, %24 in 2 : vector<4x8x8xbf16>, vector<4x8x8xbf16>, vector<4x8x8xbf16> -> vector<4x8x24xbf16>
    %26 = vector.shape_cast %25 : vector<4x8x24xbf16> to vector<32x24xbf16>
    %c0_20 = arith.constant 0 : index
    %c0_21 = arith.constant 0 : index
    %c0_22 = arith.constant 0 : index
    %27 = vector.load %arg5[%c0_20, %c0_21, %c0_22] : memref<3x24x16xbf16, #tpu.memory_space<vmem>>, vector<1x24x16xbf16>
    %28 = vector.shape_cast %27 : vector<1x24x16xbf16> to vector<24x16xbf16>
    %cst_23 = arith.constant dense<0.000000e+00> : vector<32x16xf32>
    %29 = tpu.matmul %26, %28, %cst_23 {dimension_numbers = #tpu.dot_dimension_numbers<[1], [0], [0], [1], [0, 0, 1, 1], [], []>} : vector<32x24xbf16>, vector<24x16xbf16>, vector<32x16xf32> -> vector<32x16xf32>
    %30 = vector.extract_strided_slice %20 {offsets = [1, 0, 0], sizes = [4, 24, 8], strides = [1, 1, 1]} : vector<6x24x8xbf16> to vector<4x24x8xbf16>
    %31 = vector.extract_strided_slice %30 {offsets = [0, 7, 0], sizes = [4, 8, 8], strides = [1, 1, 1]} : vector<4x24x8xbf16> to vector<4x8x8xbf16>
    %32 = vector.extract_strided_slice %30 {offsets = [0, 8, 0], sizes = [4, 8, 8], strides = [1, 1, 1]} : vector<4x24x8xbf16> to vector<4x8x8xbf16>
    %33 = vector.extract_strided_slice %30 {offsets = [0, 9, 0], sizes = [4, 8, 8], strides = [1, 1, 1]} : vector<4x24x8xbf16> to vector<4x8x8xbf16>
    %34 = tpu.concatenate %31, %32, %33 in 2 : vector<4x8x8xbf16>, vector<4x8x8xbf16>, vector<4x8x8xbf16> -> vector<4x8x24xbf16>
    %35 = vector.shape_cast %34 : vector<4x8x24xbf16> to vector<32x24xbf16>
    %c1_24 = arith.constant 1 : index
    %c0_25 = arith.constant 0 : index
    %c0_26 = arith.constant 0 : index
    %36 = vector.load %arg5[%c1_24, %c0_25, %c0_26] : memref<3x24x16xbf16, #tpu.memory_space<vmem>>, vector<1x24x16xbf16>
    %37 = vector.shape_cast %36 : vector<1x24x16xbf16> to vector<24x16xbf16>
    %cst_27 = arith.constant dense<0.000000e+00> : vector<32x16xf32>
    %38 = tpu.matmul %35, %37, %cst_27 {dimension_numbers = #tpu.dot_dimension_numbers<[1], [0], [0], [1], [0, 0, 1, 1], [], []>} : vector<32x24xbf16>, vector<24x16xbf16>, vector<32x16xf32> -> vector<32x16xf32>
    %39 = arith.addf %29, %38 : vector<32x16xf32>
    %40 = vector.extract_strided_slice %20 {offsets = [2, 0, 0], sizes = [4, 24, 8], strides = [1, 1, 1]} : vector<6x24x8xbf16> to vector<4x24x8xbf16>
    %41 = vector.extract_strided_slice %40 {offsets = [0, 7, 0], sizes = [4, 8, 8], strides = [1, 1, 1]} : vector<4x24x8xbf16> to vector<4x8x8xbf16>
    %42 = vector.extract_strided_slice %40 {offsets = [0, 8, 0], sizes = [4, 8, 8], strides = [1, 1, 1]} : vector<4x24x8xbf16> to vector<4x8x8xbf16>
    %43 = vector.extract_strided_slice %40 {offsets = [0, 9, 0], sizes = [4, 8, 8], strides = [1, 1, 1]} : vector<4x24x8xbf16> to vector<4x8x8xbf16>
    %44 = tpu.concatenate %41, %42, %43 in 2 : vector<4x8x8xbf16>, vector<4x8x8xbf16>, vector<4x8x8xbf16> -> vector<4x8x24xbf16>
    %45 = vector.shape_cast %44 : vector<4x8x24xbf16> to vector<32x24xbf16>
    %c2 = arith.constant 2 : index
    %c0_28 = arith.constant 0 : index
    %c0_29 = arith.constant 0 : index
    %46 = vector.load %arg5[%c2, %c0_28, %c0_29] : memref<3x24x16xbf16, #tpu.memory_space<vmem>>, vector<1x24x16xbf16>
    %47 = vector.shape_cast %46 : vector<1x24x16xbf16> to vector<24x16xbf16>
    %cst_30 = arith.constant dense<0.000000e+00> : vector<32x16xf32>
    %48 = tpu.matmul %45, %47, %cst_30 {dimension_numbers = #tpu.dot_dimension_numbers<[1], [0], [0], [1], [0, 0, 1, 1], [], []>} : vector<32x24xbf16>, vector<24x16xbf16>, vector<32x16xf32> -> vector<32x16xf32>
    %49 = arith.addf %39, %48 : vector<32x16xf32>
    %50 = vector.broadcast %19 : vector<1x16xf32> to vector<32x16xf32>
    %51 = arith.addf %49, %50 : vector<32x16xf32>
    %cst_31 = arith.constant 0.000000e+00 : f32
    %52 = vector.broadcast %cst_31 : f32 to vector<32x16xf32>
    %53 = arith.maximumf %51, %52 : vector<32x16xf32>
    %54 = vector.shape_cast %53 : vector<32x16xf32> to vector<4x4x2x16xf32>
    %cst_32 = arith.constant dense<0xFF800000> : vector<4x4x16xf32>
    %55 = vector.multi_reduction <maximumf>, %54, %cst_32 [2] : vector<4x4x2x16xf32> to vector<4x4x16xf32>
    %56 = vector.shape_cast %55 : vector<4x4x16xf32> to vector<2x2x4x16xf32>
    %cst_33 = arith.constant dense<0xFF800000> : vector<2x4x16xf32>
    %57 = vector.multi_reduction <maximumf>, %56, %cst_33 [1] : vector<2x2x4x16xf32> to vector<2x4x16xf32>
    %58 = vector.shape_cast %57 : vector<2x4x16xf32> to vector<1x2x4x16xf32>
    %59 = arith.truncf %58 : vector<1x2x4x16xf32> to vector<1x2x4x16xbf16>
    %c0_34 = arith.constant 0 : index
    %c0_35 = arith.constant 0 : index
    %c0_36 = arith.constant 0 : index
    %c0_37 = arith.constant 0 : index
    %60 = vector.load %arg7[%c0_34, %c0_35, %c0_36, %c0_37] : memref<1x2x4x16xbf16, #tpu.memory_space<vmem>>, vector<1x2x4x16xbf16>
    tpu.vector_store %arg7[%c0_34, %c0_35, %c0_36, %c0_37], %59 {strides = array<i32>} : memref<1x2x4x16xbf16, #tpu.memory_space<vmem>>, vector<1x2x4x16xbf16>,
    return
  }
  func.func @transform_0(%arg0: i32, %arg1: i32) -> (i32, i32, i32, i32) {
    %c0_i32 = arith.constant 0 : i32
    %c0_i32_0 = arith.constant 0 : i32
    %c0_i32_1 = arith.constant 0 : i32
    return %arg0, %arg1, %c0_i32, %c0_i32_0 : i32, i32, i32, i32
  }
  func.func @transform_1(%arg0: i32, %arg1: i32) -> (i32, i32, i32, i32) {
    %c4_i32 = arith.constant 4 : i32
    %0 = arith.muli %arg1, %c4_i32 : i32
    %c1_i32 = arith.constant 1 : i32
    %1 = arith.subi %0, %c1_i32 : i32
    %c0_i32 = arith.constant 0 : i32
    %2 = arith.maxsi %1, %c0_i32 : i32
    %c0_i32_0 = arith.constant 0 : i32
    %c0_i32_1 = arith.constant 0 : i32
    %c0_i32_2 = arith.constant 0 : i32
    return %arg0, %2, %c0_i32_0, %c0_i32_1 : i32, i32, i32, i32
  }
  func.func @transform_2(%arg0: i32, %arg1: i32) -> (i32, i32, i32, i32) {
    %c4_i32 = arith.constant 4 : i32
    %0 = arith.muli %arg1, %c4_i32 : i32
    %c4_i32_0 = arith.constant 4 : i32
    %1 = arith.addi %0, %c4_i32_0 : i32
    %c7_i32 = arith.constant 7 : i32
    %2 = arith.minsi %1, %c7_i32 : i32
    %c0_i32 = arith.constant 0 : i32
    %c0_i32_1 = arith.constant 0 : i32
    %c0_i32_2 = arith.constant 0 : i32
    return %arg0, %2, %c0_i32, %c0_i32_1 : i32, i32, i32, i32
  }
  func.func @transform_3(%arg0: i32, %arg1: i32) -> (i32, i32, i32) {
    %c0_i32 = arith.constant 0 : i32
    %c0_i32_0 = arith.constant 0 : i32
    %c0_i32_1 = arith.constant 0 : i32
    %c0_i32_2 = arith.constant 0 : i32
    return %c0_i32, %c0_i32_0, %c0_i32_1 : i32, i32, i32
  }
  func.func @transform_4(%arg0: i32, %arg1: i32) -> (i32, i32) {
    %c0_i32 = arith.constant 0 : i32
    %c0_i32_0 = arith.constant 0 : i32
    %c0_i32_1 = arith.constant 0 : i32
    return %c0_i32, %c0_i32_0 : i32, i32
  }
  func.func @transform_5(%arg0: i32, %arg1: i32) -> (i32, i32, i32, i32) {
    %c0_i32 = arith.constant 0 : i32
    %c0_i32_0 = arith.constant 0 : i32
    %c0_i32_1 = arith.constant 0 : i32
    return %arg0, %arg1, %c0_i32, %c0_i32_0 : i32, i32, i32, i32
  }
}

</mosaic_0001>

<bundles_post_ra>
// kernel: tpu_custom_call.1
= control target key start
LH: loop header
LB: loop body
LE: loop exit
PB: predicated region body
PF: predicated region fallthrough
CT: control target
= control target key end

     0   :  { %7 = vsyncpa [#allocation3], 0  ;;  %s479_s0 = inlined_call_operand.hbm [shape: f32[8,128], index: 0, kind: input, shape index: {}]   ;;  %s480_s1 = inlined_call_operand.hbm [shape: f32[8,128], index: 1, kind: input, shape index: {}]   ;;  %s481_s2 = inlined_call_operand.hbm [shape: f32[8,128], index: 2, kind: output, shape index: {}]  }
   0x1   :  { %8 = vsyncpa [#allocation6], 0 }
   0x2   :  { %9 = vsyncpa [#allocation4], 0  ;;  %s363_s9 = smov 0  }
   0x3 LB: > { %s196_s10 = sadd.s32 4294967295, %s343_s9   ;;  %p197_p0 = scmp.ge.s32.totalorder %s343_s9, 1  ;;  %s343_s9 = sphi %s363_s9, %s15_s9  }
   0x4   : > { %p83_p1 = scmp.lt.s32.totalorder %s343_s9, 3  ;;  %p373_p2 = scmp.eq.s32.totalorder %s196_s10, 0 }
   0x5   : > { %s345_s13 = smov [#allocation2]   ;;  %s346_s15 = smov [#allocation5]  }
   0x6   : > { %s485_s11 = scalar_select %p373_p2, 1, 0 }
   0x7   : > { %p377_p3 = pnand %p197_p0, %p83_p1  ;;  %s96_s14 = sshll.u32 %s345_s13, 4  ;;  %s97_s14 = int_to_ptr.vmem [resolvable:$true] %s96_s14 }
   0x8   : > { %s107_s16 = sshll.u32 %s346_s15, 4  ;;  %s243_s20 = scalar_lea.hbm %s479_s0, 128  ;;  %s389_s16 = int_to_ptr.vmem [resolvable:$true] %s107_s16 }
   0x9   : > { %s486_s12 = scalar_select %p377_p3, 1, 0 }
   0xa   : > { %p219_p4 = pneg %p377_p3  ;;  %p244_p6 = scmp.ne.s32.totalorder %s479_s0, %s243_s20 }
   0xb   : > { %p250_p10 = scmp.lt.u32.totalorder %s243_s20, %s479_s0 }
   0xc   : > { %p385_p5 = pnand %p373_p2, %p219_p4 }
   0xe   : > { %p245_p7 = pneg %p385_p5 }
  0x10   : > { %p246_p8 = pnand %p245_p7, %p244_p6 }
  0x12   : > { %p247_p9 = pneg %p246_p8 }
  0x14   : > { %p252_p11 = pnand %p250_p10, %p247_p9 }
  0x16   : > { %255 = shalt.err (!%p252_p11)
}
  0x17   : > { %s256_s25 = scalar_lea.vmem %s97_s14, 128  ;;  %p264_p1 = scmp.lt.s32.totalorder %s97_s14, %s97_s14 }
  0x18   : > { %p257_p12 = scmp.ne.s32.totalorder %s97_s14, %s256_s25  ;;  %p265_p4 = scmp.lt.s32.totalorder %s256_s25, %s256_s25 }
  0x1a   : > { %p259_p13 = pnand %p257_p12, %p245_p7  ;;  %p266_p2 = por %p265_p4, %p264_p1 }
  0x1c   : > { %p260_p0 = pneg %p259_p13 }
  0x1e   : > { %p267_p3 = pnand %p266_p2, %p260_p0 }
  0x20   : > { %270 = shalt.err (!%p267_p3)
}
  0x21   : > { %222 = dma.hbm_to_vmem [thread:$0]  (!%p385_p5), %s479_s0, 128, %s97_s14, [#allocation3]  }
  0x22   : > { %s271_s30 = scalar_lea.hbm %s480_s1, 128 }
  0x23   : > { %p272_p6 = scmp.ne.s32.totalorder %s480_s1, %s271_s30  ;;  %p278_p3 = scmp.lt.u32.totalorder %s271_s30, %s480_s1 }
  0x25   : > { %p274_p8 = pnand %p272_p6, %p245_p7 }
  0x27   : > { %p275_p2 = pneg %p274_p8 }
  0x29   : > { %p280_p9 = pnand %p278_p3, %p275_p2 }
  0x2b   : > { %283 = shalt.err (!%p280_p9)
}
  0x2c   : > { %s284_s7 = scalar_lea.vmem %s389_s16, 128  ;;  %p292_p13 = scmp.lt.s32.totalorder %s389_s16, %s389_s16 }
  0x2d   : > { %p285_p10 = scmp.ne.s32.totalorder %s389_s16, %s284_s7  ;;  %p293_p0 = scmp.lt.s32.totalorder %s284_s7, %s284_s7 }
  0x2f   : > { %p287_p11 = pnand %p285_p10, %p245_p7  ;;  %p294_p1 = por %p293_p0, %p292_p13 }
  0x31   : > { %p288_p12 = pneg %p287_p11 }
  0x33   : > { %p295_p4 = pnand %p294_p1, %p288_p12 }
  0x35   : > { %298 = shalt.err (!%p295_p4)
}
  0x36   : > { %225 = dma.hbm_to_vmem [thread:$0]  (!%p385_p5), %s480_s1, 128, %s389_s16, [#allocation6]  }
  0x37   : > { %p488_p6 = scmp.ne.s32.totalorder %s486_s12, 0 }
  0x38   : > { %p489_p8 = scmp.ne.s32.totalorder (!%p488_p6), %s485_s11, 0 }
  0x39   : > { %120 = sbr.rel (%p488_p6) target bundleno = 92 (0x5c), region = 28 }
  0x40   : > { %330 = dma.done.wait (%p489_p8), [#allocation3], 128  }
  0x41   : > { %332 = vsyncadd (%p489_p8), [#allocation3], 4294967168 }
  0x42   : > { %334 = dma.done.wait (%p489_p8), [#allocation6], 128  }
  0x43   : > { %336 = vsyncadd (%p489_p8), [#allocation6], 4294967168  ;;  %s347_s14 = smov [#allocation7]   ;;  %v136_v0 = vld [vmem:[#allocation2] sm:$0xff]  ;;  %v137_v1 = vld [vmem:[#allocation5] sm:$0xff]  ;;  %p450_p5 = scmp.eq.s32.totalorder %s196_s10, 1 }
  0x44   : > { %s147_s15 = sshll.u32 %s347_s14, 4  ;;  %v138_v2 = vadd.f32 %v137_v1, %v136_v0  ;;  %s148_s15 = int_to_ptr.vmem [resolvable:$true] %s147_s15 }
  0x45   : > { %s299_s16 = scalar_lea.vmem %s148_s15, 128  ;;  %p306_p9 = scmp.lt.s32.totalorder %s148_s15, %s148_s15 }
  0x46   : > { %139 = vst [vmem:[#allocation7] sm:$0xff] %v138_v2  ;;  %p300_p7 = scmp.ne.s32.totalorder %s148_s15, %s299_s16  ;;  %p307_p10 = scmp.lt.s32.totalorder %s299_s16, %s299_s16 }
  0x48   : > { %p301_p2 = pnand %p300_p7, %p450_p5  ;;  %p308_p11 = por %p307_p10, %p306_p9 }
  0x4a   : > { %p302_p3 = pneg %p301_p2 }
  0x4c   : > { %p309_p12 = pnand %p308_p11, %p302_p3 }
  0x4e   : > { %312 = shalt.err (!%p309_p12)
}
  0x4f   : > { %s313_s10 = scalar_lea.hbm %s481_s2, 128 }
  0x50   : > { %p314_p13 = scmp.ne.s32.totalorder %s481_s2, %s313_s10  ;;  %p319_p4 = scmp.lt.u32.totalorder %s313_s10, %s481_s2 }
  0x52   : > { %p315_p0 = pnand %p314_p13, %p450_p5 }
  0x54   : > { %p316_p1 = pneg %p315_p0 }
  0x56   : > { %p321_p6 = pnand %p319_p4, %p316_p1 }
  0x58   : > { %324 = shalt.err (!%p321_p6)
}
  0x59   : > { %216 = dma.vmem_to_hbm [thread:$0]  (%p450_p5), %s148_s15, 128, %s481_s2, [#allocation4]  }
  0x5a   : > { %338 = dma.done.wait (%p450_p5), [#allocation4], 128  }
  0x5b   : > { %340 = vsyncadd (%p450_p5), [#allocation4], 4294967168 }
  0x5c PF: > { %s15_s9 = sadd.s32 1, %s343_s9  }
  0x5d   : > { %p12_p8 = scmp.ge.s32.totalorder %s15_s9, 4  }
  0x5f   :  { %14 = sbr.rel (!%p12_p8) target bundleno = 3 (0x3), region = 61 }
  0x66   :  { %160 = vsyncpa [#allocation3], 1 }
  0x67   :  { %162 = vsyncpa [#allocation3 + $0x1], 1 }
  0x68   :  { %163 = vsyncpa [#allocation6], 1 }
  0x69   :  { %164 = vsyncpa [#allocation4], 1 }
  0x6a   :  { %166 = vsyncpa [#allocation4 + $0x1], 1 }

// kernel: _lambda_.3
= control target key start
LH: loop header
LB: loop body
LE: loop exit
PB: predicated region body
PF: predicated region fallthrough
CT: control target
= control target key end

     0   :  { %s2160_s18 = smov 0   ;;  %s2162_s19 = smov 0   ;;  %s3165_s0 = inlined_call_operand.vmem [shape: bf16[2,16,16,4], index: 0, kind: input, shape index: {}, may-alias: {0,1,2}]   ;;  %s3166_s1 = inlined_call_operand.vmem [shape: bf16[2,16,16,4], index: 1, kind: input, shape index: {}, may-alias: {0,1,2}]   ;;  %s3167_s2 = inlined_call_operand.vmem [shape: bf16[2,16,16,4], index: 2, kind: input, shape index: {}, may-alias: {0,1,2}]   ;;  %s3168_s3 = inlined_call_operand.vmem [shape: bf16[36,8], index: 3, kind: input, shape index: {}]   ;;  %s3169_s4 = inlined_call_operand.vmem [shape: f32[1,8], index: 4, kind: input, shape index: {}]   ;;  %s3170_s5 = inlined_call_operand.vmem [shape: bf16[2,16,16,8], index: 5, kind: output, shape index: {}]  }
   0x1   :  { %s2164_s20 = smov 0   ;;  %s2166_s21 = smov 0  }
   0x2   :  { %s2168_s22 = smov 0  }
   0x3 LB: > { %s24_s23 = sadd.s32 1, %s2110_s20  ;;  %s27_s24 = sadd.s32 1, %s2114_s21  ;;  %s2118_s22 = sphi %s2168_s22, %s15_s22   ;;  %s2114_s21 = sphi %s2166_s21, %s3252_s21   ;;  %s2110_s20 = sphi %s2164_s20, %s3251_s20   ;;  %s2106_s19 = sphi %s2162_s19, %s3250_s19   ;;  %s2102_s18 = sphi %s2160_s18, %s3249_s18  }
   0x4   : > { %p25_p0 = scmp.ge.s32.totalorder %s24_s23, 2  ;;  %p1868_p1 = scmp.ge.s32.totalorder %s2118_s22, 1 }
   0x5   : > { %p273_p2 = scmp.lt.s32.totalorder %s2118_s22, 5 }
   0x6   : > { %s3254_s23 = smov (%p25_p0, %s24_s23), 0  ;;  %s3256_s24 = smov (!%p25_p0, %s27_s24), %s2114_s21 }
   0x7   : > { %p274_p3 = pnand %p1868_p1, %p273_p2  ;;  %p29_p4 = scmp.ge.s32.totalorder %s3256_s24, 2 }
   0x9   : > { %s3258_s24 = smov (%p29_p4, %s3256_s24), 0  ;;  %277 = sbr.rel (%p274_p3) target bundleno = 689 (0x2b1), region = 40 }
  0x10   : > { %vm394_vm0 = vcmask 27651   ;;  %vm395_vm1 = vsmask.f32 7950  ;;  %v397_v0 = vld [vmem:[#allocation2] sm:$0x8]  ;;  %vm427_vm2 = vcmask 28676  }
  0x11   : > { %vm2194_vm3 = vmand %vm394_vm0, %vm395_vm1  ;;  %v400_v2 = vld [vmem:[#allocation2 + $0x10] sm:$0x8]  ;;  %v403_v3 = vld [vmem:[#allocation2 + $0x20] sm:$0x8]  ;;  %vm428_vm4 = vsmask.f32 4352 }
  0x12   : > { %v398_v4 = vsel %vm2194_vm3, 0, %v397_v0  ;;  %v401_v5 = vsel %vm2194_vm3, 0, %v400_v2  ;;  %v404_v6 = vsel %vm2194_vm3, 0, %v403_v3  ;;  %v406_v7 = vld [vmem:[#allocation2 + $0x30] sm:$0x8]  ;;  %s2205_s25 = sshll.u32 %s2102_s18, 3  ;;  %vm2216_vm5 = vmand %vm427_vm2, %vm428_vm4 }
  0x13   : > { %399 = vst [vmem:[#allocation2] sm:$0x8] %v398_v4  ;;  %402 = vst [vmem:[#allocation2 + $0x10] sm:$0x8] %v401_v5  ;;  %v407_v8 = vsel %vm2194_vm3, 0, %v406_v7  ;;  %p338_p5 = scmp.lt.s32.totalorder %s2106_s19, 1 }
  0x14   : > { %405 = vst [vmem:[#allocation2 + $0x20] sm:$0x8] %v404_v6  ;;  %v409_v9 = vld [vmem:[#allocation2 + $0x40] sm:$0x8]  ;;  %v412_v10 = vld [vmem:[#allocation2 + $0x50] sm:$0x8] }
  0x15   : > { %408 = vst [vmem:[#allocation2 + $0x30] sm:$0x8] %v407_v8  ;;  %v410_v11 = vsel %vm2194_vm3, 0, %v409_v9  ;;  %v413_v12 = vsel %vm2194_vm3, 0, %v412_v10  ;;  %v415_v13 = vld [vmem:[#allocation2 + $0x60] sm:$0x8] }
  0x16   : > { %v418_v14 = vld [vmem:[#allocation2 + $0x70] sm:$0x8]  ;;  %411 = vst [vmem:[#allocation2 + $0x40] sm:$0x8] %v410_v11  ;;  %414 = vst [vmem:[#allocation2 + $0x50] sm:$0x8] %v413_v12 }
  0x17   : > { %v416_v16 = vsel %vm2194_vm3, 0, %v415_v13  ;;  %v419_v17 = vsel %vm2194_vm3, 0, %v418_v14  ;;  %v421_v18 = vld [vmem:[#allocation2 + $0x80] sm:$0x8]  ;;  %v424_v19 = vld [vmem:[#allocation2 + $0x90] sm:$0x8] }
  0x18   : > { %417 = vst [vmem:[#allocation2 + $0x60] sm:$0x8] %v416_v16  ;;  %420 = vst [vmem:[#allocation2 + $0x70] sm:$0x8] %v419_v17  ;;  %v422_v20 = vsel %vm2194_vm3, 0, %v421_v18  ;;  %v425_v21 = vsel %vm2194_vm3, 0, %v424_v19 }
  0x19   : > { %v430_v22 = vld [vmem:[#allocation2 + $0x8] sm:$0x10]  ;;  %v433_v23 = vld [vmem:[#allocation2 + $0x18] sm:$0x10]  ;;  %423 = vst [vmem:[#allocation2 + $0x80] sm:$0x8] %v422_v20 }
  0x1a   : > { %426 = vst [vmem:[#allocation2 + $0x90] sm:$0x8] %v425_v21  ;;  %v431_v24 = vsel %vm2216_vm5, 0, %v430_v22  ;;  %v434_v25 = vsel %vm2216_vm5, 0, %v433_v23  ;;  %v436_v26 = vld [vmem:[#allocation2 + $0x28] sm:$0x10] }
  0x1b   : > { %v439_v27 = vld [vmem:[#allocation2 + $0x38] sm:$0x10]  ;;  %432 = vst [vmem:[#allocation2 + $0x8] sm:$0x10] %v431_v24  ;;  %435 = vst [vmem:[#allocation2 + $0x18] sm:$0x10] %v434_v25 }
  0x1c   : > { %v437_v28 = vsel %vm2216_vm5, 0, %v436_v26  ;;  %v440_v29 = vsel %vm2216_vm5, 0, %v439_v27  ;;  %v442_v30 = vld [vmem:[#allocation2 + $0x48] sm:$0x10]  ;;  %v445_v31 = vld [vmem:[#allocation2 + $0x58] sm:$0x10] }
  0x1d   : > { %438 = vst [vmem:[#allocation2 + $0x28] sm:$0x10] %v437_v28  ;;  %441 = vst [vmem:[#allocation2 + $0x38] sm:$0x10] %v440_v29  ;;  %v443_v32 = vsel %vm2216_vm5, 0, %v442_v30  ;;  %v446_v33 = vsel %vm2216_vm5, 0, %v445_v31 }
  0x1e   : > { %v448_v34 = vld [vmem:[#allocation2 + $0x68] sm:$0x10]  ;;  %v451_v35 = vld [vmem:[#allocation2 + $0x78] sm:$0x10]  ;;  %444 = vst [vmem:[#allocation2 + $0x48] sm:$0x10] %v443_v32 }
  0x1f   : > { %447 = vst [vmem:[#allocation2 + $0x58] sm:$0x10] %v446_v33  ;;  %v449_v36 = vsel %vm2216_vm5, 0, %v448_v34  ;;  %v452_v37 = vsel %vm2216_vm5, 0, %v451_v35  ;;  %v454_v38 = vld [vmem:[#allocation2 + $0x88] sm:$0x10] }
  0x20   : > { %v457_v39 = vld [vmem:[#allocation2 + $0x98] sm:$0x10]  ;;  %450 = vst [vmem:[#allocation2 + $0x68] sm:$0x10] %v449_v36  ;;  %453 = vst [vmem:[#allocation2 + $0x78] sm:$0x10] %v452_v37 }
  0x21   : > { %v455_v40 = vsel %vm2216_vm5, 0, %v454_v38  ;;  %v458_v41 = vsel %vm2216_vm5, 0, %v457_v39  ;;  %s3260_s19 = smov (!%p338_p5, %s2106_s19), 1  ;;  %p340_p6 = scmp.lt.s32.totalorder %s2205_s25, 15  ;;  %vm541_vm6 = vcmask 31748   ;;  %vm543_vm7 = vcmask 27648  }
  0x22   : > { %456 = vst [vmem:[#allocation2 + $0x88] sm:$0x10] %v455_v40  ;;  %459 = vst [vmem:[#allocation2 + $0x98] sm:$0x10] %v458_v41  ;;  %s1874_s26 = sadd.s32 4294967295, %s2205_s25  ;;  %s2253_s27 = sshll.u32 %s3260_s19, 5 }
  0x23   : > { %p350_p7 = scmp.gt.s32.totalorder %s1874_s26, 0  ;;  %p1875_p8 = scmp.lt.s32.totalorder %s1874_s26, 15 }
  0x24   : > { %s341_s28 = scalar_select %p340_p6, %s2205_s25, 15 }
  0x25   : > { %s351_s29 = scalar_select %p350_p7, %s1874_s26, 0 }
  0x26   : > { %s1870_s30 = sshll.u32 %s341_s28, 1  ;;  %s366_s7 = sadd.s32 8, %s2205_s25 }
  0x27   : > { %s344_s6 = sadd.s32 %s2253_s27, %s1870_s30  ;;  %p2258_p9 = scmp.lt.s32.totalorder %s366_s7, 15 }
  0x28   : > { %s1872_s8 = sshll.u32 %s344_s6, 2  ;;  %s3262_s29 = smov (!%p1875_p8, %s351_s29), 15 }
  0x29   : > { %s2265_s12 = scalar_lea.vmem %s3165_s0, %s1872_s8  ;;  %s2270_s15 = scalar_lea.vmem %s3170_s5, %s1872_s8 }
  0x2a   : > { %v2057_v42 = vld [vmem:[%s2265_s12] ss:$0 sps:$4 sm:$0xff]   ;;  %s3264_s7 = smov (!%p2258_p9, %s366_s7), 15  ;;  %v2058_v43 = vld [vmem:[%s2265_s12 + $0x4] ss:$0 sps:$4 sm:$0xff]   ;;  %s1880_s16 = sshll.u32 %s3262_s29, 1 }
  0x2b   : > { %542 = vst.msk [vmem:[#allocation2 + $0x10] sm:$0xf0] %vm541_vm6, %v2057_v42  ;;  %v2059_v44 = vld [vmem:[%s2265_s12 + $0x8] ss:$0 sps:$4 sm:$0xff]   ;;  %s358_s17 = sadd.s32 %s1880_s16, %s2253_s27  ;;  %v2060_v45 = vld [vmem:[%s2265_s12 + $0xc] ss:$0 sps:$4 sm:$0xff]  }
  0x2c   : > { %544 = vst.msk [vmem:[#allocation2 + $0x18] sm:$0xf] %vm543_vm7, %v2058_v43  ;;  %s1882_s19 = sshll.u32 %s358_s17, 2  ;;  %v2061_v46 = vld [vmem:[%s2265_s12 + $0x10] ss:$0 sps:$4 sm:$0xff]   ;;  %s3266_s7 = smov (!%p2258_p9, %s3264_s7), 15 }
  0x2d   : > { %545 = vst.msk [vmem:[#allocation2 + $0x20] sm:$0xf0] %vm541_vm6, %v2059_v44  ;;  %s2286_s28 = scalar_lea.vmem %s3166_s1, %s1882_s19  ;;  %v2062_v47 = vld [vmem:[%s2265_s12 + $0x14] ss:$0 sps:$4 sm:$0xff]   ;;  %v2063_v48 = vld [vmem:[%s2265_s12 + $0x18] ss:$0 sps:$4 sm:$0xff]  }
  0x2e   : > { %546 = vst.msk [vmem:[#allocation2 + $0x28] sm:$0xf] %vm543_vm7, %v2060_v45  ;;  %v2064_v49 = vld [vmem:[%s2265_s12 + $0x1c] ss:$0 sps:$4 sm:$0xff]   ;;  %548 = vst.msk [vmem:[#allocation2 + $0x38] sm:$0xf] %vm543_vm7, %v2062_v47 }
  0x2f   : > { %547 = vst.msk [vmem:[#allocation2 + $0x30] sm:$0xf0] %vm541_vm6, %v2061_v46  ;;  %549 = vst.msk [vmem:[#allocation2 + $0x40] sm:$0xf0] %vm541_vm6, %v2063_v48  ;;  %v2065_v50 = vld [vmem:[%s2265_s12 + $0x20] ss:$0 sps:$4 sm:$0xff]  }
  0x30   : > { %s1887_s29 = sshll.u32 %s3266_s7, 1  ;;  %550 = vst.msk [vmem:[#allocation2 + $0x48] sm:$0xf] %vm543_vm7, %v2064_v49  ;;  %v2066_v51 = vld [vmem:[%s2265_s12 + $0x24] ss:$0 sps:$4 sm:$0xff]   ;;  %p1910_p10 = scmp.le.s32.totalorder %s2102_s18, 0 }
  0x31   : > { %s375_s30 = sadd.s32 %s1887_s29, %s2253_s27  ;;  %551 = vst.msk [vmem:[#allocation2 + $0x50] sm:$0xf0] %vm541_vm6, %v2065_v50  ;;  %v2067_v52 = vld [vmem:[%s2265_s12 + $0x28] ss:$0 sps:$4 sm:$0xff]   ;;  %v2068_v53 = vld [vmem:[%s2265_s12 + $0x2c] ss:$0 sps:$4 sm:$0xff]  }
  0x32   : > { %s1889_s6 = sshll.u32 %s375_s30, 2  ;;  %552 = vst.msk [vmem:[#allocation2 + $0x58] sm:$0xf] %vm543_vm7, %v2066_v51  ;;  %v2069_v54 = vld [vmem:[%s2265_s12 + $0x30] ss:$0 sps:$4 sm:$0xff]   ;;  %562 = sbr.rel (%p1910_p10) target bundleno = 57 (0x39), region = 44 }
  0x33   : > { %s377_s10 = scalar_lea.vmem %s3167_s2, %s1889_s6  ;;  %553 = vst.msk [vmem:[#allocation2 + $0x60] sm:$0xf0] %vm541_vm6, %v2067_v52  ;;  %v2070_v55 = vld [vmem:[%s2265_s12 + $0x34] ss:$0 sps:$4 sm:$0xff]   ;;  %555 = vst.msk [vmem:[#allocation2 + $0x70] sm:$0xf0] %vm541_vm6, %v2069_v54 }
  0x34   : > { %554 = vst.msk [vmem:[#allocation2 + $0x68] sm:$0xf] %vm543_vm7, %v2068_v53  ;;  %v2071_v56 = vld [vmem:[%s2265_s12 + $0x38] ss:$0 sps:$4 sm:$0xff]   ;;  %v2072_v57 = vld [vmem:[%s2265_s12 + $0x3c] ss:$0 sps:$4 sm:$0xff]  }
  0x35   : > { %556 = vst.msk [vmem:[#allocation2 + $0x78] sm:$0xf] %vm543_vm7, %v2070_v55  ;;  %558 = vst.msk [vmem:[#allocation2 + $0x88] sm:$0xf] %vm543_vm7, %v2072_v57  ;;  %v2073_v58 = vld [vmem:[%s2286_s28] ss:$0 sps:$4 sm:$0xff] (!%p1910_p10)  }
  0x36   : > { %557 = vst.msk [vmem:[#allocation2 + $0x80] sm:$0xf0] %vm541_vm6, %v2071_v56  ;;  %v2074_v59 = vld [vmem:[%s2286_s28 + $0x4] ss:$0 sps:$4 sm:$0xff] (!%p1910_p10)   ;;  %573 = vst.msk [vmem:[#allocation2] sm:$0xf0] (!%p1910_p10), %vm541_vm6, %v2073_v58 }
  0x37   : > { %574 = vst.msk [vmem:[#allocation2 + $0x8] sm:$0xf] (!%p1910_p10), %vm543_vm7, %v2074_v59 }
  0x39 PF: > { %p1913_p11 = scmp.ne.s32.totalorder %s2102_s18, 0 }
  0x3a   : > { %v2120_v60 = vmov (!%p1913_p11), 0  }
  0x3b   : > { %578 = sbr.rel (%p1913_p11) target bundleno = 66 (0x42), region = 48  ;;  %579 = vst.msk [vmem:[#allocation2] sm:$0xf0] (!%p1913_p11), %vm541_vm6, %v2120_v60 }
  0x3c   : > { %580 = vst.msk [vmem:[#allocation2 + $0x8] sm:$0xf] (!%p1913_p11), %vm543_vm7, %v2120_v60 }
  0x42 PF: > { %p1914_p12 = scmp.ge.s32.totalorder %s2102_s18, 1 }
  0x43   : > { %v2075_v61 = vld [vmem:[%s377_s10] ss:$0 sps:$4 sm:$0xff] (!%p1914_p12)   ;;  %v2076_v62 = vld [vmem:[%s377_s10 + $0x4] ss:$0 sps:$4 sm:$0xff] (!%p1914_p12)  }
  0x44   : > { %584 = sbr.rel (%p1914_p12) target bundleno = 75 (0x4b), region = 52  ;;  %596 = vst.msk [vmem:[#allocation2 + $0x90] sm:$0xf0] (!%p1914_p12), %vm541_vm6, %v2075_v61 }
  0x45   : > { %597 = vst.msk [vmem:[#allocation2 + $0x98] sm:$0xf] (!%p1914_p12), %vm543_vm7, %v2076_v62 }
  0x4b PF: > { %p1917_p13 = scmp.ne.s32.totalorder %s2102_s18, 1 }
  0x4c   : > { %v2121_v63 = vmov (!%p1917_p13), 0  }
  0x4d   : > { %601 = sbr.rel (%p1917_p13) target bundleno = 84 (0x54), region = 56  ;;  %603 = vst.msk [vmem:[#allocation2 + $0x90] sm:$0xf0] (!%p1917_p13), %vm541_vm6, %v2121_v63 }
  0x4e   : > { %604 = vst.msk [vmem:[#allocation2 + $0x98] sm:$0xf] (!%p1917_p13), %vm543_vm7, %v2121_v63 }
  0x54 PF: > { %v2332_v0 = vld [vmem:[#allocation2 + $0x48] sm:$0xff]  ;;  %v2336_v2 = vld [vmem:[#allocation2 + $0x18] sm:$0xff]  ;;  %v2342_v7 = vld [vmem:[#allocation2] sm:$0xff]  ;;  %vm626_vm8 = vsmask.f32 7424  ;;  %s2122_s18 = smov 4  }
  0x55   : > { %v2334_v1 = vld [vmem:[#allocation2 + $0x8] sm:$0xff]  ;;  %v695_v3 = vshll.u32 %v2332_v0, 16  ;;  %v699_v4 = vshrl.u32 %v2332_v0, 16  ;;  %v2344_v8 = vld [vmem:[#allocation2 + $0x40] sm:$0xff]  ;;  %v650_v9 = vshll.u32 %v2336_v2, 16  ;;  %v654_v10 = vshrl.u32 %v2336_v2, 16 }
  0x56   : > { %v635_v5 = vshll.u32 %v2334_v1, 16  ;;  %v639_v6 = vshrl.u32 %v2334_v1, 16  ;;  %v628_v11 = vshrl.u32 %v2342_v7, 16  ;;  %v630_v12 = vshll.u32 %v2342_v7, 16  ;;  %v2350_v13 = vld [vmem:[#allocation2 + $0x10] sm:$0xff]  ;;  %v2356_v22 = vld [vmem:[#allocation2 + $0x58] sm:$0xff] }
  0x57   : > { %v697_v14 = vrot.slane %v695_v3, 1  ;;  %v688_v16 = vshrl.u32 %v2344_v8, 16  ;;  %v690_v17 = vshll.u32 %v2344_v8, 16  ;;  %v652_v18 = vrot.slane %v650_v9, 1  ;;  %v2358_v23 = vld [vmem:[#allocation2 + $0x50] sm:$0xff]  ;;  %s2123_s27 = smov 8  }
  0x58   : > { %v637_v15 = vrot.slane %v635_v5, 1  ;;  %v632_v19 = vrot.slane %v630_v12, 1  ;;  %v643_v20 = vshrl.u32 %v2350_v13, 16  ;;  %v645_v21 = vshll.u32 %v2350_v13, 16  ;;  %s2124_s7 = smov 12   ;;  %v2430_v56 = vld [vmem:[#allocation2 + $0x28] sm:$0xff] }
  0x59   : > { %v2360_v24 = vor.u32 %v699_v4, %v697_v14  ;;  %v692_v26 = vrot.slane %v690_v17, 1  ;;  %v656_v29 = vor.u32 %v654_v10, %v652_v18  ;;  %v710_v30 = vshll.u32 %v2356_v22, 16  ;;  %3195 = vst [vmem:[#allocation7_spill] sm:$0xff] %v2430_v56  ;;  %v2432_v57 = vld [vmem:[#allocation2 + $0x20] sm:$0xff]  ;;  %v2438_v58 = vld [vmem:[#allocation2 + $0x68] sm:$0xff]  ;;  %s2125_s11 = smov 16  }
  0x5a   : > { %v641_v25 = vor.u32 %v639_v6, %v637_v15  ;;  %v633_v27 = vor.u32 %v632_v19, %v628_v11  ;;  %v647_v28 = vrot.slane %v645_v21, 1  ;;  %v705_v31 = vshll.u32 %v2358_v23, 16  ;;  %3196 = vst [vmem:[#allocation8_spill] sm:$0xff] %v2432_v57  ;;  %3197 = vst [vmem:[#allocation9_spill] sm:$0xff] %v2438_v58  ;;  %v2440_v59 = vld [vmem:[#allocation2 + $0x60] sm:$0xff]  ;;  %s2126_s12 = smov 20  }
  0x5b   : > { %765 = vrot.lane.b32.xlu1 %v2360_v24, %s2122_s18  ;;  %v693_v33 = vor.u32 %v692_v26, %v688_v16  ;;  %v703_v35 = vshrl.u32 %v2358_v23, 16  ;;  %v712_v37 = vrot.slane %v710_v30, 1  ;;  %v714_v38 = vshrl.u32 %v2356_v22, 16  ;;  %3198 = vst [vmem:[#allocation10_spill] sm:$0xff] %v2440_v59  ;;  %s2127_s13 = smov 24   ;;  %v2518_v30 = vld [vmem:[#allocation2 + $0x30] sm:$0xff] }
  0x5c   : > { %749 = vrot.lane.b32.xlu0 %v641_v25, %s2122_s18  ;;  %v638_v32 = vsel %vm626_vm8, %v633_v27, %v637_v15  ;;  %v648_v34 = vor.u32 %v647_v28, %v643_v20  ;;  %v707_v36 = vrot.slane %v705_v31, 1  ;;  %v797_v44 = vrot.slane %v2334_v1, 1  ;;  %3200 = vst [vmem:[#allocation12_spill] sm:$0xff] %v2518_v30  ;;  %v2524_v31 = vld [vmem:[#allocation2 + $0x78] sm:$0xff]  ;;  %s2128_s14 = smov 28   ;;  %s2129_s19 = smov 32  }
  0x5d   : > { %v2373_v39 = vsel %vm626_vm8, %v693_v33, %v697_v14  ;;  %v2379_v42 = vor.u32 %v714_v38, %v712_v37  ;;  %v796_v45 = vrot.slane %v2342_v7, 1  ;;  %vm795_vm9 = vcmask 1046528   ;;  %3201 = vst [vmem:[#allocation13_spill] sm:$0xff] %v2524_v31 }
  0x5e   : > { %v653_v40 = vsel %vm626_vm8, %v648_v34, %v652_v18  ;;  %v708_v41 = vor.u32 %v707_v36, %v703_v35  ;;  %v2392_v47 = vrot.slane %v2332_v0, 1  ;;  %v808_v48 = vrot.slane %v2344_v8, 1 }
  0x5f   : > { %753 = vrot.lane.b32.xlu1 %v656_v29, %s2122_s18  ;;  %v798_v46 = vsel %vm795_vm9, %v796_v45, %v797_v44  ;;  %v800_v50 = vrot.slane %v2336_v2, 1  ;;  %v799_v51 = vrot.slane %v2350_v13, 1  ;;  %v2409_v53 = vrot.slane %v2356_v22, 1 }
  0x60   : > { %747 = vrot.lane.b32.xlu0 %v638_v32, %s2122_s18  ;;  %v2382_v43 = vsel %vm626_vm8, %v708_v41, %v712_v37  ;;  %3191 = vst [vmem:[#allocation3_spill] sm:$0xff] %v2392_v47  ;;  %v2399_v49 = vsel %vm795_vm9, %v808_v48, %v2392_v47  ;;  %v811_v54 = vrot.slane %v2358_v23, 1  ;;  %v660_v60 = vshll.u32 %v2432_v57, 16  ;;  %v2526_v32 = vld [vmem:[#allocation2 + $0x70] sm:$0xff] }
  0x61   : > { %3192 = vst [vmem:[#allocation4_spill] sm:$0xff] %v2399_v49  ;;  %v801_v52 = vsel %vm795_vm9, %v799_v51, %v800_v50  ;;  %3193 = vst [vmem:[#allocation5_spill] sm:$0xff] %v2409_v53  ;;  %v665_v61 = vshll.u32 %v2430_v56, 16  ;;  %v658_v62 = vshrl.u32 %v2432_v57, 16  ;;  %v720_v3 = vshll.u32 %v2440_v59, 16 }
  0x62   : > { %v2416_v55 = vsel %vm795_vm9, %v811_v54, %v2409_v53  ;;  %v662_v63 = vrot.slane %v660_v60, 1  ;;  %v669_v5 = vshrl.u32 %v2430_v56, 16  ;;  %v725_v6 = vshll.u32 %v2438_v58, 16  ;;  %3202 = vst [vmem:[#allocation14_spill] sm:$0xff] %v2526_v32 }
  0x63   : > { %763 = vrot.lane.b32.xlu1 %v2373_v39, %s2122_s18  ;;  %3194 = vst [vmem:[#allocation6_spill] sm:$0xff] %v2416_v55  ;;  %v667_v4 = vrot.slane %v665_v61, 1  ;;  %v718_v10 = vshrl.u32 %v2440_v59, 16  ;;  %v722_v11 = vrot.slane %v720_v3, 1  ;;  %v729_v15 = vshrl.u32 %v2438_v58, 16 }
  0x64   : > { %751 = vrot.lane.b32.xlu0 %v653_v40, %s2122_s18  ;;  %v663_v9 = vor.u32 %v662_v63, %v658_v62  ;;  %v727_v14 = vrot.slane %v725_v6, 1  ;;  %v2481_v20 = vrot.slane %v2430_v56, 1  ;;  %v802_v21 = vrot.slane %v2432_v57, 1  ;;  %v2077_v62 = vld [vmem:[%s3168_s3] sm:$0xff]  }
  0x65   : > { %v2459_v12 = vor.u32 %v669_v5, %v667_v4  ;;  %v723_v17 = vor.u32 %v722_v11, %v718_v10  ;;  %v2493_v26 = vrot.slane %v2438_v58, 1  ;;  %v814_v27 = vrot.slane %v2440_v59, 1  ;;  %1977 = vmatprep.subr.bf16.mxu0 %v2077_v62  ;;  %1999 = vmatprep.subr.bf16.mxu1 %v2077_v62 }
  0x66   : > { %v2463_v16 = vsel %vm626_vm8, %v663_v9, %v667_v4  ;;  %v2469_v18 = vor.u32 %v729_v15, %v727_v14  ;;  %v2490_v25 = vsel %vm795_vm9, %v802_v21, %v2481_v20  ;;  %v675_v33 = vshll.u32 %v2518_v30, 16  ;;  %1978 = vmatpush3.bf16.msra.mxu0 %v2077_v62  ;;  %v2078_v4 = vld [vmem:[%s3168_s3 + $0x8] sm:$0xff]   ;;  %2002 = vmatpush3.bf16.msra.mxu1 %v2077_v62  ;;  %v2079_v9 = vld [vmem:[%s3168_s3 + $0x10] ss:$0 sps:$4 sm:$0x33]  }
  0x67   : > { %769 = vrot.lane.b32.xlu1 %v2379_v42, %s2122_s18  ;;  %v2472_v19 = vsel %vm626_vm8, %v723_v17, %v727_v14  ;;  %v2502_v28 = vsel %vm795_vm9, %v814_v27, %v2493_v26  ;;  %v673_v35 = vshrl.u32 %v2518_v30, 16  ;;  %v735_v37 = vshll.u32 %v2526_v32, 16  ;;  %1979 = vmatprep.subr.bf16.mxu0 %v2078_v4 }
  0x68   : > { %767 = vrot.lane.b32.xlu0 %v2382_v43, %s2122_s18  ;;  %v677_v36 = vrot.slane %v675_v33, 1  ;;  %v740_v41 = vshll.u32 %v2524_v31, 16  ;;  %v733_v45 = vshrl.u32 %v2526_v32, 16  ;;  %v744_v51 = vshrl.u32 %v2524_v31, 16  ;;  %2000 = vmatprep.subr.bf16.mxu1 %v2078_v4 }
  0x69   : > { %vm1519_vm10 = vcmask 1041408   ;;  %v805_v14 = vrot.slane %v2518_v30, 1  ;;  %v817_v21 = vrot.slane %v2526_v32, 1  ;;  %vm1084_vm11 = vcmask 31744  }
  0x6a   : > { %1980 = vmatpush3.bf16.msra.mxu0 %v2078_v4  ;;  %2003 = vmatpush3.bf16.msra.mxu1 %v2078_v4  ;;  %v1521_v10 = vsel %vm1519_vm10, %v2079_v9, 0  ;;  %vm1117_vm12 = vcmask 64512   ;;  %vm1150_vm13 = vcmask 97280   ;;  %vm1183_vm14 = vcmask 130048  }
  0x6b   : > { %822 = vrot.lane.b32.xlu1 %v797_v44, %s2123_s27  ;;  %v678_v44 = vor.u32 %v677_v36, %v673_v35  ;;  %2005 = vmatprep.subr.msk.bf16.mxu0 %vm1519_vm10, %v2079_v9  ;;  %vm1216_vm15 = vcmask 162816   ;;  %vm1249_vm0 = vcmask 195584   ;;  %vm1282_vm1 = vcmask 228352  }
  0x6c   : > { %820 = vrot.lane.b32.xlu0 %v798_v46, %s2123_s27  ;;  %v737_v46 = vrot.slane %v735_v37, 1  ;;  %2006 = vmatprep.subr.msk.bf16.mxu1 %vm1519_vm10, %v2079_v9  ;;  %v623_v9 = vld [vmem:[#allocation2 + $0x88] sm:$0xff]  ;;  %vm1315_vm2 = vcmask 261120   ;;  %vm1494_vm3 = vcmask 293888  }
  0x6e   : > { %v738_v54 = vor.u32 %v737_v46, %v733_v45  ;;  %1982 = vmatpush3.bf16.msra.mxu0 %v1521_v10  ;;  %2004 = vmatpush3.bf16.msra.mxu1 %v1521_v10  ;;  %v622_v10 = vld [vmem:[#allocation2 + $0x80] sm:$0xff] }
  0x6f   : > { %838 = vrot.lane.b32.xlu1 %v2392_v47, %s2123_s27 }
  0x70   : > { %836 = vrot.lane.b32.xlu0 %v2399_v49, %s2123_s27 }
  0x73   : > { %826 = vrot.lane.b32.xlu1 %v800_v50, %s2123_s27 }
  0x74   : > { %824 = vrot.lane.b32.xlu0 %v801_v52, %s2123_s27 }
  0x77   : > { %842 = vrot.lane.b32.xlu1 %v2409_v53, %s2123_s27 }
  0x78   : > { %840 = vrot.lane.b32.xlu0 %v2416_v55, %s2123_s27 }
  0x7b   : > { %856 = vrot.lane.b32.xlu1 %v2336_v2, %s2124_s7 }
  0x7c   : > { %854 = vrot.lane.b32.xlu0 %v2350_v13, %s2124_s7 }
  0x7f   : > { %872 = vrot.lane.b32.xlu1 %v2356_v22, %s2124_s7 }
  0x80   : > { %870 = vrot.lane.b32.xlu0 %v2358_v23, %s2124_s7 }
  0x83   : > { %860 = vrot.lane.b32.xlu1 %v2430_v56, %s2124_s7 }
  0x84   : > { %858 = vrot.lane.b32.xlu0 %v2432_v57, %s2124_s7 }
  0x87   : > { %876 = vrot.lane.b32.xlu1 %v2438_v58, %s2124_s7 }
  0x88   : > { %874 = vrot.lane.b32.xlu0 %v2440_v59, %s2124_s7 }
  0x8b   : > { %903 = vrot.lane.b32.xlu1 %v656_v29, %s2125_s11  ;;  %v2516_v29 = vld [vmem:[#allocation2 + $0x38] sm:$0xff] }
  0x8c   : > { %901 = vrot.lane.b32.xlu0 %v653_v40, %s2125_s11  ;;  %3199 = vst [vmem:[#allocation11_spill] sm:$0xff] %v2516_v29  ;;  %v680_v34 = vshll.u32 %v2516_v29, 16  ;;  %v684_v40 = vshrl.u32 %v2516_v29, 16  ;;  %v2596_v11 = vrot.slane %v2516_v29, 1 }
  0x8e   : > { %v682_v38 = vrot.slane %v680_v34, 1 }
  0x8f   : > { %919 = vrot.lane.b32.xlu1 %v2379_v42, %s2125_s11 }
  0x90   : > { %917 = vrot.lane.b32.xlu0 %v2382_v43, %s2125_s11  ;;  %v2547_v48 = vor.u32 %v684_v40, %v682_v38 }
  0x93   : > { %907 = vrot.lane.b32.xlu1 %v2459_v12, %s2125_s11 }
  0x94   : > { %905 = vrot.lane.b32.xlu0 %v2463_v16, %s2125_s11 }
  0x97   : > { %923 = vrot.lane.b32.xlu1 %v2469_v18, %s2125_s11 }
  0x98   : > { %921 = vrot.lane.b32.xlu0 %v2472_v19, %s2125_s11 }
  0x9b   : > { %938 = vrot.lane.b32.xlu1 %v800_v50, %s2126_s12  ;;  %v742_v50 = vrot.slane %v740_v41, 1 }
  0x9c   : > { %936 = vrot.lane.b32.xlu0 %v801_v52, %s2126_s12  ;;  %v2551_v52 = vsel %vm626_vm8, %v678_v44, %v682_v38 }
  0x9d   : > { %v2557_v60 = vor.u32 %v744_v51, %v742_v50  ;;  %v2560_v61 = vsel %vm626_vm8, %v738_v54, %v742_v50 }
  0x9f   : > { %954 = vrot.lane.b32.xlu1 %v2409_v53, %s2126_s12  ;;  %v898_v53 = vshrl.u32 %v623_v9, 16 }
  0xa0   : > { %952 = vrot.lane.b32.xlu0 %v2416_v55, %s2126_s12 }
  0xa3   : > { %942 = vrot.lane.b32.xlu1 %v2481_v20, %s2126_s12 }
  0xa4   : > { %940 = vrot.lane.b32.xlu0 %v2490_v25, %s2126_s12 }
  0xa7   : > { %958 = vrot.lane.b32.xlu1 %v2493_v26, %s2126_s12 }
  0xa8   : > { %956 = vrot.lane.b32.xlu0 %v2502_v28, %s2126_s12 }
  0xab   : > { %972 = vrot.lane.b32.xlu1 %v2430_v56, %s2127_s13 }
  0xac   : > { %970 = vrot.lane.b32.xlu0 %v2432_v57, %s2127_s13 }
  0xaf   : > { %988 = vrot.lane.b32.xlu1 %v2438_v58, %s2127_s13 }
  0xb0   : > { %986 = vrot.lane.b32.xlu0 %v2440_v59, %s2127_s13  ;;  %v887_v59 = vshrl.u32 %v622_v10, 16 }
  0xb3   : > { %976 = vrot.lane.b32.xlu1 %v2516_v29, %s2127_s13 }
  0xb4   : > { %974 = vrot.lane.b32.xlu0 %v2518_v30, %s2127_s13 }
  0xb7   : > { %992 = vrot.lane.b32.xlu1 %v2524_v31, %s2127_s13 }
  0xb8   : > { %990 = vrot.lane.b32.xlu0 %v2526_v32, %s2127_s13 }
  0xbb   : > { %1019 = vrot.lane.b32.xlu1 %v2459_v12, %s2128_s14 }
  0xbc   : > { %1017 = vrot.lane.b32.xlu0 %v2463_v16, %s2128_s14 }
  0xbf   : > { %1035 = vrot.lane.b32.xlu1 %v2469_v18, %s2128_s14 }
  0xc0   : > { %1033 = vrot.lane.b32.xlu0 %v2472_v19, %s2128_s14 }
  0xc3   : > { %1023 = vrot.lane.b32.xlu1 %v2547_v48, %s2128_s14 }
  0xc4   : > { %1021 = vrot.lane.b32.xlu0 %v2551_v52, %s2128_s14 }
  0xc7   : > { %1039 = vrot.lane.b32.xlu1 %v2557_v60, %s2128_s14 }
  0xc8   : > { %1037 = vrot.lane.b32.xlu0 %v2560_v61, %s2128_s14 }
  0xcb   : > { %1054 = vrot.lane.b32.xlu1 %v2481_v20, %s2129_s19 }
  0xcc   : > { %1052 = vrot.lane.b32.xlu0 %v2490_v25, %s2129_s19 }
  0xcd   : > { %v2573_v63 = vpop.permute.xlu1 %765 }
  0xce   : > { %v2575_v3 = vpop.permute.xlu0 %749 }
  0xcf   : > { %1070 = vrot.lane.b32.xlu1 %v2493_v26, %s2129_s19 }
  0xd0   : > { %1068 = vrot.lane.b32.xlu0 %v2502_v28, %s2129_s19 }
  0xd1   : > { %v2584_v5 = vpop.permute.xlu1 %753 }
  0xd2   : > { %v2586_v6 = vpop.permute.xlu0 %747 }
  0xd3   : > { %757 = vrot.lane.b32.xlu1 %v2459_v12, %s2122_s18  ;;  %v2609_v12 = vsel %vm795_vm9, %v805_v14, %v2596_v11 }
  0xd4   : > { %755 = vrot.lane.b32.xlu0 %v2463_v16, %s2122_s18  ;;  %v2612_v16 = vrot.slane %v2524_v31, 1 }
  0xd5   : > { %v2599_v15 = vpop.permute.xlu1 %763 }
  0xd6   : > { %v2601_v17 = vpop.permute.xlu0 %751 }
  0xd7   : > { %773 = vrot.lane.b32.xlu1 %v2469_v18, %s2122_s18  ;;  %v2625_v18 = vsel %vm795_vm9, %v817_v21, %v2612_v16 }
  0xd8   : > { %771 = vrot.lane.b32.xlu0 %v2472_v19, %s2122_s18 }
  0xd9   : > { %v2615_v27 = vpop.permute.xlu1 %769 }
  0xda   : > { %v2617_v33 = vpop.permute.xlu0 %767 }
  0xdb   : > { %1058 = vrot.lane.b32.xlu1 %v2596_v11, %s2129_s19 }
  0xdc   : > { %1056 = vrot.lane.b32.xlu0 %v2609_v12, %s2129_s19 }
  0xdd   : > { %v2627_v19 = vpop.permute.xlu1 %822 }
  0xde   : > { %v2629_v34 = vpop.permute.xlu0 %820 }
  0xdf   : > { %1074 = vrot.lane.b32.xlu1 %v2612_v16, %s2129_s19 }
  0xe0   : > { %1072 = vrot.lane.b32.xlu0 %v2625_v18, %s2129_s19 }
  0xe1   : > { %v2635_v35 = vpop.permute.xlu1 %838 }
  0xe2   : > { %v2637_v36 = vpop.permute.xlu0 %836 }
  0xe3   : > { %761 = vrot.lane.b32.xlu1 %v2547_v48, %s2122_s18 }
  0xe4   : > { %759 = vrot.lane.b32.xlu0 %v2551_v52, %s2122_s18 }
  0xe5   : > { %v2643_v37 = vpop.permute.xlu1 %826 }
  0xe6   : > { %v2645_v38 = vpop.permute.xlu0 %824 }
  0xe7   : > { %777 = vrot.lane.b32.xlu1 %v2557_v60, %s2122_s18 }
  0xe8   : > { %775 = vrot.lane.b32.xlu0 %v2560_v61, %s2122_s18 }
  0xe9   : > { %v2651_v40 = vpop.permute.xlu1 %842 }
  0xea   : > { %v2653_v41 = vpop.permute.xlu0 %840 }
  0xeb   : > { %830 = vrot.lane.b32.xlu1 %v2481_v20, %s2123_s27 }
  0xec   : > { %828 = vrot.lane.b32.xlu0 %v2490_v25, %s2123_s27 }
  0xed   : > { %v2659_v44 = vpop.permute.xlu1 %856 }
  0xee   : > { %v2661_v45 = vpop.permute.xlu0 %854 }
  0xef   : > { %846 = vrot.lane.b32.xlu1 %v2493_v26, %s2123_s27 }
  0xf0   : > { %844 = vrot.lane.b32.xlu0 %v2502_v28, %s2123_s27 }
  0xf1   : > { %v2667_v46 = vpop.permute.xlu1 %872 }
  0xf2   : > { %v2669_v50 = vpop.permute.xlu0 %870 }
  0xf3   : > { %834 = vrot.lane.b32.xlu1 %v2596_v11, %s2123_s27 }
  0xf4   : > { %832 = vrot.lane.b32.xlu0 %v2609_v12, %s2123_s27 }
  0xf5   : > { %v2675_v20 = vpop.permute.xlu1 %860 }
  0xf6   : > { %v2677_v25 = vpop.permute.xlu0 %858 }
  0xf7   : > { %850 = vrot.lane.b32.xlu1 %v2612_v16, %s2123_s27 }
  0xf8   : > { %848 = vrot.lane.b32.xlu0 %v2625_v18, %s2123_s27 }
  0xf9   : > { %v2683_v26 = vpop.permute.xlu1 %876 }
  0xfa   : > { %3203 = vst [vmem:[#allocation15_spill] sm:$0xff] %v2683_v26  ;;  %v2685_v28 = vpop.permute.xlu0 %874 }
  0xfb   : > { %3204 = vst [vmem:[#allocation16_spill] sm:$0xff] %v2685_v28  ;;  %864 = vrot.lane.b32.xlu1 %v2516_v29, %s2124_s7  ;;  %v894_v29 = vshll.u32 %v623_v9, 16  ;;  %v1086_v28 = vsel %vm1084_vm11, %v2342_v7, %v2586_v6 }
  0xfc   : > { %862 = vrot.lane.b32.xlu0 %v2518_v30, %s2124_s7  ;;  %v1119_v7 = vsel %vm1117_vm12, %v1086_v28, %v2629_v34 }
  0xfd   : > { %v2691_v51 = vpop.permute.xlu1 %903  ;;  %v896_v55 = vrot.slane %v894_v29, 1 }
  0xfe   : > { %v2693_v54 = vpop.permute.xlu0 %901 }
  0xff   : > { %880 = vrot.lane.b32.xlu1 %v2524_v31, %s2124_s7 }
 0x100   : > { %878 = vrot.lane.b32.xlu0 %v2526_v32, %s2124_s7  ;;  %v889_v32 = vshll.u32 %v622_v10, 16 }
 0x101   : > { %v2699_v62 = vpop.permute.xlu1 %919 }
 0x102   : > { %v2701_v4 = vpop.permute.xlu0 %917  ;;  %v891_v58 = vrot.slane %v889_v32, 1  ;;  %v2737_v32 = vor.u32 %v898_v53, %v896_v55 }
 0x103   : > { %868 = vrot.lane.b32.xlu1 %v2332_v0, %s2124_s7 }
 0x104   : > { %866 = vrot.lane.b32.xlu0 %v2344_v8, %s2124_s7 }
 0x105   : > { %v2707_v14 = vpop.permute.xlu1 %907 }
 0x106   : > { %v2709_v21 = vpop.permute.xlu0 %905 }
 0x107   : > { %884 = vrot.lane.b32.xlu1 %v623_v9, %s2124_s7 }
 0x108   : > { %882 = vrot.lane.b32.xlu0 %v622_v10, %s2124_s7 }
 0x109   : > { %v2713_v31 = vpop.permute.xlu1 %923 }
 0x10a   : > { %3205 = vst [vmem:[#allocation17_spill] sm:$0xff] %v2713_v31  ;;  %v2715_v30 = vpop.permute.xlu0 %921 }
 0x10b   : > { %3206 = vst [vmem:[#allocation18_spill] sm:$0xff] %v2715_v30  ;;  %911 = vrot.lane.b32.xlu1 %v2547_v48, %s2125_s11  ;;  %v892_v30 = vor.u32 %v891_v58, %v887_v59 }
 0x10c   : > { %909 = vrot.lane.b32.xlu0 %v2551_v52, %s2125_s11 }
 0x10d   : > { %v2721_v57 = vpop.permute.xlu1 %938  ;;  %v2740_v52 = vsel %vm626_vm8, %v892_v30, %v896_v55  ;;  %v2766_v30 = vrot.slane %v623_v9, 1 }
 0x10e   : > { %v2723_v56 = vpop.permute.xlu0 %936 }
 0x10f   : > { %927 = vrot.lane.b32.xlu1 %v2557_v60, %s2125_s11  ;;  %3211 = vst [vmem:[#allocation23_spill] sm:$0xff] %v2766_v30 }
 0x110   : > { %925 = vrot.lane.b32.xlu0 %v2560_v61, %s2125_s11  ;;  %v933_v61 = vrot.slane %v622_v10, 1 }
 0x111   : > { %v2729_v48 = vpop.permute.xlu1 %954 }
 0x112   : > { %v2731_v31 = vpop.permute.xlu0 %952 }
 0x113   : > { %915 = vrot.lane.b32.xlu1 %v2360_v24, %s2125_s11 }
 0x114   : > { %913 = vrot.lane.b32.xlu0 %v2373_v39, %s2125_s11 }
 0x115   : > { %v2742_v60 = vpop.permute.xlu1 %942 }
 0x116   : > { %3207 = vst [vmem:[#allocation19_spill] sm:$0xff] %v2742_v60  ;;  %v2744_v29 = vpop.permute.xlu0 %940  ;;  %v1088_v60 = vsel %vm1084_vm11, %v2334_v1, %v2575_v3  ;;  %v1102_v3 = vsel %vm1084_vm11, %v2344_v8, %v2599_v15 }
 0x117   : > { %3208 = vst [vmem:[#allocation20_spill] sm:$0xff] %v2744_v29  ;;  %931 = vrot.lane.b32.xlu1 %v2737_v32, %s2125_s11  ;;  %v1121_v1 = vsel %vm1117_vm12, %v1088_v60, %v2627_v19  ;;  %v1135_v34 = vsel %vm1117_vm12, %v1102_v3, %v2637_v36 }
 0x118   : > { %929 = vrot.lane.b32.xlu0 %v2740_v52, %s2125_s11 }
 0x119   : > { %v2750_v58 = vpop.permute.xlu1 %958 }
 0x11a   : > { %3209 = vst [vmem:[#allocation21_spill] sm:$0xff] %v2750_v58  ;;  %v2752_v59 = vpop.permute.xlu0 %956 }
 0x11b   : > { %3210 = vst [vmem:[#allocation22_spill] sm:$0xff] %v2752_v59  ;;  %946 = vrot.lane.b32.xlu1 %v2596_v11, %s2126_s12  ;;  %v2778_v11 = vsel %vm795_vm9, %v933_v61, %v2766_v30 }
 0x11c   : > { %944 = vrot.lane.b32.xlu0 %v2609_v12, %s2126_s12  ;;  %3212 = vst [vmem:[#allocation24_spill] sm:$0xff] %v2778_v11 }
 0x11d   : > { %v2758_v53 = vpop.permute.xlu1 %972 }
 0x11e   : > { %v2760_v55 = vpop.permute.xlu0 %970 }
 0x11f   : > { %962 = vrot.lane.b32.xlu1 %v2612_v16, %s2126_s12 }
 0x120   : > { %960 = vrot.lane.b32.xlu0 %v2625_v18, %s2126_s12 }
 0x121   : > { %v2768_v59 = vpop.permute.xlu1 %988 }
 0x122   : > { %v2770_v58 = vpop.permute.xlu0 %986 }
 0x123   : > { %950 = vrot.lane.b32.xlu1 %v2392_v47, %s2126_s12 }
 0x124   : > { %948 = vrot.lane.b32.xlu0 %v2399_v49, %s2126_s12 }
 0x125   : > { %v2780_v12 = vpop.permute.xlu1 %976 }
 0x126   : > { %3213 = vst [vmem:[#allocation25_spill] sm:$0xff] %v2780_v12  ;;  %v2782_v16 = vpop.permute.xlu0 %974 }
 0x127   : > { %3214 = vst [vmem:[#allocation26_spill] sm:$0xff] %v2782_v16  ;;  %966 = vrot.lane.b32.xlu1 %v2766_v30, %s2126_s12 }
 0x128   : > { %964 = vrot.lane.b32.xlu0 %v2778_v11, %s2126_s12  ;;  %v2802_v11 = vld [vmem:[#allocation2 + $0x98] sm:$0xff] }
 0x129   : > { %v2788_v18 = vpop.permute.xlu1 %992  ;;  %3217 = vst [vmem:[#allocation29_spill] sm:$0xff] %v2802_v11  ;;  %v1014_v29 = vshrl.u32 %v2802_v11, 16 }
 0x12a   : > { %3215 = vst [vmem:[#allocation27_spill] sm:$0xff] %v2788_v18  ;;  %v2790_v47 = vpop.permute.xlu0 %990  ;;  %v2809_v18 = vld [vmem:[#allocation2 + $0x90] sm:$0xff] }
 0x12b   : > { %3216 = vst [vmem:[#allocation28_spill] sm:$0xff] %v2790_v47  ;;  %980 = vrot.lane.b32.xlu1 %v2332_v0, %s2127_s13  ;;  %v1010_v47 = vshll.u32 %v2802_v11, 16 }
 0x12c   : > { %978 = vrot.lane.b32.xlu0 %v2344_v8, %s2127_s13 }
 0x12d   : > { %v1020_v61 = vpop.permute.xlu1 %1019  ;;  %v2823_v26 = vrot.slane %v1010_v47, 1 }
 0x12e   : > { %v1018_v49 = vpop.permute.xlu0 %1017 }
 0x12f   : > { %996 = vrot.lane.b32.xlu1 %v623_v9, %s2127_s13  ;;  %v1005_v9 = vshll.u32 %v2809_v18, 16 }
 0x130   : > { %994 = vrot.lane.b32.xlu0 %v622_v10, %s2127_s13 }
 0x131   : > { %v2798_v30 = vpop.permute.xlu1 %1035  ;;  %v1007_v47 = vrot.slane %v1005_v9, 1 }
 0x132   : > { %v2800_v16 = vpop.permute.xlu0 %1033 }
 0x133   : > { %984 = vrot.lane.b32.xlu1 %v2356_v22, %s2127_s13 }
 0x134   : > { %982 = vrot.lane.b32.xlu0 %v2358_v23, %s2127_s13 }
 0x135   : > { %v2812_v10 = vpop.permute.xlu1 %1023 }
 0x136   : > { %3218 = vst [vmem:[#allocation30_spill] sm:$0xff] %v2812_v10  ;;  %v2814_v12 = vpop.permute.xlu0 %1021  ;;  %v1104_v10 = vsel %vm1084_vm11, %v2332_v0, %v2573_v63  ;;  %v1152_v0 = vsel %vm1150_vm13, %v1119_v7, %v2661_v45 }
 0x137   : > { %3219 = vst [vmem:[#allocation31_spill] sm:$0xff] %v2814_v12  ;;  %1000 = vrot.lane.b32.xlu1 %v2802_v11, %s2127_s13  ;;  %v1003_v12 = vshrl.u32 %v2809_v18, 16  ;;  %v1137_v6 = vsel %vm1117_vm12, %v1104_v10, %v2635_v35  ;;  %v1154_v11 = vsel %vm1150_vm13, %v1121_v1, %v2659_v44  ;;  %v1185_v15 = vsel %vm1183_vm14, %v1152_v0, %v2693_v54 }
 0x138   : > { %998 = vrot.lane.b32.xlu0 %v2809_v18, %s2127_s13  ;;  %v1170_v28 = vsel %vm1150_vm13, %v1137_v6, %v2667_v46  ;;  %v1187_v8 = vsel %vm1183_vm14, %v1154_v11, %v2691_v51  ;;  %v1168_v35 = vsel %vm1150_vm13, %v1135_v34, %v2669_v50  ;;  %v1218_v45 = vsel %vm1216_vm15, %v1185_v15, %v2723_v56 }
 0x139   : > { %v2846_v63 = vpop.permute.xlu1 %1039  ;;  %v1220_v44 = vsel %vm1216_vm15, %v1187_v8, %v2721_v57  ;;  %v1203_v36 = vsel %vm1183_vm14, %v1170_v28, %v2699_v62  ;;  %v1201_v46 = vsel %vm1183_vm14, %v1168_v35, %v2701_v4  ;;  %v1251_v57 = vsel %vm1249_vm0, %v1218_v45, %v2760_v55 }
 0x13a   : > { %v2848_v19 = vpop.permute.xlu0 %1037  ;;  %v1253_v50 = vsel %vm1249_vm0, %v1220_v44, %v2758_v53  ;;  %v1236_v56 = vsel %vm1216_vm15, %v1203_v36, %v2729_v48  ;;  %v1284_v51 = vsel %vm1282_vm1, %v1251_v57, %v1018_v49  ;;  %v1016_v34 = vor.u32 %v1014_v29, %v2823_v26 }
 0x13b   : > { %1027 = vrot.lane.b32.xlu1 %v2360_v24, %s2128_s14  ;;  %v1234_v24 = vsel %vm1216_vm15, %v1201_v46, %v2731_v31  ;;  %v1269_v4 = vsel %vm1249_vm0, %v1236_v56, %v2768_v59  ;;  %v1008_v59 = vor.u32 %v1007_v47, %v1003_v12  ;;  %v1090_v46 = vsel %vm1084_vm11, %v2350_v13, %v2601_v17 }
 0x13c   : > { %1025 = vrot.lane.b32.xlu0 %v2373_v39, %s2128_s14  ;;  %v1286_v39 = vsel %vm1282_vm1, %v1253_v50, %v1020_v61  ;;  %v1267_v60 = vsel %vm1249_vm0, %v1234_v24, %v2770_v58  ;;  %v1302_v49 = vsel %vm1282_vm1, %v1269_v4, %v2798_v30  ;;  %v1108_v57 = vsel %vm1084_vm11, %v2356_v22, %v2615_v27  ;;  %v3224_v4 = vld [vmem:[#allocation3_spill] sm:$0xff] }
 0x13d   : > { %v1055_v54 = vpop.permute.xlu1 %1054  ;;  %v1300_v58 = vsel %vm1282_vm1, %v1267_v60, %v2800_v16  ;;  %v1013_v47 = vsel %vm626_vm8, %v1008_v59, %v2823_v26  ;;  %v1106_v13 = vsel %vm1084_vm11, %v2358_v23, %v2617_v33  ;;  %v3226_v60 = vld [vmem:[#allocation18_spill] sm:$0xff] }
 0x13e   : > { %v1053_v62 = vpop.permute.xlu0 %1052  ;;  %v1319_v53 = vsel %vm1315_vm2, %v1286_v39, %v1055_v54  ;;  %v3221_v39 = vld [vmem:[#allocation16_spill] sm:$0xff]  ;;  %v3222_v54 = vld [vmem:[#allocation19_spill] sm:$0xff]  ;;  %v3231_v59 = vld [vmem:[#allocation22_spill] sm:$0xff] }
 0x13f   : > { %v1317_v55 = vsel %vm1315_vm2, %v1284_v51, %v1053_v62  ;;  %v1355_v48 = vshrl.u32 %v1319_v53, 16  ;;  %v1358_v11 = vshll.u32 %v1319_v53, 16  ;;  %1043 = vrot.lane.b32.xlu1 %v2737_v32, %s2128_s14  ;;  %v3223_v62 = vld [vmem:[#allocation20_spill] sm:$0xff] }
 0x140   : > { %v1348_v9 = vshrl.u32 %v1317_v55, 16  ;;  %v1351_v31 = vshll.u32 %v1317_v55, 16  ;;  %1041 = vrot.lane.b32.xlu0 %v2740_v52, %s2128_s14  ;;  %v3227_v55 = vld [vmem:[#allocation25_spill] sm:$0xff] }
 0x141   : > { %v1357_v61 = vrot.slane %v1355_v48, 3  ;;  %v1360_v10 = vrot.slane %v1358_v11, 4  ;;  %v1071_v3 = vpop.permute.xlu1 %1070  ;;  %v3228_v11 = vld [vmem:[#allocation26_spill] sm:$0xff] }
 0x142   : > { %v1350_v1 = vrot.slane %v1348_v9, 3  ;;  %v1353_v7 = vrot.slane %v1351_v31, 4  ;;  %v1069_v6 = vpop.permute.xlu0 %1068  ;;  %v1335_v0 = vsel %vm1315_vm2, %v1302_v49, %v1071_v3  ;;  %v3229_v31 = vld [vmem:[#allocation4_spill] sm:$0xff]  ;;  %v3230_v49 = vld [vmem:[#allocation21_spill] sm:$0xff] }
 0x143   : > { %v1333_v32 = vsel %vm1315_vm2, %v1300_v58, %v1069_v6  ;;  %v1415_v52 = vshrl.u32 %v1335_v0, 16  ;;  %v1418_v28 = vshll.u32 %v1335_v0, 16  ;;  %1031 = vrot.lane.b32.xlu1 %v2379_v42, %s2128_s14  ;;  %v1361_v16 = vor.u32 %v1360_v10, %v1357_v61  ;;  %v3232_v10 = vld [vmem:[#allocation30_spill] sm:$0xff] }
 0x144   : > { %v1408_v8 = vshrl.u32 %v1333_v32, 16  ;;  %v1411_v30 = vshll.u32 %v1333_v32, 16  ;;  %1029 = vrot.lane.b32.xlu0 %v2382_v43, %s2128_s14  ;;  %v1354_v12 = vor.u32 %v1353_v7, %v1350_v1  ;;  %v1092_v42 = vsel %vm1084_vm11, %v2336_v2, %v2584_v5  ;;  %v3233_v7 = vld [vmem:[#allocation31_spill] sm:$0xff] }
 0x145   : > { %v1417_v15 = vrot.slane %v1415_v52, 3  ;;  %v1420_v35 = vrot.slane %v1418_v28, 4  ;;  %v2905_v45 = vpop.permute.xlu1 %757  ;;  %v1125_v56 = vsel %vm1117_vm12, %v1092_v42, %v2643_v37  ;;  %v1123_v2 = vsel %vm1117_vm12, %v1090_v46, %v2645_v38  ;;  %v3234_v32 = vld [vmem:[#allocation27_spill] sm:$0xff]  ;;  %v3235_v52 = vld [vmem:[#allocation28_spill] sm:$0xff]  ;;  %v3238_v46 = vld [vmem:[#allocation29_spill] sm:$0xff] }
 0x146   : > { %v1410_v44 = vrot.slane %v1408_v8, 3  ;;  %v1413_v29 = vrot.slane %v1411_v30, 4  ;;  %v2907_v36 = vpop.permute.xlu0 %755  ;;  %v1362_v43 = vsel %vm428_vm4, %v1354_v12, %v1361_v16  ;;  %v1158_v5 = vsel %vm1150_vm13, %v1125_v56, %v2675_v20  ;;  %v3220_v20 = vld [vmem:[#allocation15_spill] sm:$0xff] }
 0x147   : > { %1983 = vmatprep.mubr.msk.bf16.mxu0 %vm1494_vm3, %v1362_v43  ;;  %1047 = vrot.lane.b32.xlu1 %v1016_v34, %s2128_s14  ;;  %v1421_v50 = vor.u32 %v1420_v35, %v1417_v15  ;;  %v1156_v17 = vsel %vm1150_vm13, %v1123_v2, %v2677_v25  ;;  %v1141_v37 = vsel %vm1117_vm12, %v1108_v57, %v2651_v40  ;;  %v3236_v35 = vld [vmem:[#allocation23_spill] sm:$0xff]  ;;  %v3237_v43 = vld [vmem:[#allocation24_spill] sm:$0xff] }
 0x148   : > { %v1414_v26 = vor.u32 %v1413_v29, %v1410_v44  ;;  %1045 = vrot.lane.b32.xlu0 %v1013_v47, %s2128_s14  ;;  %v1139_v38 = vsel %vm1117_vm12, %v1106_v13, %v2653_v41  ;;  %v1191_v23 = vsel %vm1183_vm14, %v1158_v5, %v2707_v14  ;;  %v1189_v33 = vsel %vm1183_vm14, %v1156_v17, %v2709_v21  ;;  %v3225_v14 = vld [vmem:[#allocation17_spill] sm:$0xff] }
 0x149   : > { %v2933_v24 = vpop.permute.xlu1 %773  ;;  %v1174_v25 = vsel %vm1150_vm13, %v1141_v37, %v3220_v20  ;;  %v1172_v51 = vsel %vm1150_vm13, %v1139_v38, %v3221_v39  ;;  %v1224_v40 = vsel %vm1216_vm15, %v1191_v23, %v3222_v54  ;;  %v1222_v41 = vsel %vm1216_vm15, %v1189_v33, %v3223_v62  ;;  %v3240_v20 = vld [vmem:[#allocation6_spill] sm:$0xff] }
 0x14a   : > { %v2935_v22 = vpop.permute.xlu0 %771  ;;  %v1422_v27 = vsel %vm428_vm4, %v1414_v26, %v1421_v50  ;;  %v1207_v21 = vsel %vm1183_vm14, %v1174_v25, %v3225_v14  ;;  %v1205_v53 = vsel %vm1183_vm14, %v1172_v51, %v3226_v60  ;;  %v1257_v48 = vsel %vm1249_vm0, %v1224_v40, %v3227_v55 }
 0x14b   : > { %1991 = vmatprep.mubr.msk.bf16.mxu1 %vm1494_vm3, %v1422_v27  ;;  %1062 = vrot.lane.b32.xlu1 %v3224_v4, %s2129_s19  ;;  %v1255_v9 = vsel %vm1249_vm0, %v1222_v41, %v3228_v11  ;;  %v1240_v58 = vsel %vm1216_vm15, %v1207_v21, %v3230_v49  ;;  %v1238_v61 = vsel %vm1216_vm15, %v1205_v53, %v3231_v59  ;;  %v1049_v44 = vrot.slane %v2809_v18, 1 }
 0x14c   : > { %1060 = vrot.lane.b32.xlu0 %v3229_v31, %s2129_s19  ;;  %v1290_v1 = vsel %vm1282_vm1, %v1257_v48, %v3232_v10  ;;  %v1288_v3 = vsel %vm1282_vm1, %v1255_v9, %v3233_v7  ;;  %v1273_v34 = vsel %vm1249_vm0, %v1240_v58, %v3234_v32  ;;  %v1271_v28 = vsel %vm1249_vm0, %v1238_v61, %v3235_v52  ;;  %v3241_v48 = vld [vmem:[#allocation7_spill] sm:$0xff]  ;;  %v3242_v9 = vld [vmem:[#allocation8_spill] sm:$0xff]  ;;  %v3243_v10 = vld [vmem:[#allocation9_spill] sm:$0xff] }
 0x14d   : > { %v1059_v6 = vpop.permute.xlu1 %1058  ;;  %v1306_v29 = vsel %vm1282_vm1, %v1273_v34, %v2846_v63  ;;  %v1304_v42 = vsel %vm1282_vm1, %v1271_v28, %v2848_v19  ;;  %v1050_v26 = vrot.slane %v3238_v46, 1  ;;  %v3239_v19 = vld [vmem:[#allocation5_spill] sm:$0xff]  ;;  %v1096_v11 = vsel %vm1084_vm11, %v3241_v48, %v2905_v45  ;;  %v3244_v7 = vld [vmem:[#allocation10_spill] sm:$0xff]  ;;  %v3245_v32 = vld [vmem:[#allocation11_spill] sm:$0xff] }
 0x14e   : > { %v1057_v0 = vpop.permute.xlu0 %1056  ;;  %v1323_v8 = vsel %vm1315_vm2, %v1290_v1, %v1059_v6  ;;  %v1094_v31 = vsel %vm1084_vm11, %v3242_v9, %v2907_v36  ;;  %v1112_v1 = vsel %vm1084_vm11, %v3243_v10, %v2933_v24  ;;  %v3246_v52 = vld [vmem:[#allocation12_spill] sm:$0xff] }
 0x14f   : > { %v1321_v30 = vsel %vm1315_vm2, %v1288_v3, %v1057_v0  ;;  %v1370_v12 = vshrl.u32 %v1323_v8, 16  ;;  %v1373_v16 = vshll.u32 %v1323_v8, 16  ;;  %1078 = vrot.lane.b32.xlu1 %v3236_v35, %s2129_s19  ;;  %v1051_v62 = vsel %vm795_vm9, %v1049_v44, %v1050_v26 }
 0x150   : > { %v1363_v47 = vshrl.u32 %v1321_v30, 16  ;;  %v1366_v15 = vshll.u32 %v1321_v30, 16  ;;  %1076 = vrot.lane.b32.xlu0 %v3237_v43, %s2129_s19  ;;  %v1110_v3 = vsel %vm1084_vm11, %v3244_v7, %v2935_v22 }
 0x151   : > { %v1372_v50 = vrot.slane %v1370_v12, 3  ;;  %v1375_v57 = vrot.slane %v1373_v16, 4  ;;  %v1075_v13 = vpop.permute.xlu1 %1074  ;;  %v3247_v16 = vld [vmem:[#allocation13_spill] sm:$0xff] }
 0x152   : > { %v1365_v56 = vrot.slane %v1363_v47, 3  ;;  %v1368_v2 = vrot.slane %v1366_v15, 4  ;;  %v1073_v5 = vpop.permute.xlu0 %1072  ;;  %v1339_v17 = vsel %vm1315_vm2, %v1306_v29, %v1075_v13  ;;  %v3248_v47 = vld [vmem:[#allocation14_spill] sm:$0xff] }
 0x153   : > { %v1337_v18 = vsel %vm1315_vm2, %v1304_v42, %v1073_v5  ;;  %v1376_v27 = vor.u32 %v1375_v57, %v1372_v50  ;;  %v1430_v37 = vshrl.u32 %v1339_v17, 16  ;;  %v1433_v38 = vshll.u32 %v1339_v17, 16  ;;  %1066 = vrot.lane.b32.xlu1 %v3239_v19, %s2129_s19 }
 0x154   : > { %v1369_v63 = vor.u32 %v1368_v2, %v1365_v56  ;;  %v1423_v23 = vshrl.u32 %v1337_v18, 16  ;;  %v1426_v33 = vshll.u32 %v1337_v18, 16  ;;  %1064 = vrot.lane.b32.xlu0 %v3240_v20, %s2129_s19 }
 0x155   : > { %v1432_v25 = vrot.slane %v1430_v37, 3  ;;  %v1435_v39 = vrot.slane %v1433_v38, 4  ;;  %v762_v51 = vpop.permute.xlu1 %761 }
 0x156   : > { %v760_v54 = vpop.permute.xlu0 %759  ;;  %v1377_v40 = vsel %vm428_vm4, %v1369_v63, %v1376_v27  ;;  %v1425_v41 = vrot.slane %v1423_v23, 3  ;;  %v1428_v4 = vrot.slane %v1426_v33, 4  ;;  %v1100_v34 = vsel %vm1084_vm11, %v3245_v32, %v762_v51 }
 0x157   : > { %1984 = vmatmul.mubr.msk.bf16.vlgmr.msra.gmra.mrb[0].mxu0 %vm1494_vm3, %v1377_v40  ;;  %v1436_v14 = vor.u32 %v1435_v39, %v1432_v25  ;;  %1082 = vrot.lane.b32.xlu1 %v1050_v26, %s2129_s19  ;;  %v1098_v28 = vsel %vm1084_vm11, %v3246_v52, %v760_v54 }
 0x158   : > { %v1429_v21 = vor.u32 %v1428_v4, %v1425_v41  ;;  %1080 = vrot.lane.b32.xlu0 %v1051_v62, %s2129_s19 }
 0x159   : > { %v778_v60 = vpop.permute.xlu1 %777 }
 0x15a   : > { %v776_v53 = vpop.permute.xlu0 %775  ;;  %v1437_v55 = vsel %vm428_vm4, %v1429_v21, %v1436_v14  ;;  %v1116_v22 = vsel %vm1084_vm11, %v3247_v16, %v778_v60 }
 0x15b   : > { %1992 = vmatmul.mubr.msk.bf16.vlgmr.msra.gmra.mrb[0].mxu1 %vm1494_vm3, %v1437_v55  ;;  %v1114_v15 = vsel %vm1084_vm11, %v3248_v47, %v776_v53 }
 0x15d   : > { %v831_v49 = vpop.permute.xlu1 %830 }
 0x15e   : > { %v829_v58 = vpop.permute.xlu0 %828  ;;  %v1129_v59 = vsel %vm1117_vm12, %v1096_v11, %v831_v49 }
 0x15f   : > { %v1127_v61 = vsel %vm1117_vm12, %v1094_v31, %v829_v58 }
 0x161   : > { %v847_v6 = vpop.permute.xlu1 %846 }
 0x162   : > { %v845_v45 = vpop.permute.xlu0 %844  ;;  %v1145_v0 = vsel %vm1117_vm12, %v1112_v1, %v847_v6 }
 0x163   : > { %v1143_v36 = vsel %vm1117_vm12, %v1110_v3, %v845_v45 }
 0x165   : > { %v835_v8 = vpop.permute.xlu1 %834 }
 0x166   : > { %v833_v30 = vpop.permute.xlu0 %832  ;;  %v1133_v24 = vsel %vm1117_vm12, %v1100_v34, %v835_v8 }
 0x167   : > { %v1131_v12 = vsel %vm1117_vm12, %v1098_v28, %v833_v30 }
 0x169   : > { %v851_v35 = vpop.permute.xlu1 %850 }
 0x16a   : > { %v849_v44 = vpop.permute.xlu0 %848  ;;  %v1149_v29 = vsel %vm1117_vm12, %v1116_v22, %v851_v35 }
 0x16b   : > { %v1147_v42 = vsel %vm1117_vm12, %v1114_v15, %v849_v44 }
 0x16d   : > { %v865_v43 = vpop.permute.xlu1 %864 }
 0x16e   : > { %v863_v46 = vpop.permute.xlu0 %862  ;;  %v1162_v26 = vsel %vm1150_vm13, %v1129_v59, %v865_v43 }
 0x16f   : > { %v1160_v50 = vsel %vm1150_vm13, %v1127_v61, %v863_v46 }
 0x171   : > { %v881_v57 = vpop.permute.xlu1 %880 }
 0x172   : > { %v879_v56 = vpop.permute.xlu0 %878  ;;  %v1178_v2 = vsel %vm1150_vm13, %v1145_v0, %v881_v57 }
 0x173   : > { %v1176_v13 = vsel %vm1150_vm13, %v1143_v36, %v879_v56 }
 0x175   : > { %v869_v5 = vpop.permute.xlu1 %868 }
 0x176   : > { %v867_v17 = vpop.permute.xlu0 %866  ;;  %v1166_v18 = vsel %vm1150_vm13, %v1133_v24, %v869_v5 }
 0x177   : > { %v1164_v27 = vsel %vm1150_vm13, %v1131_v12, %v867_v17 }
 0x179   : > { %v885_v63 = vpop.permute.xlu1 %884 }
 0x17a   : > { %v883_v37 = vpop.permute.xlu0 %882  ;;  %v1182_v38 = vsel %vm1150_vm13, %v1149_v29, %v885_v63 }
 0x17b   : > { %v1180_v19 = vsel %vm1150_vm13, %v1147_v42, %v883_v37 }
 0x17d   : > { %v912_v23 = vpop.permute.xlu1 %911 }
 0x17e   : > { %v910_v33 = vpop.permute.xlu0 %909  ;;  %v1195_v0 = vsel %vm1183_vm14, %v1162_v26, %v912_v23 }
 0x17f   : > { %v1193_v32 = vsel %vm1183_vm14, %v1160_v50, %v910_v33 }
 0x181   : > { %v928_v20 = vpop.permute.xlu1 %927 }
 0x182   : > { %v926_v25 = vpop.permute.xlu0 %925  ;;  %v1211_v34 = vsel %vm1183_vm14, %v1178_v2, %v928_v20 }
 0x183   : > { %v1209_v52 = vsel %vm1183_vm14, %v1176_v13, %v926_v25 }
 0x185   : > { %v916_v39 = vpop.permute.xlu1 %915 }
 0x186   : > { %v914_v51 = vpop.permute.xlu0 %913  ;;  %v1199_v28 = vsel %vm1183_vm14, %v1166_v18, %v916_v39 }
 0x187   : > { %v1197_v30 = vsel %vm1183_vm14, %v1164_v27, %v914_v51 }
 0x189   : > { %v932_v54 = vpop.permute.xlu1 %931 }
 0x18a   : > { %v930_v40 = vpop.permute.xlu0 %929  ;;  %v1215_v24 = vsel %vm1183_vm14, %v1182_v38, %v932_v54 }
 0x18b   : > { %v1213_v12 = vsel %vm1183_vm14, %v1180_v19, %v930_v40 }
 0x18d   : > { %v947_v62 = vpop.permute.xlu1 %946 }
 0x18e   : > { %v945_v41 = vpop.permute.xlu0 %944  ;;  %v1228_v16 = vsel %vm1216_vm15, %v1195_v0, %v947_v62 }
 0x18f   : > { %v1226_v22 = vsel %vm1216_vm15, %v1193_v32, %v945_v41 }
 0x191   : > { %v963_v4 = vpop.permute.xlu1 %962 }
 0x192   : > { %v961_v14 = vpop.permute.xlu0 %960  ;;  %v1244_v47 = vsel %vm1216_vm15, %v1211_v34, %v963_v4 }
 0x193   : > { %v1242_v15 = vsel %vm1216_vm15, %v1209_v52, %v961_v14 }
 0x195   : > { %v951_v21 = vpop.permute.xlu1 %950 }
 0x196   : > { %v949_v60 = vpop.permute.xlu0 %948  ;;  %v1232_v44 = vsel %vm1216_vm15, %v1199_v28, %v951_v21 }
 0x197   : > { %v1230_v29 = vsel %vm1216_vm15, %v1197_v30, %v949_v60 }
 0x199   : > { %v967_v53 = vpop.permute.xlu1 %966 }
 0x19a   : > { %v965_v55 = vpop.permute.xlu0 %964  ;;  %v1248_v26 = vsel %vm1216_vm15, %v1215_v24, %v967_v53 }
 0x19b   : > { %v1246_v50 = vsel %vm1216_vm15, %v1213_v12, %v965_v55 }
 0x19d   : > { %v981_v48 = vpop.permute.xlu1 %980 }
 0x19e   : > { %v979_v11 = vpop.permute.xlu0 %978  ;;  %v1261_v35 = vsel %vm1249_vm0, %v1228_v16, %v981_v48 }
 0x19f   : > { %v1259_v42 = vsel %vm1249_vm0, %v1226_v22, %v979_v11 }
 0x1a1   : > { %v997_v9 = vpop.permute.xlu1 %996 }
 0x1a2   : > { %v995_v31 = vpop.permute.xlu0 %994  ;;  %v1277_v13 = vsel %vm1249_vm0, %v1244_v47, %v997_v9 }
 0x1a3   : > { %v1275_v27 = vsel %vm1249_vm0, %v1242_v15, %v995_v31 }
 0x1a5   : > { %v985_v49 = vpop.permute.xlu1 %984 }
 0x1a6   : > { %v983_v58 = vpop.permute.xlu0 %982  ;;  %v1265_v63 = vsel %vm1249_vm0, %v1232_v44, %v985_v49 }
 0x1a7   : > { %v1263_v19 = vsel %vm1249_vm0, %v1230_v29, %v983_v58 }
 0x1a9   : > { %v1001_v59 = vpop.permute.xlu1 %1000 }
 0x1aa   : > { %v3040_v61 = vpop.permute.xlu0 %998  ;;  %v1281_v60 = vsel %vm1249_vm0, %v1248_v26, %v1001_v59 }
 0x1ad   : > { %v1028_v10 = vpop.permute.xlu1 %1027 }
 0x1ae   : > { %v1026_v1 = vpop.permute.xlu0 %1025  ;;  %v1294_v43 = vsel %vm1282_vm1, %v1261_v35, %v1028_v10 }
 0x1af   : > { %v1292_v57 = vsel %vm1282_vm1, %v1259_v42, %v1026_v1 }
 0x1b1   : > { %v1044_v7 = vpop.permute.xlu1 %1043 }
 0x1b2   : > { %v1042_v3 = vpop.permute.xlu0 %1041  ;;  %v1310_v23 = vsel %vm1282_vm1, %v1277_v13, %v1044_v7 }
 0x1b3   : > { %v1308_v39 = vsel %vm1282_vm1, %v1275_v27, %v1042_v3 }
 0x1b5   : > { %v1032_v6 = vpop.permute.xlu1 %1031 }
 0x1b6   : > { %v1030_v45 = vpop.permute.xlu0 %1029  ;;  %v1298_v11 = vsel %vm1282_vm1, %v1265_v63, %v1032_v6  ;;  %v1279_v6 = vsel %vm1249_vm0, %v1246_v50, %v3040_v61  ;;  %v3100_v63 = vld [vmem:[%s3169_s4] ss:$0 sm:$0xff] }
 0x1b7   : > { %v1296_v9 = vsel %vm1282_vm1, %v1263_v19, %v1030_v45 }
 0x1b9   : > { %v3043_v36 = vpop.permute.xlu1 %1047 }
 0x1ba   : > { %v3049_v8 = vpop.permute.xlu0 %1045  ;;  %v1314_v24 = vsel %vm1282_vm1, %v1281_v60, %v3043_v36 }
 0x1bb   : > { %v1312_v12 = vsel %vm1282_vm1, %v1279_v6, %v3049_v8 }
 0x1bd   : > { %v1063_v46 = vpop.permute.xlu1 %1062 }
 0x1be   : > { %v1327_v56 = vsel %vm1315_vm2, %v1294_v43, %v1063_v46  ;;  %v1061_v2 = vpop.permute.xlu0 %1060 }
 0x1bf   : > { %v1385_v5 = vshrl.u32 %v1327_v56, 16  ;;  %v1388_v17 = vshll.u32 %v1327_v56, 16  ;;  %v1325_v18 = vsel %vm1315_vm2, %v1292_v57, %v1061_v2 }
 0x1c0   : > { %v1378_v37 = vshrl.u32 %v1325_v18, 16  ;;  %v1381_v38 = vshll.u32 %v1325_v18, 16 }
 0x1c1   : > { %v1387_v33 = vrot.slane %v1385_v5, 3  ;;  %v1390_v20 = vrot.slane %v1388_v17, 4  ;;  %v1079_v25 = vpop.permute.xlu1 %1078 }
 0x1c2   : > { %v1380_v51 = vrot.slane %v1378_v37, 3  ;;  %v1383_v54 = vrot.slane %v1381_v38, 4  ;;  %v1343_v40 = vsel %vm1315_vm2, %v1310_v23, %v1079_v25  ;;  %v1077_v62 = vpop.permute.xlu0 %1076 }
 0x1c3   : > { %v1391_v41 = vor.u32 %v1390_v20, %v1387_v33  ;;  %v1445_v4 = vshrl.u32 %v1343_v40, 16  ;;  %v1448_v14 = vshll.u32 %v1343_v40, 16  ;;  %v1341_v21 = vsel %vm1315_vm2, %v1308_v39, %v1077_v62 }
 0x1c4   : > { %v1384_v53 = vor.u32 %v1383_v54, %v1380_v51  ;;  %v1438_v55 = vshrl.u32 %v1341_v21, 16  ;;  %v1441_v48 = vshll.u32 %v1341_v21, 16 }
 0x1c5   : > { %v1447_v31 = vrot.slane %v1445_v4, 3  ;;  %v1450_v49 = vrot.slane %v1448_v14, 4  ;;  %v1067_v58 = vpop.permute.xlu1 %1066 }
 0x1c6   : > { %v1440_v10 = vrot.slane %v1438_v55, 3  ;;  %v1443_v1 = vrot.slane %v1441_v48, 4  ;;  %v1331_v7 = vsel %vm1315_vm2, %v1298_v11, %v1067_v58  ;;  %v1065_v3 = vpop.permute.xlu0 %1064  ;;  %v1392_v0 = vsel %vm428_vm4, %v1384_v53, %v1391_v41 }
 0x1c7   : > { %v1451_v32 = vor.u32 %v1450_v49, %v1447_v31  ;;  %v1400_v34 = vshrl.u32 %v1331_v7, 16  ;;  %v1403_v59 = vshll.u32 %v1331_v7, 16  ;;  %v1329_v52 = vsel %vm1315_vm2, %v1296_v9, %v1065_v3  ;;  %1987 = vmatprep.mubr.msk.bf16.mxu0 %vm1494_vm3, %v1392_v0 }
 0x1c8   : > { %v1444_v45 = vor.u32 %v1443_v1, %v1440_v10  ;;  %v1393_v28 = vshrl.u32 %v1329_v52, 16  ;;  %v1396_v30 = vshll.u32 %v1329_v52, 16 }
 0x1c9   : > { %v1402_v16 = vrot.slane %v1400_v34, 3  ;;  %v1405_v22 = vrot.slane %v1403_v59, 4  ;;  %v1083_v47 = vpop.permute.xlu1 %1082 }
 0x1ca   : > { %v1395_v15 = vrot.slane %v1393_v28, 3  ;;  %v1398_v35 = vrot.slane %v1396_v30, 4  ;;  %v1347_v44 = vsel %vm1315_vm2, %v1314_v24, %v1083_v47  ;;  %v1081_v29 = vpop.permute.xlu0 %1080  ;;  %v1452_v42 = vsel %vm428_vm4, %v1444_v45, %v1451_v32 }
 0x1cb   : > { %v1406_v61 = vor.u32 %v1405_v22, %v1402_v16  ;;  %v1460_v43 = vshrl.u32 %v1347_v44, 16  ;;  %v1463_v46 = vshll.u32 %v1347_v44, 16  ;;  %v1345_v26 = vsel %vm1315_vm2, %v1312_v12, %v1081_v29  ;;  %1995 = vmatprep.mubr.msk.bf16.mxu1 %vm1494_vm3, %v1452_v42 }
 0x1cc   : > { %v1399_v36 = vor.u32 %v1398_v35, %v1395_v15  ;;  %v1453_v50 = vshrl.u32 %v1345_v26, 16  ;;  %v1456_v8 = vshll.u32 %v1345_v26, 16 }
 0x1cd   : > { %v1462_v57 = vrot.slane %v1460_v43, 3  ;;  %v1465_v56 = vrot.slane %v1463_v46, 4 }
 0x1ce   : > { %v1455_v2 = vrot.slane %v1453_v50, 3  ;;  %v1458_v13 = vrot.slane %v1456_v8, 4  ;;  %v1407_v5 = vsel %vm428_vm4, %v1399_v36, %v1406_v61 }
 0x1cf   : > { %v1466_v17 = vor.u32 %v1465_v56, %v1462_v57  ;;  %1988 = vmatmul.mubr.msk.bf16.gmra.mrb[4].mxu0 %vm1494_vm3, %v1407_v5 }
 0x1d0   : > { %v1459_v18 = vor.u32 %v1458_v13, %v1455_v2 }
 0x1d2   : > { %v1467_v27 = vsel %vm428_vm4, %v1459_v18, %v1466_v17  ;;  %vm1700_vm4 = vcmask 60416  }
 0x1d3   : > { %1996 = vmatmul.mubr.msk.bf16.gmra.mrb[4].mxu1 %vm1494_vm3, %v1467_v27 }
 0x22a   : > { %v1985_v37 = vpop.f32.mrb[0].mxu0 }
 0x22b   : > { %v1566_v38 = vadd.f32 %v1985_v37, %v3100_v63  ;;  %v1557_v19 = vpop.f32.mrb[1].mxu0 }
 0x22c   : > { %v1558_v23 = vadd.f32 %v3100_v63, %v1557_v19  ;;  %v1986_v33 = vpop.f32.mrb[2].mxu0 }
 0x22d   : > { %v1622_v20 = vmax.f32 %v1566_v38, 0.0  ;;  %v1569_v25 = vadd.f32 %v1986_v33, %v3100_v63  ;;  %v1560_v39 = vpop.f32.mrb[3].mxu0 }
 0x22e   : > { %v1620_v51 = vmax.f32 %v1558_v23, 0.0  ;;  %v1561_v54 = vadd.f32 %v3100_v63, %v1560_v39  ;;  %v1993_v41 = vpop.f32.mrb[0].mxu1 }
 0x22f   : > { %v1952_v40 = vpack.c.bf16 %v1622_v20, %v1622_v20  ;;  %v1623_v62 = vmax.f32 %v1569_v25, 0.0  ;;  %v1598_v21 = vadd.f32 %v1993_v41, %v3100_v63  ;;  %v1589_v60 = vpop.f32.mrb[1].mxu1 }
 0x230   : > { %v1950_v4 = vpack.c.bf16 %v1620_v51, %v1620_v51  ;;  %v1621_v14 = vmax.f32 %v1561_v54, 0.0  ;;  %v1590_v55 = vadd.f32 %v3100_v63, %v1589_v60  ;;  %v1994_v48 = vpop.f32.mrb[2].mxu1 }
 0x231   : > { %1703 = vst.msk [vmem:[%s2270_s15 + $0x8] sm:$0xf] %vm1700_vm4, %v1952_v40  ;;  %v1953_v53 = vpack.c.bf16 %v1623_v62, %v1623_v62  ;;  %v1630_v9 = vmax.f32 %v1598_v21, 0.0  ;;  %v1601_v31 = vadd.f32 %v1994_v48, %v3100_v63  ;;  %v1592_v49 = vpop.f32.mrb[3].mxu1 }
 0x232   : > { %1701 = vst.msk [vmem:[%s2270_s15] sm:$0xf] %vm1700_vm4, %v1950_v4  ;;  %v1951_v11 = vpack.c.bf16 %v1621_v14, %v1621_v14  ;;  %v1628_v58 = vmax.f32 %v1590_v55, 0.0  ;;  %v1593_v10 = vadd.f32 %v3100_v63, %v1592_v49 }
 0x233   : > { %1704 = vst.msk [vmem:[%s2270_s15 + $0xc] sm:$0xf] %vm1700_vm4, %v1953_v53  ;;  %v1960_v1 = vpack.c.bf16 %v1630_v9, %v1630_v9  ;;  %v1631_v7 = vmax.f32 %v1601_v31, 0.0 }
 0x234   : > { %1702 = vst.msk [vmem:[%s2270_s15 + $0x4] sm:$0xf] %vm1700_vm4, %v1951_v11  ;;  %v1958_v3 = vpack.c.bf16 %v1628_v58, %v1628_v58  ;;  %v1629_v0 = vmax.f32 %v1593_v10, 0.0 }
 0x235   : > { %1711 = vst.msk [vmem:[%s2270_s15 + $0x28] sm:$0xf] %vm1700_vm4, %v1960_v1  ;;  %v1961_v32 = vpack.c.bf16 %v1631_v7, %v1631_v7 }
 0x236   : > { %1709 = vst.msk [vmem:[%s2270_s15 + $0x20] sm:$0xf] %vm1700_vm4, %v1958_v3  ;;  %v1959_v34 = vpack.c.bf16 %v1629_v0, %v1629_v0 }
 0x237   : > { %1712 = vst.msk [vmem:[%s2270_s15 + $0x2c] sm:$0xf] %vm1700_vm4, %v1961_v32 }
 0x238   : > { %1710 = vst.msk [vmem:[%s2270_s15 + $0x24] sm:$0xf] %vm1700_vm4, %v1959_v34 }
 0x2a2   : > { %v1989_v59 = vpop.f32.mrb[4].mxu0 }
 0x2a3   : > { %v1582_v52 = vadd.f32 %v1989_v59, %v3100_v63  ;;  %v1573_v6 = vpop.f32.mrb[5].mxu0 }
 0x2a4   : > { %v1574_v45 = vadd.f32 %v3100_v63, %v1573_v6  ;;  %v1990_v28 = vpop.f32.mrb[6].mxu0 }
 0x2a5   : > { %v1626_v30 = vmax.f32 %v1582_v52, 0.0  ;;  %v1585_v24 = vadd.f32 %v1990_v28, %v3100_v63  ;;  %v1576_v12 = vpop.f32.mrb[7].mxu0 }
 0x2a6   : > { %v1624_v16 = vmax.f32 %v1574_v45, 0.0  ;;  %v1577_v22 = vadd.f32 %v3100_v63, %v1576_v12  ;;  %v1997_v47 = vpop.f32.mrb[4].mxu1 }
 0x2a7   : > { %v1956_v15 = vpack.c.bf16 %v1626_v30, %v1626_v30  ;;  %v1627_v35 = vmax.f32 %v1585_v24, 0.0  ;;  %v1614_v44 = vadd.f32 %v1997_v47, %v3100_v63  ;;  %v1605_v29 = vpop.f32.mrb[5].mxu1 }
 0x2a8   : > { %v1954_v42 = vpack.c.bf16 %v1624_v16, %v1624_v16  ;;  %v1625_v61 = vmax.f32 %v1577_v22, 0.0  ;;  %v1606_v43 = vadd.f32 %v3100_v63, %v1605_v29  ;;  %v1998_v46 = vpop.f32.mrb[6].mxu1 }
 0x2a9   : > { %1707 = vst.msk [vmem:[%s2270_s15 + $0x18] sm:$0xf] %vm1700_vm4, %v1956_v15  ;;  %v1957_v26 = vpack.c.bf16 %v1627_v35, %v1627_v35  ;;  %v1634_v36 = vmax.f32 %v1614_v44, 0.0  ;;  %v1617_v50 = vadd.f32 %v1998_v46, %v3100_v63  ;;  %v1608_v8 = vpop.f32.mrb[7].mxu1 }
 0x2aa   : > { %1705 = vst.msk [vmem:[%s2270_s15 + $0x10] sm:$0xf] %vm1700_vm4, %v1954_v42  ;;  %v1955_v57 = vpack.c.bf16 %v1625_v61, %v1625_v61  ;;  %v1632_v56 = vmax.f32 %v1606_v43, 0.0  ;;  %v1609_v2 = vadd.f32 %v3100_v63, %v1608_v8 }
 0x2ab   : > { %1708 = vst.msk [vmem:[%s2270_s15 + $0x1c] sm:$0xf] %vm1700_vm4, %v1957_v26  ;;  %v1964_v13 = vpack.c.bf16 %v1634_v36, %v1634_v36  ;;  %v1635_v5 = vmax.f32 %v1617_v50, 0.0 }
 0x2ac   : > { %1706 = vst.msk [vmem:[%s2270_s15 + $0x14] sm:$0xf] %vm1700_vm4, %v1955_v57  ;;  %v1962_v17 = vpack.c.bf16 %v1632_v56, %v1632_v56  ;;  %v1633_v18 = vmax.f32 %v1609_v2, 0.0 }
 0x2ad   : > { %1715 = vst.msk [vmem:[%s2270_s15 + $0x38] sm:$0xf] %vm1700_vm4, %v1964_v13  ;;  %v1965_v27 = vpack.c.bf16 %v1635_v5, %v1635_v5 }
 0x2ae   : > { %1713 = vst.msk [vmem:[%s2270_s15 + $0x30] sm:$0xf] %vm1700_vm4, %v1962_v17  ;;  %v1963_v37 = vpack.c.bf16 %v1633_v18, %v1633_v18 }
 0x2af   : > { %1716 = vst.msk [vmem:[%s2270_s15 + $0x3c] sm:$0xf] %vm1700_vm4, %v1965_v27 }
 0x2b0   : > { %1714 = vst.msk [vmem:[%s2270_s15 + $0x34] sm:$0xf] %vm1700_vm4, %v1963_v37 }
 0x2b1 PF: > { %s15_s22 = sadd.s32 1, %s2118_s22   ;;  %s3249_s18 = smov %s2110_s20 }
 0x2b2   : > { %p12_p0 = scmp.ge.s32.totalorder %s15_s22, 6   ;;  %s3250_s19 = smov %s2114_s21 }
 0x2b3   : > { %s3251_s20 = smov %s3254_s23  ;;  %s3252_s21 = smov %s3258_s24 }
 0x2b4   :  { %14 = sbr.rel (!%p12_p0) target bundleno = 3 (0x3), region = 95 }

// kernel: _lambda_.5
= control target key start
LH: loop header
LB: loop body
LE: loop exit
PB: predicated region body
PF: predicated region fallthrough
CT: control target
= control target key end

     0   :  { %s1805_s18 = smov 0   ;;  %s1807_s19 = smov 0   ;;  %s2159_s0 = inlined_call_operand.vmem [shape: bf16[2,8,8,8], index: 0, kind: input, shape index: {}, may-alias: {0,1,2}]   ;;  %s2160_s1 = inlined_call_operand.vmem [shape: bf16[2,8,8,8], index: 1, kind: input, shape index: {}, may-alias: {0,1,2}]   ;;  %s2161_s2 = inlined_call_operand.vmem [shape: bf16[2,8,8,8], index: 2, kind: input, shape index: {}, may-alias: {0,1,2}]   ;;  %s2162_s3 = inlined_call_operand.vmem [shape: bf16[3,24,16], index: 3, kind: input, shape index: {}]   ;;  %s2163_s4 = inlined_call_operand.vmem [shape: f32[1,16], index: 4, kind: input, shape index: {}]   ;;  %s2164_s5 = inlined_call_operand.vmem [shape: bf16[2,4,4,16], index: 5, kind: output, shape index: {}]  }
   0x1   :  { %2165 = sst [smem:[#allocation3_spill]] %s2159_s0  ;;  %s1809_s20 = smov 0  }
   0x2   :  { %s1811_s21 = smov 0   ;;  %s1813_s22 = smov 0  }
   0x3 LB: > { %s24_s23 = sadd.s32 1, %s1760_s20  ;;  %s27_s24 = sadd.s32 1, %s1764_s21  ;;  %s1768_s22 = sphi %s1813_s22, %s15_s22   ;;  %s1764_s21 = sphi %s1811_s21, %s2177_s21   ;;  %s1760_s20 = sphi %s1809_s20, %s2176_s20   ;;  %s1756_s19 = sphi %s1807_s19, %s2175_s19   ;;  %s1752_s18 = sphi %s1805_s18, %s2174_s18  }
   0x4   : > { %p25_p0 = scmp.ge.s32.totalorder %s24_s23, 2  ;;  %p1524_p1 = scmp.ge.s32.totalorder %s1768_s22, 1 }
   0x5   : > { %p270_p2 = scmp.lt.s32.totalorder %s1768_s22, 5 }
   0x6   : > { %s2179_s23 = smov (%p25_p0, %s24_s23), 0  ;;  %s2181_s24 = smov (!%p25_p0, %s27_s24), %s1764_s21 }
   0x7   : > { %p271_p3 = pnand %p1524_p1, %p270_p2  ;;  %p29_p4 = scmp.ge.s32.totalorder %s2181_s24, 2 }
   0x8   : > { %vm383_vm0 = vcmask (!%p271_p3), 60419   ;;  %vm384_vm1 = vsmask.f32 (!%p271_p3), 7950  ;;  %v386_v0 = vld [vmem:[#allocation2] sm:$0x8] (!%p271_p3)  ;;  %vm404_vm2 = vcmask (!%p271_p3), 57344  }
   0x9   : > { %s2183_s24 = smov (%p29_p4, %s2181_s24), 0  ;;  %274 = sbr.rel (%p271_p3) target bundleno = 513 (0x201), region = 40 }
   0xa   : > { %vm1839_vm3 = vmand (!%p271_p3), %vm383_vm0, %vm384_vm1  ;;  %v389_v2 = vld [vmem:[#allocation2 + $0xc] sm:$0x8] (!%p271_p3)  ;;  %v392_v3 = vld [vmem:[#allocation2 + $0x18] sm:$0x8] (!%p271_p3)  ;;  %vm405_vm4 = vsmask.f32 (!%p271_p3), 256 }
   0xb   : > { %v387_v4 = vsel (!%p271_p3), %vm1839_vm3, 0, %v386_v0  ;;  %v390_v5 = vsel (!%p271_p3), %vm1839_vm3, 0, %v389_v2  ;;  %v393_v6 = vsel (!%p271_p3), %vm1839_vm3, 0, %v392_v3  ;;  %v395_v7 = vld [vmem:[#allocation2 + $0x24] sm:$0x8] (!%p271_p3)  ;;  %vm1850_vm5 = vmand (!%p271_p3), %vm404_vm2, %vm405_vm4  ;;  %s1855_s25 = sshll.u32 (!%p271_p3), %s1752_s18, 2 }
   0xc   : > { %388 = vst [vmem:[#allocation2] sm:$0x8] (!%p271_p3), %v387_v4  ;;  %391 = vst [vmem:[#allocation2 + $0xc] sm:$0x8] (!%p271_p3), %v390_v5  ;;  %v396_v9 = vsel (!%p271_p3), %vm1839_vm3, 0, %v395_v7  ;;  %p331_p5 = scmp.lt.s32.totalorder (!%p271_p3), %s1756_s19, 1 }
   0xd   : > { %394 = vst [vmem:[#allocation2 + $0x18] sm:$0x8] (!%p271_p3), %v393_v6  ;;  %v398_v10 = vld [vmem:[#allocation2 + $0x30] sm:$0x8] (!%p271_p3)  ;;  %v401_v11 = vld [vmem:[#allocation2 + $0x3c] sm:$0x8] (!%p271_p3) }
   0xe   : > { %397 = vst [vmem:[#allocation2 + $0x24] sm:$0x8] (!%p271_p3), %v396_v9  ;;  %v399_v12 = vsel (!%p271_p3), %vm1839_vm3, 0, %v398_v10  ;;  %v402_v13 = vsel (!%p271_p3), %vm1839_vm3, 0, %v401_v11  ;;  %v407_v14 = vld [vmem:[#allocation2 + $0x8] sm:$0x1] (!%p271_p3) }
   0xf   : > { %v410_v15 = vld [vmem:[#allocation2 + $0x14] sm:$0x1] (!%p271_p3)  ;;  %400 = vst [vmem:[#allocation2 + $0x30] sm:$0x8] (!%p271_p3), %v399_v12  ;;  %403 = vst [vmem:[#allocation2 + $0x3c] sm:$0x8] (!%p271_p3), %v402_v13 }
  0x10   : > { %v408_v16 = vsel %vm1850_vm5, 0, %v407_v14  ;;  %v411_v17 = vsel %vm1850_vm5, 0, %v410_v15  ;;  %v413_v18 = vld [vmem:[#allocation2 + $0x20] sm:$0x1]  ;;  %v416_v19 = vld [vmem:[#allocation2 + $0x2c] sm:$0x1] }
  0x11   : > { %409 = vst [vmem:[#allocation2 + $0x8] sm:$0x1] %v408_v16  ;;  %412 = vst [vmem:[#allocation2 + $0x14] sm:$0x1] %v411_v17  ;;  %v414_v20 = vsel %vm1850_vm5, 0, %v413_v18  ;;  %v417_v21 = vsel %vm1850_vm5, 0, %v416_v19 }
  0x12   : > { %v419_v22 = vld [vmem:[#allocation2 + $0x38] sm:$0x1]  ;;  %v422_v23 = vld [vmem:[#allocation2 + $0x44] sm:$0x1]  ;;  %415 = vst [vmem:[#allocation2 + $0x20] sm:$0x1] %v414_v20 }
  0x13   : > { %418 = vst [vmem:[#allocation2 + $0x2c] sm:$0x1] %v417_v21  ;;  %v420_v24 = vsel %vm1850_vm5, 0, %v419_v22  ;;  %v423_v25 = vsel %vm1850_vm5, 0, %v422_v23  ;;  %s2185_s19 = smov (!%p331_p5, %s1756_s19), 1  ;;  %p333_p6 = scmp.lt.s32.totalorder %s1855_s25, 7 }
  0x14   : > { %421 = vst [vmem:[#allocation2 + $0x38] sm:$0x1] %v420_v24  ;;  %424 = vst [vmem:[#allocation2 + $0x44] sm:$0x1] %v423_v25  ;;  %s1529_s26 = sadd.s32 4294967295, %s1855_s25  ;;  %s1884_s27 = sshll.u32 %s2185_s19, 3 }
  0x15   : > { %p342_p7 = scmp.gt.s32.totalorder %s1529_s26, 0  ;;  %p1530_p8 = scmp.lt.s32.totalorder %s1529_s26, 7  ;;  %vm430_vm6 = vcmask 60416  }
  0x16   : > { %s334_s28 = scalar_select %p333_p6, %s1855_s25, 7 }
  0x17   : > { %s343_s29 = scalar_select %p342_p7, %s1529_s26, 0 }
  0x18   : > { %s336_s30 = sadd.s32 %s1884_s27, %s334_s28  ;;  %s357_s7 = sadd.s32 4, %s1855_s25 }
  0x19   : > { %s1527_s6 = sshll.u32 %s336_s30, 2  ;;  %s2170_s0 = sld [smem:[#allocation3_spill]] }
  0x1a   : > { %p1892_p9 = scmp.lt.s32.totalorder %s357_s7, 7  ;;  %s2187_s29 = smov (!%p1530_p8, %s343_s29), 7 }
  0x1b   : > { %s349_s12 = sadd.s32 %s2187_s29, %s1884_s27  ;;  %s1543_s13 = sshll.u32 %s1752_s18, 1 }
  0x1c   : > { %s2189_s7 = smov (!%p1892_p9, %s357_s7), 7  ;;  %s1536_s14 = sshll.u32 %s349_s12, 2 }
  0x1d   : > { %p375_p10 = scmp.lt.s32.totalorder %s1543_s13, 3  ;;  %s351_s17 = scalar_lea.vmem %s2160_s1, %s1536_s14 }
  0x1e   : > { %s1544_s25 = sshll.u32 %s2185_s19, 2  ;;  %s2191_s7 = smov (!%p1892_p9, %s2189_s7), 7 }
  0x1f   : > { %s338_s10 = scalar_lea.vmem %s2170_s0, %s1527_s6  ;;  %s2193_s13 = smov (!%p375_p10, %s1543_s13), 3 }
  0x20   : > { %v425_v26 = vld [vmem:[%s338_s10] sm:$0xf]  ;;  %v426_v27 = vld [vmem:[%s338_s10 + $0x4] sm:$0xf]  ;;  %v427_v28 = vld [vmem:[%s338_s10 + $0x8] sm:$0xf]  ;;  %s365_s26 = sadd.s32 %s1884_s27, %s2191_s7  ;;  %s378_s30 = sadd.s32 %s1544_s25, %s2193_s13 }
  0x21   : > { %431 = vst.msk [vmem:[#allocation2 + $0x10] sm:$0xf] %vm430_vm6, %v425_v26  ;;  %432 = vst.msk [vmem:[#allocation2 + $0x1c] sm:$0xf] %vm430_vm6, %v426_v27  ;;  %v428_v29 = vld [vmem:[%s338_s10 + $0xc] sm:$0xf] }
  0x22   : > { %433 = vst.msk [vmem:[#allocation2 + $0x28] sm:$0xf] %vm430_vm6, %v427_v28  ;;  %434 = vst.msk [vmem:[#allocation2 + $0x34] sm:$0xf] %vm430_vm6, %v428_v29  ;;  %s1542_s28 = sshll.u32 %s365_s26, 2  ;;  %s1545_s9 = sshll.u32 %s378_s30, 1 }
  0x23   : > { %s367_s8 = scalar_lea.vmem %s2161_s2, %s1542_s28  ;;  %s1917_s12 = scalar_lea.vmem %s2164_s5, %s1545_s9 }
  0x24   : > { %p1546_p11 = scmp.le.s32.totalorder %s1752_s18, 0 }
  0x25   : > { %v439_v30 = vld [vmem:[%s351_s17] sm:$0xf] (!%p1546_p11) }
  0x26   : > { %438 = sbr.rel (%p1546_p11) target bundleno = 45 (0x2d), region = 44  ;;  %440 = vst.msk [vmem:[#allocation2 + $0x4] sm:$0xf] (!%p1546_p11), %vm430_vm6, %v439_v30 }
  0x2d PF: > { %p1547_p12 = scmp.ne.s32.totalorder %s1752_s18, 0 }
  0x2e   : > { %v1770_v31 = vmov (!%p1547_p12), 0  }
  0x2f   : > { %444 = sbr.rel (%p1547_p12) target bundleno = 54 (0x36), region = 48  ;;  %445 = vst.msk [vmem:[#allocation2 + $0x4] sm:$0xf] (!%p1547_p12), %vm430_vm6, %v1770_v31 }
  0x36 PF: > { %p1548_p13 = scmp.ge.s32.totalorder %s1752_s18, 1 }
  0x37   : > { %v450_v32 = vld [vmem:[%s367_s8] sm:$0xf] (!%p1548_p13) }
  0x38   : > { %449 = sbr.rel (%p1548_p13) target bundleno = 63 (0x3f), region = 52  ;;  %452 = vst.msk [vmem:[#allocation2 + $0x40] sm:$0xf] (!%p1548_p13), %vm430_vm6, %v450_v32 }
  0x3f PF: > { %p1549_p0 = scmp.ne.s32.totalorder %s1752_s18, 1 }
  0x40   : > { %v1771_v33 = vmov (!%p1549_p0), 0  }
  0x41   : > { %456 = sbr.rel (%p1549_p0) target bundleno = 72 (0x48), region = 56  ;;  %458 = vst.msk [vmem:[#allocation2 + $0x40] sm:$0xf] (!%p1549_p0), %vm430_vm6, %v1771_v33 }
  0x48 PF: > { %v1927_v34 = vld [vmem:[#allocation2 + $0x10] sm:$0xf]  ;;  %v465_v35 = vld [vmem:[#allocation2 + $0x14] sm:$0xf]  ;;  %v1932_v38 = vld [vmem:[#allocation2 + $0x4] sm:$0xf] }
  0x49   : > { %v1559_v36 = vcombine.low %v1927_v34, %v465_v35  ;;  %v1555_v37 = vcombine.low %v1927_v34, %v1927_v34  ;;  %v462_v39 = vld [vmem:[#allocation2 + $0x8] sm:$0xf]  ;;  %v1934_v40 = vld [vmem:[#allocation2 + $0x1c] sm:$0xf]  ;;  %v1554_v42 = vcombine.low %v1932_v38, %v1932_v38  ;;  %v471_v49 = vld [vmem:[#allocation2 + $0x2c] sm:$0xf] }
  0x4a   : > { %v1558_v41 = vcombine.low %v1932_v38, %v462_v39  ;;  %v1556_v43 = vcombine.low %v1934_v40, %v1934_v40  ;;  %v1941_v44 = vld [vmem:[#allocation2 + $0x28] sm:$0xf]  ;;  %v468_v54 = vld [vmem:[#allocation2 + $0x20] sm:$0xf]  ;;  %s1772_s0 = smov 16   ;;  %s1773_s18 = smov 8  }
  0x4b   : > { %v555_v45 = vrot.slane %v1559_v36, 5  ;;  %v1557_v46 = vcombine.low %v1941_v44, %v1941_v44  ;;  %v511_v47 = vshrl.u32 %v1555_v37, 16  ;;  %v514_v48 = vshll.u32 %v1555_v37, 16  ;;  %v1946_v58 = vld [vmem:[#allocation2 + $0x40] sm:$0xf]  ;;  %v1727_v29 = vld [vmem:[%s2162_s3 + $0xc] sm:$0xff]  }
  0x4c   : > { %v554_v50 = vrot.slane %v1558_v41, 5  ;;  %v519_v51 = vshrl.u32 %v1556_v43, 16  ;;  %v522_v52 = vshll.u32 %v1556_v43, 16  ;;  %v503_v53 = vshrl.u32 %v1554_v42, 16  ;;  %v1949_v63 = vld [vmem:[#allocation2 + $0x34] sm:$0xf]  ;;  %1626 = vmatprep.subr.bf16.mxu1 %v1727_v29 }
  0x4d   : > { %560 = vrot.lane.b32.xlu1 %v555_v45, %s1772_s0  ;;  %v506_v55 = vshll.u32 %v1554_v42, 16  ;;  %v527_v56 = vshrl.u32 %v1557_v46, 16  ;;  %v530_v57 = vshll.u32 %v1557_v46, 16  ;;  %v513_v62 = vrot.slane %v511_v47, 4  ;;  %v1722_v13 = vld [vmem:[%s2162_s3] sm:$0xff]   ;;  %1627 = vmatpush3.bf16.msra.mxu1 %v1727_v29  ;;  %v1980_v33 = vld [vmem:[%s2162_s3 + $0x18] sm:$0xff]  }
  0x4e   : > { %558 = vrot.lane.b32.xlu0 %v554_v50, %s1772_s0  ;;  %v521_v59 = vrot.slane %v519_v51, 4  ;;  %v524_v60 = vrot.slane %v522_v52, 5  ;;  %v505_v61 = vrot.slane %v503_v53, 4  ;;  %v516_v3 = vrot.slane %v514_v48, 5  ;;  %1634 = vmatprep.subr.bf16.mxu0 %v1722_v13  ;;  %v477_v22 = vld [vmem:[#allocation2 + $0x44] sm:$0xf] }
  0x4f   : > { %v508_v0 = vrot.slane %v506_v55, 5  ;;  %v529_v1 = vrot.slane %v527_v56, 4  ;;  %v532_v2 = vrot.slane %v530_v57, 5  ;;  %v1561_v5 = vcombine.low %v1941_v44, %v471_v49  ;;  %1635 = vmatpush3.bf16.msra.mxu0 %v1722_v13  ;;  %v1725_v23 = vld [vmem:[%s2162_s3 + $0x8] ss:$0 sps:$4 sm:$0xff]  }
  0x50   : > { %v525_v4 = vor.u32 %v524_v60, %v521_v59  ;;  %v1596_v6 = vcombine.low %v1946_v58, %v1946_v58  ;;  %v1560_v8 = vcombine.low %v1934_v40, %v468_v54  ;;  %v1575_v9 = vcombine.low %v1949_v63, %v1949_v63  ;;  %v474_v25 = vld [vmem:[#allocation2 + $0x38] sm:$0xf]  ;;  %v1728_v35 = vld [vmem:[%s2162_s3 + $0x14] ss:$0 sps:$4 sm:$0xff]   ;;  %v460_v41 = vld [vmem:[#allocation2] sm:$0xf] }
  0x51   : > { %v509_v7 = vor.u32 %v508_v0, %v505_v61  ;;  %v533_v10 = vor.u32 %v532_v2, %v529_v1  ;;  %v517_v14 = vor.u32 %v516_v3, %v513_v62  ;;  %v557_v17 = vrot.slane %v1561_v5, 5  ;;  %v463_v45 = vld [vmem:[#allocation2 + $0xc] sm:$0xf]  ;;  %v469_v48 = vld [vmem:[#allocation2 + $0x24] sm:$0xf] }
  0x52   : > { %538 = vrot.lane.b32.xlu1 %v525_v4, %s1773_s18  ;;  %v866_v11 = vshrl.u32 %v1596_v6, 16  ;;  %v869_v12 = vshll.u32 %v1596_v6, 16  ;;  %v672_v15 = vshrl.u32 %v1575_v9, 16  ;;  %v675_v16 = vshll.u32 %v1575_v9, 16  ;;  %v466_v49 = vld [vmem:[#allocation2 + $0x18] sm:$0xf] }
  0x53   : > { %534 = vrot.lane.b32.xlu0 %v509_v7, %s1773_s18  ;;  %v556_v18 = vrot.slane %v1560_v8, 5  ;;  %vm736_vm7 = vcmask 1043456   ;;  %v1597_v28 = vcombine.low %v1946_v58, %v477_v22  ;;  %v1576_v31 = vcombine.low %v1949_v63, %v474_v25  ;;  %v475_v56 = vld [vmem:[#allocation2 + $0x3c] sm:$0xf] }
  0x54   : > { %v868_v19 = vrot.slane %v866_v11, 4  ;;  %v871_v20 = vrot.slane %v869_v12, 5  ;;  %v674_v21 = vrot.slane %v672_v15, 4  ;;  %v677_v24 = vrot.slane %v675_v16, 5  ;;  %1659 = vmatprep.subr.msk.bf16.mxu0 %vm736_vm7, %v1725_v23  ;;  %1658 = vmatprep.subr.msk.bf16.mxu1 %vm736_vm7, %v1728_v35 }
  0x55   : > { %v808_v26 = vsel %vm736_vm7, %v1725_v23, 0  ;;  %v878_v32 = vrot.slane %v1597_v28, 5  ;;  %v684_v36 = vrot.slane %v1576_v31, 5  ;;  %v738_v37 = vsel %vm736_vm7, %v1728_v35, 0 }
  0x56   : > { %540 = vrot.lane.b32.xlu1 %v533_v10, %s1773_s18  ;;  %1637 = vmatpush3.bf16.msra.mxu0 %v808_v26  ;;  %v872_v27 = vor.u32 %v871_v20, %v868_v19  ;;  %v678_v30 = vor.u32 %v677_v24, %v674_v21  ;;  %v1550_v43 = vcombine.low %v460_v41, %v1932_v38  ;;  %vm566_vm8 = vcmask 64512  }
  0x57   : > { %536 = vrot.lane.b32.xlu0 %v517_v14, %s1773_s18  ;;  %1642 = vmatprep.subr.bf16.mxu0 %v1980_v33  ;;  %vm579_vm9 = vcmask 130048   ;;  %v1551_v51 = vcombine.low %v463_v45, %v1927_v34  ;;  %v1553_v54 = vcombine.low %v469_v48, %v1941_v44  ;;  %v1552_v38 = vcombine.low %v466_v49, %v1934_v40  ;;  %v472_v44 = vld [vmem:[#allocation2 + $0x30] sm:$0xf] }
  0x58   : > { %1629 = vmatpush3.bf16.msra.mxu1 %v738_v37  ;;  %v1595_v0 = vcombine.low %v475_v56, %v1946_v58  ;;  %vm608_vm10 = vsmask.f32 4368  ;;  %v1574_v13 = vcombine.low %v472_v44, %v1949_v63  ;;  %vm729_vm11 = vcmask 195584  }
  0x59   : > { %vm2007_vm12 = vmor %vm405_vm4, %vm608_vm10  ;;  %vm1080_vm13 = vcmask 123904   ;;  %vm1354_vm14 = vcmask 1041409   ;;  %vm1357_vm15 = vcmask 1042434   ;;  %vm1360_vm0 = vcmask 1043459  }
  0x5a   : > { %564 = vrot.lane.b32.xlu1 %v557_v17, %s1772_s0 }
  0x5b   : > { %562 = vrot.lane.b32.xlu0 %v556_v18, %s1772_s0 }
  0x5e   : > { %873 = vrot.lane.b32.xlu1 %v872_v27, %s1773_s18 }
  0x5f   : > { %679 = vrot.lane.b32.xlu0 %v678_v30, %s1773_s18 }
  0x62   : > { %879 = vrot.lane.b32.xlu1 %v878_v32, %s1772_s0 }
  0x63   : > { %685 = vrot.lane.b32.xlu0 %v684_v36, %s1772_s0 }
  0xbf   : > { %v561_v39 = vpop.permute.xlu1 %560 }
  0xc0   : > { %v559_v42 = vpop.permute.xlu0 %558 }
  0xc4   : > { %v539_v46 = vpop.permute.xlu1 %538 }
  0xc5   : > { %v535_v47 = vpop.permute.xlu0 %534  ;;  %v575_v5 = vsel %vm566_vm8, %v1552_v38, %v539_v46 }
  0xc6   : > { %v569_v50 = vsel %vm566_vm8, %v1550_v43, %v535_v47 }
  0xc7   : > { %v581_v52 = vsel %vm579_vm9, %v569_v50, %v559_v42 }
  0xc8   : > { %v1563_v53 = vcombine.high %v581_v52, %v581_v52  ;;  %v541_v55 = vpop.permute.xlu1 %540  ;;  %v1562_v57 = vcombine.low %v581_v52, %v581_v52 }
  0xc9   : > { %v537_v59 = vpop.permute.xlu0 %536  ;;  %v578_v34 = vsel %vm566_vm8, %v1553_v54, %v541_v55 }
  0xca   : > { %v616_v60 = vshrl.u32 %v1563_v53, 16  ;;  %v572_v61 = vsel %vm566_vm8, %v1551_v51, %v537_v59  ;;  %v611_v6 = vshrl.u32 %v1562_v57, 16  ;;  %v619_v8 = vshll.u32 %v1563_v53, 16 }
  0xcb   : > { %v583_v62 = vsel %vm579_vm9, %v572_v61, %v561_v39 }
  0xcc   : > { %v618_v1 = vrot.slane %v616_v60, 7  ;;  %v1564_v2 = vcombine.low %v583_v62, %v583_v62  ;;  %v1565_v3 = vcombine.high %v583_v62, %v583_v62  ;;  %v565_v4 = vpop.permute.xlu1 %564  ;;  %v1570_v19 = vrot.slane %v611_v6, 11 }
  0xcd   : > { %v587_v40 = vsel %vm579_vm9, %v578_v34, %v565_v4  ;;  %v563_v7 = vpop.permute.xlu0 %562 }
  0xce   : > { %v624_v9 = vshrl.u32 %v1564_v2, 16  ;;  %v629_v10 = vshrl.u32 %v1565_v3, 16  ;;  %v1568_v11 = vcombine.low %v587_v40, %v587_v40  ;;  %v1569_v12 = vcombine.high %v587_v40, %v587_v40  ;;  %v1729_v2 = vld [vmem:[%s2162_s3 + $0x20] ss:$0 sps:$4 sm:$0xff]  }
  0xcf   : > { %v585_v58 = vsel %vm579_vm9, %v575_v5, %v563_v7  ;;  %v621_v18 = vor.u32 %v619_v8, %v618_v1  ;;  %v632_v20 = vshll.u32 %v1565_v3, 16  ;;  %v923_v40 = vsel %vm736_vm7, %v1729_v2, 0 }
  0xd0   : > { %v631_v14 = vrot.slane %v629_v10, 7  ;;  %v650_v15 = vshrl.u32 %v1568_v11, 16  ;;  %v1566_v16 = vcombine.low %v585_v58, %v585_v58  ;;  %v874_v17 = vpop.permute.xlu1 %873  ;;  %v655_v21 = vshrl.u32 %v1569_v12, 16 }
  0xd1   : > { %v1567_v22 = vcombine.high %v585_v58, %v585_v58  ;;  %v680_v23 = vpop.permute.xlu0 %679  ;;  %v1571_v25 = vrot.slane %v624_v9, 11  ;;  %v658_v26 = vshll.u32 %v1569_v12, 16  ;;  %v883_v27 = vsel %vm566_vm8, %v1595_v0, %v874_v17  ;;  %v1609_v17 = vld [vmem:[%s2163_s4] ss:$0 sm:$0xff] }
  0xd2   : > { %v637_v63 = vshrl.u32 %v1566_v16, 16  ;;  %v657_v28 = vrot.slane %v655_v21, 7  ;;  %v689_v30 = vsel %vm566_vm8, %v1574_v13, %v680_v23  ;;  %v634_v31 = vor.u32 %v632_v20, %v631_v14 }
  0xd3   : > { %v642_v29 = vshrl.u32 %v1567_v22, 16  ;;  %v1573_v32 = vrot.slane %v650_v15, 11  ;;  %v645_v36 = vshll.u32 %v1567_v22, 16  ;;  %v622_v39 = vsel %vm2007_vm12, %v1570_v19, %v621_v18 }
  0xd4   : > { %v1572_v35 = vrot.slane %v637_v63, 11  ;;  %v880_v37 = vpop.permute.xlu1 %879  ;;  %v660_v41 = vor.u32 %v658_v26, %v657_v28  ;;  %v635_v46 = vsel %vm2007_vm12, %v1571_v25, %v634_v31  ;;  %v1774_v11 = vmov 1983009808  }
  0xd5   : > { %v644_v42 = vrot.slane %v642_v29, 7  ;;  %v885_v43 = vsel %vm579_vm9, %v883_v27, %v880_v37  ;;  %v686_v45 = vpop.permute.xlu0 %685  ;;  %v1589_v50 = vcombine.low %v622_v39, %v635_v46  ;;  %v998_v12 = vunpack.c.l.s4 %v1774_v11 }
  0xd6   : > { %v1598_v47 = vcombine.low %v885_v43, %v885_v43  ;;  %v1599_v48 = vcombine.high %v885_v43, %v885_v43  ;;  %v691_v49 = vsel %vm579_vm9, %v689_v30, %v686_v45  ;;  %v661_v54 = vsel %vm2007_vm12, %v1573_v32, %v660_v41 }
  0xd7   : > { %v647_v51 = vor.u32 %v645_v36, %v644_v42  ;;  %v1577_v52 = vcombine.low %v691_v49, %v691_v49  ;;  %v1578_v53 = vcombine.high %v691_v49, %v691_v49  ;;  %1638 = vmatprep.mubr.msk.bf16.mxu0 %vm729_vm11, %v1589_v50  ;;  %v1000_v58 = vlaneseq }
  0xd8   : > { %v892_v55 = vshrl.u32 %v1598_v47, 16  ;;  %v897_v56 = vshrl.u32 %v1599_v48, 16  ;;  %v900_v38 = vshll.u32 %v1599_v48, 16  ;;  %v999_v15 = vunpack.c.0.s8 %v998_v12 }
  0xd9   : > { %v698_v57 = vshrl.u32 %v1577_v52, 16  ;;  %v703_v59 = vshrl.u32 %v1578_v53, 16  ;;  %v706_v60 = vshll.u32 %v1578_v53, 16  ;;  %v648_v61 = vsel %vm2007_vm12, %v1572_v35, %v647_v51 }
  0xda   : > { %v1600_v62 = vrot.slane %v892_v55, 11  ;;  %v899_v0 = vrot.slane %v897_v56, 7  ;;  %v1583_v1 = vcombine.low %v635_v46, %v648_v61  ;;  %v1590_v34 = vcombine.low %v648_v61, %v661_v54 }
  0xdb   : > { %v1579_v3 = vrot.slane %v698_v57, 11  ;;  %v705_v4 = vrot.slane %v703_v59, 7  ;;  %v1001_v16 = vshrl.u32 %v1000_v58, 7 }
  0xdc   : > { %v902_v44 = vor.u32 %v900_v38, %v899_v0  ;;  %1630 = vmatprep.mubr.msk.bf16.mxu1 %vm729_vm11, %v1583_v1  ;;  %1639 = vmatmul.mubr.msk.bf16.vlgmr.msra.gmra.mrb[0].mxu0 %vm729_vm11, %v1590_v34 }
  0xdd   : > { %v708_v5 = vor.u32 %v706_v60, %v705_v4  ;;  %1643 = vmatpush3.bf16.msra.mxu0 %v1980_v33  ;;  %1646 = vmatprep.mubr.msk.bf16.mxu0 %vm729_vm11, %v1590_v34  ;;  %v2042_v24 = vsub.s32 %v999_v15, %v1001_v16 }
  0xde   : > { %v903_v6 = vsel %vm2007_vm12, %v1600_v62, %v902_v44  ;;  %1660 = vmatprep.subr.msk.bf16.mxu0 %vm736_vm7, %v1729_v2 }
  0xdf   : > { %v709_v7 = vsel %vm2007_vm12, %v1579_v3, %v708_v5 }
  0xe0   : > { %v1584_v8 = vcombine.low %v661_v54, %v709_v7  ;;  %v1604_v9 = vcombine.low %v709_v7, %v903_v6 }
  0xe1   : > { %1645 = vmatpush3.bf16.msra.mxu0 %v923_v40 }
  0xe2   : > { %1631 = vmatmul.mubr.msk.bf16.vlgmr.msra.gmra.mrb[0].mxu1 %vm729_vm11, %v1584_v8 }
  0xe8   : > { %1647 = vmatmul.mubr.msk.bf16.vlgmr.msra.gmra.mrb[0].mxu0 %vm729_vm11, %v1604_v9 }
 0x1b5   : > { %v1632_v33 = vpop.f32.mrb[0].mxu1 }
 0x1b6   : > { %v774_v10 = vpop.f32.mrb[1].mxu1 }
 0x1b7   : > { %v1633_v13 = vpop.f32.mrb[2].mxu1 }
 0x1b8   : > { %v777_v14 = vpop.f32.mrb[3].mxu1 }
 0x1bb   : > { %v1648_v18 = vpop.f32.mrb[0].mxu0 }
 0x1bc   : > { %v1650_v19 = vadd.f32 %v1648_v18, %v1632_v33  ;;  %v959_v20 = vpop.f32.mrb[1].mxu0 }
 0x1bd   : > { %v1651_v21 = vadd.f32 %v959_v20, %v774_v10  ;;  %v1649_v22 = vpop.f32.mrb[2].mxu0 }
 0x1be   : > { %v986_v23 = vadd.f32 %v1650_v19, %v1609_v17  ;;  %v1652_v25 = vadd.f32 %v1649_v22, %v1633_v13  ;;  %v962_v26 = vpop.f32.mrb[3].mxu0 }
 0x1bf   : > { %v984_v63 = vadd.f32 %v1651_v21, %v1609_v17  ;;  %v1653_v27 = vadd.f32 %v962_v26, %v777_v14 }
 0x1c0   : > { %v990_v28 = vmax.f32 %v986_v23, 0.0  ;;  %v987_v29 = vadd.f32 %v1652_v25, %v1609_v17 }
 0x1c1   : > { %v988_v30 = vmax.f32 %v984_v63, 0.0  ;;  %v985_v39 = vadd.f32 %v1653_v27, %v1609_v17 }
 0x1c2   : > { %v1030_v31 = vcombine.high %v990_v28, %v990_v28  ;;  %v1037_v32 = vrot.slane %v990_v28, %v2042_v24  ;;  %v2045_v35 = vmax.f32 %v987_v29, 0.0 }
 0x1c3   : > { %v996_v36 = vcombine.high %v988_v30, %v988_v30  ;;  %v1003_v37 = vrot.slane %v988_v30, %v2042_v24  ;;  %v989_v29 = vmax.f32 %v985_v39, 0.0 }
 0x1c4   : > { %v1044_v41 = vrot.slane %v1030_v31, %v2042_v24  ;;  %v1045_v42 = vcombine.high %v1037_v32, %v1037_v32  ;;  %v1137_v43 = vsel %vm1080_vm13, %v1037_v32, -inf  ;;  %v1047_v45 = vcombine.high %v2045_v35, %v2045_v35 }
 0x1c5   : > { %v1138_v46 = vrot.slane %v1137_v43, 4  ;;  %v1010_v47 = vrot.slane %v996_v36, %v2042_v24  ;;  %v1011_v48 = vcombine.high %v1003_v37, %v1003_v37  ;;  %v1081_v49 = vsel %vm1080_vm13, %v1003_v37, -inf }
 0x1c6   : > { %v1046_v50 = vcombine.high %v1044_v41, %v1044_v41  ;;  %v1144_v51 = vsel %vm1080_vm13, %v1045_v42, -inf  ;;  %v1151_v52 = vsel %vm1080_vm13, %v1044_v41, -inf  ;;  %v1082_v53 = vrot.slane %v1081_v49, 4 }
 0x1c7   : > { %v1139_v54 = vmax.f32 %v1137_v43, %v1138_v46  ;;  %v1145_v55 = vrot.slane %v1144_v51, 4  ;;  %v1152_v56 = vrot.slane %v1151_v52, 4  ;;  %v1012_v38 = vcombine.high %v1010_v47, %v1010_v47 }
 0x1c8   : > { %v1158_v57 = vsel %vm1080_vm13, %v1046_v50, -inf  ;;  %v1083_v59 = vmax.f32 %v1081_v49, %v1082_v53  ;;  %v1088_v60 = vsel %vm1080_vm13, %v1011_v48, -inf  ;;  %v1095_v61 = vsel %vm1080_vm13, %v1010_v47, -inf }
 0x1c9   : > { %v1140_v62 = vrot.slane %v1139_v54, 2  ;;  %v1146_v0 = vmax.f32 %v1144_v51, %v1145_v55  ;;  %v1153_v1 = vmax.f32 %v1151_v52, %v1152_v56  ;;  %v1159_v34 = vrot.slane %v1158_v57, 4 }
 0x1ca   : > { %v1084_v2 = vrot.slane %v1083_v59, 2  ;;  %v1089_v3 = vrot.slane %v1088_v60, 4  ;;  %v1096_v4 = vrot.slane %v1095_v61, 4  ;;  %v1102_v44 = vsel %vm1080_vm13, %v1012_v38, -inf }
 0x1cb   : > { %v1141_v5 = vmax.f32 %v1139_v54, %v1140_v62  ;;  %v1147_v6 = vrot.slane %v1146_v0, 2  ;;  %v1154_v40 = vrot.slane %v1153_v1, 2  ;;  %v1160_v7 = vmax.f32 %v1158_v57, %v1159_v34 }
 0x1cc   : > { %v1085_v8 = vmax.f32 %v1083_v59, %v1084_v2  ;;  %v1090_v9 = vmax.f32 %v1088_v60, %v1089_v3  ;;  %v1097_v33 = vmax.f32 %v1095_v61, %v1096_v4  ;;  %v1103_v10 = vrot.slane %v1102_v44, 4 }
 0x1cd   : > { %v1142_v11 = vrot.slane %v1141_v5, 1  ;;  %v1148_v12 = vmax.f32 %v1146_v0, %v1147_v6  ;;  %v1155_v58 = vmax.f32 %v1153_v1, %v1154_v40  ;;  %v1161_v13 = vrot.slane %v1160_v7, 2 }
 0x1ce   : > { %v1086_v14 = vrot.slane %v1085_v8, 1  ;;  %v1091_v15 = vrot.slane %v1090_v9, 2  ;;  %v1098_v16 = vrot.slane %v1097_v33, 2  ;;  %v1104_v17 = vmax.f32 %v1102_v44, %v1103_v10 }
 0x1cf   : > { %v1143_v18 = vmax.f32 %v1141_v5, %v1142_v11  ;;  %v1149_v19 = vrot.slane %v1148_v12, 1  ;;  %v1156_v20 = vrot.slane %v1155_v58, 1  ;;  %v1162_v21 = vmax.f32 %v1160_v7, %v1161_v13 }
 0x1d0   : > { %v1087_v22 = vmax.f32 %v1085_v8, %v1086_v14  ;;  %v1092_v23 = vmax.f32 %v1090_v9, %v1091_v15  ;;  %v1099_v25 = vmax.f32 %v1097_v33, %v1098_v16  ;;  %v1105_v26 = vrot.slane %v1104_v17, 2 }
 0x1d1   : > { %v1150_v63 = vmax.f32 %v1148_v12, %v1149_v19  ;;  %v1157_v27 = vmax.f32 %v1155_v58, %v1156_v20  ;;  %v1163_v28 = vrot.slane %v1162_v21, 1  ;;  %v2061_v37 = vsel %vm579_vm9, %v1143_v18, -inf }
 0x1d2   : > { %v1093_v30 = vrot.slane %v1092_v23, 1  ;;  %v1100_v31 = vrot.slane %v1099_v25, 1  ;;  %v1106_v32 = vmax.f32 %v1104_v17, %v1105_v26  ;;  %v2064_v41 = vsel %vm579_vm9, %v1087_v22, -inf }
 0x1d3   : > { %v1164_v36 = vmax.f32 %v1162_v21, %v1163_v28  ;;  %v1054_v42 = vrot.slane %v2045_v35, %v2042_v24  ;;  %v2069_v43 = vsel %vm579_vm9, %v1150_v63, -inf  ;;  %v1061_v39 = vrot.slane %v1047_v45, %v2042_v24 }
 0x1d4   : > { %v1094_v46 = vmax.f32 %v1092_v23, %v1093_v30  ;;  %v1107_v47 = vrot.slane %v1106_v32, 1  ;;  %v2076_v48 = vsel %vm579_vm9, %v1157_v27, -inf  ;;  %v1013_v51 = vcombine.high %v989_v29, %v989_v29 }
 0x1d5   : > { %v1062_v49 = vcombine.high %v1054_v42, %v1054_v42  ;;  %v1165_v50 = vsel %vm1080_vm13, %v1054_v42, -inf  ;;  %v2080_v52 = vsel %vm579_vm9, %v1164_v36, -inf  ;;  %v1101_v53 = vmax.f32 %v1099_v25, %v1100_v31 }
 0x1d6   : > { %v2082_v54 = vmax.f32 %v1106_v32, %v1107_v47  ;;  %v1063_v55 = vcombine.high %v1061_v39, %v1061_v39  ;;  %v1166_v56 = vrot.slane %v1165_v50, 4  ;;  %v1179_v35 = vsel %vm1080_vm13, %v1061_v39, -inf }
 0x1d7   : > { %v1172_v38 = vsel %vm1080_vm13, %v1062_v49, -inf  ;;  %v1020_v45 = vrot.slane %v989_v29, %v2042_v24  ;;  %v2088_v57 = vsel %vm579_vm9, %v1094_v46, -inf  ;;  %v1180_v60 = vrot.slane %v1179_v35, 4 }
 0x1d8   : > { %v1173_v59 = vrot.slane %v1172_v38, 4  ;;  %v1186_v61 = vsel %vm1080_vm13, %v1063_v55, -inf  ;;  %v1167_v62 = vmax.f32 %v1165_v50, %v1166_v56  ;;  %v1027_v1 = vrot.slane %v1013_v51, %v2042_v24 }
 0x1d9   : > { %v1187_v0 = vrot.slane %v1186_v61, 4  ;;  %v1028_v34 = vcombine.high %v1020_v45, %v1020_v45  ;;  %v2093_v2 = vsel %vm579_vm9, %v1101_v53, -inf  ;;  %v1181_v4 = vmax.f32 %v1179_v35, %v1180_v60 }
 0x1da   : > { %v1174_v3 = vmax.f32 %v1172_v38, %v1173_v59  ;;  %v1109_v44 = vsel %vm1080_vm13, %v1020_v45, -inf  ;;  %v1168_v5 = vrot.slane %v1167_v62, 2  ;;  %v1029_v40 = vcombine.high %v1027_v1, %v1027_v1 }
 0x1db   : > { %v1188_v6 = vmax.f32 %v1186_v61, %v1187_v0  ;;  %v1110_v7 = vrot.slane %v1109_v44, 4  ;;  %v1182_v9 = vrot.slane %v1181_v4, 2  ;;  %v1116_v33 = vsel %vm1080_vm13, %v1028_v34, -inf }
 0x1dc   : > { %v1175_v8 = vrot.slane %v1174_v3, 2  ;;  %v1123_v10 = vsel %vm1080_vm13, %v1027_v1, -inf  ;;  %v1169_v11 = vmax.f32 %v1167_v62, %v1168_v5  ;;  %v1117_v13 = vrot.slane %v1116_v33, 4 }
 0x1dd   : > { %v1189_v12 = vrot.slane %v1188_v6, 2  ;;  %v1111_v58 = vmax.f32 %v1109_v44, %v1110_v7  ;;  %v1183_v15 = vmax.f32 %v1181_v4, %v1182_v9  ;;  %v1124_v16 = vrot.slane %v1123_v10, 4 }
 0x1de   : > { %v1176_v14 = vmax.f32 %v1174_v3, %v1175_v8  ;;  %v1130_v17 = vsel %vm1080_vm13, %v1029_v40, -inf  ;;  %v1170_v18 = vrot.slane %v1169_v11, 1  ;;  %v1118_v21 = vmax.f32 %v1116_v33, %v1117_v13 }
 0x1df   : > { %v1190_v19 = vmax.f32 %v1188_v6, %v1189_v12  ;;  %v1112_v20 = vrot.slane %v1111_v58, 2  ;;  %v1184_v23 = vrot.slane %v1183_v15, 1  ;;  %v1125_v25 = vmax.f32 %v1123_v10, %v1124_v16 }
 0x1e0   : > { %v1177_v22 = vrot.slane %v1176_v14, 1  ;;  %v1131_v26 = vrot.slane %v1130_v17, 4  ;;  %v1171_v63 = vmax.f32 %v1169_v11, %v1170_v18  ;;  %v1119_v29 = vrot.slane %v1118_v21, 2 }
 0x1e1   : > { %v1191_v27 = vrot.slane %v1190_v19, 1  ;;  %v1113_v28 = vmax.f32 %v1111_v58, %v1112_v20  ;;  %v1185_v31 = vmax.f32 %v1183_v15, %v1184_v23  ;;  %v1126_v32 = vrot.slane %v1125_v25, 2 }
 0x1e2   : > { %v1178_v30 = vmax.f32 %v1176_v14, %v1177_v22  ;;  %v1132_v36 = vmax.f32 %v1130_v17, %v1131_v26  ;;  %v1206_v46 = vsel %vm579_vm9, %v1171_v63, -inf  ;;  %v1120_v39 = vmax.f32 %v1118_v21, %v1119_v29 }
 0x1e3   : > { %v1192_v42 = vmax.f32 %v1190_v19, %v1191_v27  ;;  %v1114_v47 = vrot.slane %v1113_v28, 1  ;;  %v1207_v49 = vmax.f32 %v2061_v37, %v1206_v46  ;;  %v1212_v51 = vsel %vm579_vm9, %v1185_v31, -inf }
 0x1e4   : > { %v1209_v50 = vsel %vm579_vm9, %v1178_v30, -inf  ;;  %v1127_v53 = vmax.f32 %v1125_v25, %v1126_v32  ;;  %v1213_v56 = vmax.f32 %v2076_v48, %v1212_v51  ;;  %v1121_v60 = vrot.slane %v1120_v39, 1 }
 0x1e5   : > { %v1210_v55 = vmax.f32 %v2069_v43, %v1209_v50  ;;  %v1215_v38 = vsel %vm579_vm9, %v1192_v42, -inf  ;;  %v1115_v35 = vmax.f32 %v1113_v28, %v1114_v47  ;;  %v1221_v59 = vpack.c.bf16 %v1207_v49, %v1207_v49 }
 0x1e6   : > { %v1216_v45 = vmax.f32 %v2080_v52, %v1215_v38  ;;  %v1128_v61 = vrot.slane %v1127_v53, 1  ;;  %v1223_v37 = vpack.c.bf16 %v1213_v56, %v1213_v56  ;;  %v1133_v0 = vrot.slane %v1132_v36, 2 }
 0x1e7   : > { %v1222_v62 = vpack.c.bf16 %v1210_v55, %v1210_v55  ;;  %v1194_v1 = vsel %vm579_vm9, %v1115_v35, -inf  ;;  %v1267_v43 = vrot.slane %v1221_v59, %v2042_v24  ;;  %v1122_v3 = vmax.f32 %v1120_v39, %v1121_v60 }
 0x1e8   : > { %v1224_v34 = vpack.c.bf16 %v1216_v45, %v1216_v45  ;;  %v1129_v48 = vmax.f32 %v1127_v53, %v1128_v61  ;;  %v1281_v44 = vrot.slane %v1223_v37, %v2042_v24  ;;  %v1134_v52 = vmax.f32 %v1132_v36, %v1133_v0 }
 0x1e9   : > { %v1274_v4 = vrot.slane %v1222_v62, %v2042_v24  ;;  %v1195_v5 = vmax.f32 %v2064_v41, %v1194_v1  ;;  %v1323_v40 = vrot.slane %v1267_v43, %v2042_v24  ;;  %v1197_v7 = vsel %vm579_vm9, %v1122_v3, -inf }
 0x1ea   : > { %v1288_v6 = vrot.slane %v1224_v34, %v2042_v24  ;;  %v1200_v8 = vsel %vm579_vm9, %v1129_v48, -inf  ;;  %v1337_v33 = vrot.slane %v1281_v44, %v2042_v24  ;;  %v1135_v10 = vrot.slane %v1134_v52, 1 }
 0x1eb   : > { %v1330_v9 = vrot.slane %v1274_v4, %v2042_v24  ;;  %v1198_v11 = vmax.f32 %v2088_v57, %v1197_v7  ;;  %v1202_v12 = vsel %vm579_vm9, %v2082_v54, -inf  ;;  %v1201_v58 = vmax.f32 %v2093_v2, %v1200_v8 }
 0x1ec   : > { %v1344_v41 = vrot.slane %v1288_v6, %v2042_v24  ;;  %v1217_v13 = vpack.c.bf16 %v1195_v5, %v1195_v5  ;;  %v1351_v15 = vunpack.c.l.b16 %v1337_v33  ;;  %v1136_v16 = vmax.f32 %v1134_v52, %v1135_v10 }
 0x1ed   : > { %v1350_v14 = vunpack.c.l.b16 %v1330_v9  ;;  %v1218_v17 = vpack.c.bf16 %v1198_v11, %v1198_v11  ;;  %v1349_v18 = vunpack.c.l.b16 %v1323_v40  ;;  %v1219_v20 = vpack.c.bf16 %v1201_v58, %v1201_v58 }
 0x1ee   : > { %v1352_v19 = vunpack.c.l.b16 %v1344_v41  ;;  %v1239_v21 = vrot.slane %v1217_v13, %v2042_v24  ;;  %v1364_v23 = vrot.slane %v1351_v15, 6  ;;  %v1203_v57 = vsel %vm579_vm9, %v1136_v16, -inf }
 0x1ef   : > { %v1362_v22 = vrot.slane %v1350_v14, 7  ;;  %v1246_v54 = vrot.slane %v1218_v17, %v2042_v24  ;;  %v1204_v26 = vmax.f32 %v1202_v12, %v1203_v57  ;;  %v1253_v2 = vrot.slane %v1219_v20, %v2042_v24 }
 0x1f0   : > { %v1366_v25 = vrot.slane %v1352_v19, 5  ;;  %v1295_v27 = vrot.slane %v1239_v21, %v2042_v24 }
 0x1f1   : > { %v1363_v63 = vsel %vm1354_vm14, %v1362_v22, %v1349_v18  ;;  %v1302_v28 = vrot.slane %v1246_v54, %v2042_v24  ;;  %v1220_v30 = vpack.c.bf16 %v1204_v26, %v1204_v26  ;;  %v1309_v31 = vrot.slane %v1253_v2, %v2042_v24 }
 0x1f2   : > { %v1365_v29 = vsel %vm1357_vm15, %v1364_v23, %v1363_v63  ;;  %v1345_v39 = vunpack.c.l.b16 %v1295_v27 }
 0x1f3   : > { %v1367_v32 = vsel %vm1360_vm0, %v1366_v25, %v1365_v29  ;;  %v1346_v36 = vunpack.c.l.b16 %v1302_v28  ;;  %v1260_v46 = vrot.slane %v1220_v30, %v2042_v24  ;;  %v1347_v47 = vunpack.c.l.b16 %v1309_v31 }
 0x1f4   : > { %v1369_v42 = vpack.c.b16 %v1367_v32, %v1367_v32 }
 0x1f5   : > { %v1353_v49 = vrot.slane %v1346_v36, 7  ;;  %v1316_v51 = vrot.slane %v1260_v46, %v2042_v24  ;;  %v1356_v53 = vrot.slane %v1347_v47, 6 }
 0x1f6   : > { %v1383_v50 = vrot.slane %v1369_v42, %v2042_v24 }
 0x1f7   : > { %v1355_v55 = vsel %vm1354_vm14, %v1353_v49, %v1345_v39  ;;  %v1348_v56 = vunpack.c.l.b16 %v1316_v51 }
 0x1f8   : > { %1387 = vst.msk [vmem:[%s1917_s12 + $0x2] sm:$0x3] %vm1080_vm13, %v1383_v50  ;;  %v1358_v38 = vsel %vm1357_vm15, %v1356_v53, %v1355_v55 }
 0x1f9   : > { %v1359_v35 = vrot.slane %v1348_v56, 5 }
 0x1fb   : > { %v1361_v45 = vsel %vm1360_vm0, %v1359_v35, %v1358_v38 }
 0x1fc   : > { %v1368_v59 = vpack.c.b16 %v1361_v45, %v1361_v45 }
 0x1fe   : > { %v1376_v60 = vrot.slane %v1368_v59, %v2042_v24 }
 0x200   : > { %1386 = vst.msk [vmem:[%s1917_s12] sm:$0x3] %vm1080_vm13, %v1376_v60 }
 0x201 PF: > { %s15_s22 = sadd.s32 1, %s1768_s22   ;;  %s2174_s18 = smov %s1760_s20 }
 0x202   : > { %p12_p1 = scmp.ge.s32.totalorder %s15_s22, 6   ;;  %s2175_s19 = smov %s1764_s21 }
 0x203   : > { %s2176_s20 = smov %s2179_s23  ;;  %s2177_s21 = smov %s2183_s24 }
 0x204   :  { %14 = sbr.rel (!%p12_p1) target bundleno = 3 (0x3), region = 97 }

// kernel: _lambda_.4
= control target key start
LH: loop header
LB: loop body
LE: loop exit
PB: predicated region body
PF: predicated region fallthrough
CT: control target
= control target key end

     0   :  { %s3242_s18 = smov 0   ;;  %s3244_s19 = smov 0   ;;  %s4072_s0 = inlined_call_operand.vmem [shape: bf16[2,16,16,8], index: 0, kind: input, shape index: {}, may-alias: {0,1,2}]   ;;  %s4073_s1 = inlined_call_operand.vmem [shape: bf16[2,16,16,8], index: 1, kind: input, shape index: {}, may-alias: {0,1,2}]   ;;  %s4074_s2 = inlined_call_operand.vmem [shape: bf16[2,16,16,8], index: 2, kind: input, shape index: {}, may-alias: {0,1,2}]   ;;  %s4075_s3 = inlined_call_operand.vmem [shape: bf16[3,24,8], index: 3, kind: input, shape index: {}]   ;;  %s4076_s4 = inlined_call_operand.vmem [shape: f32[1,8], index: 4, kind: input, shape index: {}]   ;;  %s4077_s5 = inlined_call_operand.vmem [shape: bf16[2,8,8,8], index: 5, kind: output, shape index: {}]  }
   0x1   :  { %s3246_s20 = smov 0   ;;  %s3248_s21 = smov 0  }
   0x2   :  { %s3250_s22 = smov 0  }
   0x3 LB: > { %s24_s23 = sadd.s32 1, %s3197_s20  ;;  %s27_s24 = sadd.s32 1, %s3201_s21  ;;  %s3205_s22 = sphi %s3250_s22, %s15_s22   ;;  %s3201_s21 = sphi %s3248_s21, %s4086_s21   ;;  %s3197_s20 = sphi %s3246_s20, %s4085_s20   ;;  %s3193_s19 = sphi %s3244_s19, %s4084_s19   ;;  %s3189_s18 = sphi %s3242_s18, %s4083_s18  }
   0x4   : > { %p25_p0 = scmp.ge.s32.totalorder %s24_s23, 2  ;;  %p2811_p1 = scmp.ge.s32.totalorder %s3205_s22, 1 }
   0x5   : > { %p273_p2 = scmp.lt.s32.totalorder %s3205_s22, 5 }
   0x6   : > { %s4088_s23 = smov (%p25_p0, %s24_s23), 0  ;;  %s4090_s24 = smov (!%p25_p0, %s27_s24), %s3201_s21 }
   0x7   : > { %p274_p3 = pnand %p2811_p1, %p273_p2  ;;  %p29_p4 = scmp.ge.s32.totalorder %s4090_s24, 2 }
   0x8   : > { %vm392_vm0 = vcmask (!%p274_p3), 60419   ;;  %vm393_vm1 = vsmask.f32 (!%p274_p3), 7950  ;;  %v395_v0 = vld [vmem:[#allocation2] sm:$0x8] (!%p274_p3)  ;;  %vm425_vm2 = vcmask (!%p274_p3), 61444  }
   0x9   : > { %s4092_s24 = smov (%p29_p4, %s4090_s24), 0  ;;  %277 = sbr.rel (%p274_p3) target bundleno = 672 (0x2a0), region = 40 }
   0xa   : > { %vm3276_vm3 = vmand (!%p274_p3), %vm392_vm0, %vm393_vm1  ;;  %v398_v2 = vld [vmem:[#allocation2 + $0x10] sm:$0x8] (!%p274_p3)  ;;  %v401_v3 = vld [vmem:[#allocation2 + $0x20] sm:$0x8] (!%p274_p3)  ;;  %vm426_vm4 = vsmask.f32 (!%p274_p3), 4352 }
   0xb   : > { %v396_v4 = vsel (!%p274_p3), %vm3276_vm3, 0, %v395_v0  ;;  %v399_v5 = vsel (!%p274_p3), %vm3276_vm3, 0, %v398_v2  ;;  %v402_v6 = vsel (!%p274_p3), %vm3276_vm3, 0, %v401_v3  ;;  %v404_v7 = vld [vmem:[#allocation2 + $0x30] sm:$0x8] (!%p274_p3)  ;;  %s3287_s25 = sshll.u32 (!%p274_p3), %s3189_s18, 3  ;;  %vm3298_vm5 = vmand (!%p274_p3), %vm425_vm2, %vm426_vm4 }
   0xc   : > { %397 = vst [vmem:[#allocation2] sm:$0x8] (!%p274_p3), %v396_v4  ;;  %400 = vst [vmem:[#allocation2 + $0x10] sm:$0x8] (!%p274_p3), %v399_v5  ;;  %v405_v8 = vsel (!%p274_p3), %vm3276_vm3, 0, %v404_v7  ;;  %p337_p5 = scmp.lt.s32.totalorder (!%p274_p3), %s3193_s19, 1 }
   0xd   : > { %403 = vst [vmem:[#allocation2 + $0x20] sm:$0x8] (!%p274_p3), %v402_v6  ;;  %v407_v9 = vld [vmem:[#allocation2 + $0x40] sm:$0x8] (!%p274_p3)  ;;  %v410_v10 = vld [vmem:[#allocation2 + $0x50] sm:$0x8] (!%p274_p3) }
   0xe   : > { %406 = vst [vmem:[#allocation2 + $0x30] sm:$0x8] (!%p274_p3), %v405_v8  ;;  %v408_v11 = vsel (!%p274_p3), %vm3276_vm3, 0, %v407_v9  ;;  %v411_v12 = vsel (!%p274_p3), %vm3276_vm3, 0, %v410_v10  ;;  %v413_v13 = vld [vmem:[#allocation2 + $0x60] sm:$0x8] (!%p274_p3) }
   0xf   : > { %v416_v14 = vld [vmem:[#allocation2 + $0x70] sm:$0x8] (!%p274_p3)  ;;  %409 = vst [vmem:[#allocation2 + $0x40] sm:$0x8] (!%p274_p3), %v408_v11  ;;  %412 = vst [vmem:[#allocation2 + $0x50] sm:$0x8] (!%p274_p3), %v411_v12 }
  0x10   : > { %v414_v16 = vsel %vm3276_vm3, 0, %v413_v13  ;;  %v417_v17 = vsel %vm3276_vm3, 0, %v416_v14  ;;  %v419_v18 = vld [vmem:[#allocation2 + $0x80] sm:$0x8]  ;;  %v422_v19 = vld [vmem:[#allocation2 + $0x90] sm:$0x8] }
  0x11   : > { %415 = vst [vmem:[#allocation2 + $0x60] sm:$0x8] %v414_v16  ;;  %418 = vst [vmem:[#allocation2 + $0x70] sm:$0x8] %v417_v17  ;;  %v420_v20 = vsel %vm3276_vm3, 0, %v419_v18  ;;  %v423_v21 = vsel %vm3276_vm3, 0, %v422_v19 }
  0x12   : > { %v428_v22 = vld [vmem:[#allocation2 + $0x8] sm:$0x10]  ;;  %v431_v23 = vld [vmem:[#allocation2 + $0x18] sm:$0x10]  ;;  %421 = vst [vmem:[#allocation2 + $0x80] sm:$0x8] %v420_v20 }
  0x13   : > { %424 = vst [vmem:[#allocation2 + $0x90] sm:$0x8] %v423_v21  ;;  %v429_v24 = vsel %vm3298_vm5, 0, %v428_v22  ;;  %v432_v25 = vsel %vm3298_vm5, 0, %v431_v23  ;;  %v434_v26 = vld [vmem:[#allocation2 + $0x28] sm:$0x10] }
  0x14   : > { %v437_v27 = vld [vmem:[#allocation2 + $0x38] sm:$0x10]  ;;  %430 = vst [vmem:[#allocation2 + $0x8] sm:$0x10] %v429_v24  ;;  %433 = vst [vmem:[#allocation2 + $0x18] sm:$0x10] %v432_v25 }
  0x15   : > { %v435_v28 = vsel %vm3298_vm5, 0, %v434_v26  ;;  %v438_v29 = vsel %vm3298_vm5, 0, %v437_v27  ;;  %v440_v30 = vld [vmem:[#allocation2 + $0x48] sm:$0x10]  ;;  %v443_v31 = vld [vmem:[#allocation2 + $0x58] sm:$0x10] }
  0x16   : > { %436 = vst [vmem:[#allocation2 + $0x28] sm:$0x10] %v435_v28  ;;  %439 = vst [vmem:[#allocation2 + $0x38] sm:$0x10] %v438_v29  ;;  %v441_v32 = vsel %vm3298_vm5, 0, %v440_v30  ;;  %v444_v33 = vsel %vm3298_vm5, 0, %v443_v31 }
  0x17   : > { %v446_v34 = vld [vmem:[#allocation2 + $0x68] sm:$0x10]  ;;  %v449_v35 = vld [vmem:[#allocation2 + $0x78] sm:$0x10]  ;;  %442 = vst [vmem:[#allocation2 + $0x48] sm:$0x10] %v441_v32 }
  0x18   : > { %445 = vst [vmem:[#allocation2 + $0x58] sm:$0x10] %v444_v33  ;;  %v447_v36 = vsel %vm3298_vm5, 0, %v446_v34  ;;  %v450_v37 = vsel %vm3298_vm5, 0, %v449_v35  ;;  %v452_v38 = vld [vmem:[#allocation2 + $0x88] sm:$0x10] }
  0x19   : > { %v455_v39 = vld [vmem:[#allocation2 + $0x98] sm:$0x10]  ;;  %448 = vst [vmem:[#allocation2 + $0x68] sm:$0x10] %v447_v36  ;;  %451 = vst [vmem:[#allocation2 + $0x78] sm:$0x10] %v450_v37 }
  0x1a   : > { %v453_v40 = vsel %vm3298_vm5, 0, %v452_v38  ;;  %v456_v41 = vsel %vm3298_vm5, 0, %v455_v39  ;;  %s4094_s19 = smov (!%p337_p5, %s3193_s19), 1  ;;  %p339_p6 = scmp.lt.s32.totalorder %s3287_s25, 15  ;;  %vm539_vm6 = vcmask 64516   ;;  %vm541_vm7 = vcmask 60416  }
  0x1b   : > { %454 = vst [vmem:[#allocation2 + $0x88] sm:$0x10] %v453_v40  ;;  %457 = vst [vmem:[#allocation2 + $0x98] sm:$0x10] %v456_v41  ;;  %s2817_s26 = sadd.s32 4294967295, %s3287_s25  ;;  %s3338_s27 = sshll.u32 %s4094_s19, 5 }
  0x1c   : > { %p349_p7 = scmp.gt.s32.totalorder %s2817_s26, 0  ;;  %p2818_p8 = scmp.lt.s32.totalorder %s2817_s26, 15 }
  0x1d   : > { %s340_s28 = scalar_select %p339_p6, %s3287_s25, 15 }
  0x1e   : > { %s350_s29 = scalar_select %p349_p7, %s2817_s26, 0 }
  0x1f   : > { %s2813_s30 = sshll.u32 %s340_s28, 1  ;;  %s365_s7 = sadd.s32 8, %s3287_s25 }
  0x20   : > { %s343_s6 = sadd.s32 %s3338_s27, %s2813_s30  ;;  %p3343_p9 = scmp.lt.s32.totalorder %s365_s7, 15 }
  0x21   : > { %s2815_s8 = sshll.u32 %s343_s6, 2  ;;  %s2833_s13 = sshll.u32 %s3189_s18, 2 }
  0x22   : > { %s3350_s12 = scalar_lea.vmem %s4072_s0, %s2815_s8  ;;  %s4096_s29 = smov (!%p2818_p8, %s350_s29), 15 }
  0x23   : > { %v3140_v42 = vld [vmem:[%s3350_s12] ss:$0 sps:$4 sm:$0xff]   ;;  %s4098_s7 = smov (!%p3343_p9, %s365_s7), 15  ;;  %v3141_v43 = vld [vmem:[%s3350_s12 + $0x4] ss:$0 sps:$4 sm:$0xff]   ;;  %s2823_s14 = sshll.u32 %s4096_s29, 1 }
  0x24   : > { %540 = vst.msk [vmem:[#allocation2 + $0x10] sm:$0xf0] %vm539_vm6, %v3140_v42  ;;  %v3142_v44 = vld [vmem:[%s3350_s12 + $0x8] ss:$0 sps:$4 sm:$0xff]   ;;  %s357_s15 = sadd.s32 %s2823_s14, %s3338_s27  ;;  %p384_p10 = scmp.lt.s32.totalorder %s2833_s13, 7 }
  0x25   : > { %542 = vst.msk [vmem:[#allocation2 + $0x18] sm:$0xf] %vm541_vm7, %v3141_v43  ;;  %v3143_v45 = vld [vmem:[%s3350_s12 + $0xc] ss:$0 sps:$4 sm:$0xff]   ;;  %s2825_s16 = sshll.u32 %s357_s15, 2  ;;  %s2834_s17 = sshll.u32 %s4094_s19, 3 }
  0x26   : > { %543 = vst.msk [vmem:[#allocation2 + $0x20] sm:$0xf0] %vm539_vm6, %v3142_v44  ;;  %v3144_v46 = vld [vmem:[%s3350_s12 + $0x10] ss:$0 sps:$4 sm:$0xff]   ;;  %s3368_s28 = scalar_lea.vmem %s4073_s1, %s2825_s16  ;;  %v3145_v47 = vld [vmem:[%s3350_s12 + $0x14] ss:$0 sps:$4 sm:$0xff]  }
  0x27   : > { %544 = vst.msk [vmem:[#allocation2 + $0x28] sm:$0xf] %vm541_vm7, %v3143_v45  ;;  %s4100_s7 = smov (!%p3343_p9, %s4098_s7), 15  ;;  %v3146_v48 = vld [vmem:[%s3350_s12 + $0x18] ss:$0 sps:$4 sm:$0xff]   ;;  %s4102_s13 = smov (!%p384_p10, %s2833_s13), 7 }
  0x28   : > { %545 = vst.msk [vmem:[#allocation2 + $0x30] sm:$0xf0] %vm539_vm6, %v3144_v46  ;;  %v3147_v49 = vld [vmem:[%s3350_s12 + $0x1c] ss:$0 sps:$4 sm:$0xff]   ;;  %s2830_s19 = sshll.u32 %s4100_s7, 1  ;;  %s387_s30 = sadd.s32 %s2834_s17, %s4102_s13 }
  0x29   : > { %546 = vst.msk [vmem:[#allocation2 + $0x38] sm:$0xf] %vm541_vm7, %v3145_v47  ;;  %v3148_v50 = vld [vmem:[%s3350_s12 + $0x20] ss:$0 sps:$4 sm:$0xff]   ;;  %s374_s29 = sadd.s32 %s2830_s19, %s3338_s27  ;;  %548 = vst.msk [vmem:[#allocation2 + $0x48] sm:$0xf] %vm541_vm7, %v3147_v49 }
  0x2a   : > { %547 = vst.msk [vmem:[#allocation2 + $0x40] sm:$0xf0] %vm539_vm6, %v3146_v48  ;;  %v3149_v51 = vld [vmem:[%s3350_s12 + $0x24] ss:$0 sps:$4 sm:$0xff]   ;;  %v3150_v52 = vld [vmem:[%s3350_s12 + $0x28] ss:$0 sps:$4 sm:$0xff]  }
  0x2b   : > { %s2832_s6 = sshll.u32 %s374_s29, 2  ;;  %s2835_s8 = sshll.u32 %s387_s30, 2  ;;  %549 = vst.msk [vmem:[#allocation2 + $0x50] sm:$0xf0] %vm539_vm6, %v3148_v50  ;;  %v3151_v53 = vld [vmem:[%s3350_s12 + $0x2c] ss:$0 sps:$4 sm:$0xff]  }
  0x2c   : > { %s376_s10 = scalar_lea.vmem %s4074_s2, %s2832_s6  ;;  %s3392_s27 = scalar_lea.vmem %s4077_s5, %s2835_s8  ;;  %550 = vst.msk [vmem:[#allocation2 + $0x58] sm:$0xf] %vm541_vm7, %v3149_v51  ;;  %v3152_v54 = vld [vmem:[%s3350_s12 + $0x30] ss:$0 sps:$4 sm:$0xff]   ;;  %552 = vst.msk [vmem:[#allocation2 + $0x68] sm:$0xf] %vm541_vm7, %v3151_v53 }
  0x2d   : > { %551 = vst.msk [vmem:[#allocation2 + $0x60] sm:$0xf0] %vm539_vm6, %v3150_v52  ;;  %v3153_v55 = vld [vmem:[%s3350_s12 + $0x34] ss:$0 sps:$4 sm:$0xff]   ;;  %v3154_v56 = vld [vmem:[%s3350_s12 + $0x38] ss:$0 sps:$4 sm:$0xff]  }
  0x2e   : > { %553 = vst.msk [vmem:[#allocation2 + $0x70] sm:$0xf0] %vm539_vm6, %v3152_v54  ;;  %v3155_v57 = vld [vmem:[%s3350_s12 + $0x3c] ss:$0 sps:$4 sm:$0xff]   ;;  %555 = vst.msk [vmem:[#allocation2 + $0x80] sm:$0xf0] %vm539_vm6, %v3154_v56 }
  0x2f   : > { %554 = vst.msk [vmem:[#allocation2 + $0x78] sm:$0xf] %vm541_vm7, %v3153_v55  ;;  %556 = vst.msk [vmem:[#allocation2 + $0x88] sm:$0xf] %vm541_vm7, %v3155_v57  ;;  %p2852_p11 = scmp.le.s32.totalorder %s3189_s18, 0 }
  0x30   : > { %v3156_v58 = vld [vmem:[%s3368_s28] ss:$0 sps:$4 sm:$0xff] (!%p2852_p11)   ;;  %v3157_v59 = vld [vmem:[%s3368_s28 + $0x4] ss:$0 sps:$4 sm:$0xff] (!%p2852_p11)  }
  0x31   : > { %560 = sbr.rel (%p2852_p11) target bundleno = 56 (0x38), region = 44  ;;  %571 = vst.msk [vmem:[#allocation2] sm:$0xf0] (!%p2852_p11), %vm539_vm6, %v3156_v58 }
  0x32   : > { %572 = vst.msk [vmem:[#allocation2 + $0x8] sm:$0xf] (!%p2852_p11), %vm541_vm7, %v3157_v59 }
  0x38 PF: > { %p2855_p12 = scmp.ne.s32.totalorder %s3189_s18, 0 }
  0x39   : > { %v3207_v60 = vmov (!%p2855_p12), 0  }
  0x3a   : > { %576 = sbr.rel (%p2855_p12) target bundleno = 65 (0x41), region = 48  ;;  %577 = vst.msk [vmem:[#allocation2] sm:$0xf0] (!%p2855_p12), %vm539_vm6, %v3207_v60 }
  0x3b   : > { %578 = vst.msk [vmem:[#allocation2 + $0x8] sm:$0xf] (!%p2855_p12), %vm541_vm7, %v3207_v60 }
  0x41 PF: > { %p2856_p13 = scmp.ge.s32.totalorder %s3189_s18, 1 }
  0x42   : > { %v3158_v61 = vld [vmem:[%s376_s10] ss:$0 sps:$4 sm:$0xff] (!%p2856_p13)   ;;  %v3159_v62 = vld [vmem:[%s376_s10 + $0x4] ss:$0 sps:$4 sm:$0xff] (!%p2856_p13)  }
  0x43   : > { %582 = sbr.rel (%p2856_p13) target bundleno = 74 (0x4a), region = 52  ;;  %594 = vst.msk [vmem:[#allocation2 + $0x90] sm:$0xf0] (!%p2856_p13), %vm539_vm6, %v3158_v61 }
  0x44   : > { %595 = vst.msk [vmem:[#allocation2 + $0x98] sm:$0xf] (!%p2856_p13), %vm541_vm7, %v3159_v62 }
  0x4a PF: > { %p2859_p0 = scmp.ne.s32.totalorder %s3189_s18, 1 }
  0x4b   : > { %v3208_v63 = vmov (!%p2859_p0), 0  }
  0x4c   : > { %599 = sbr.rel (%p2859_p0) target bundleno = 83 (0x53), region = 56  ;;  %601 = vst.msk [vmem:[#allocation2 + $0x90] sm:$0xf0] (!%p2859_p0), %vm539_vm6, %v3208_v63 }
  0x4d   : > { %602 = vst.msk [vmem:[#allocation2 + $0x98] sm:$0xf] (!%p2859_p0), %vm541_vm7, %v3208_v63 }
  0x53 PF: > { %v3419_v0 = vld [vmem:[#allocation2 + $0x18] sm:$0xff]  ;;  %v3421_v1 = vld [vmem:[#allocation2 + $0x8] sm:$0xff]  ;;  %v3429_v7 = vld [vmem:[#allocation2] sm:$0xff]  ;;  %vm624_vm8 = vsmask.f32 7424  ;;  %s3209_s18 = smov 8  }
  0x54   : > { %v3423_v2 = vld [vmem:[#allocation2 + $0x28] sm:$0xff]  ;;  %v648_v3 = vshll.u32 %v3419_v0, 16  ;;  %v652_v4 = vshrl.u32 %v3419_v0, 16  ;;  %v633_v5 = vshll.u32 %v3421_v1, 16  ;;  %v637_v6 = vshrl.u32 %v3421_v1, 16  ;;  %v3431_v8 = vld [vmem:[#allocation2 + $0x10] sm:$0xff] }
  0x55   : > { %v663_v9 = vshll.u32 %v3423_v2, 16  ;;  %v667_v10 = vshrl.u32 %v3423_v2, 16  ;;  %v626_v11 = vshrl.u32 %v3429_v7, 16  ;;  %v628_v12 = vshll.u32 %v3429_v7, 16  ;;  %v3437_v13 = vld [vmem:[#allocation2 + $0x20] sm:$0xff]  ;;  %v3161_v36 = vld [vmem:[%s4075_s3 + $0xc] sm:$0xff]  }
  0x56   : > { %v650_v14 = vrot.slane %v648_v3, 1  ;;  %v635_v15 = vrot.slane %v633_v5, 1  ;;  %v641_v16 = vshrl.u32 %v3431_v8, 16  ;;  %v643_v17 = vshll.u32 %v3431_v8, 16  ;;  %v3449_v31 = vld [vmem:[%s4075_s3] sm:$0xff]   ;;  %v3462_v37 = vld [vmem:[#allocation2 + $0x30] sm:$0xff]  ;;  %2995 = vmatprep.subr.bf16.mxu1 %v3161_v36 }
  0x57   : > { %v665_v18 = vrot.slane %v663_v9, 1  ;;  %v630_v19 = vrot.slane %v628_v12, 1  ;;  %v656_v20 = vshrl.u32 %v3437_v13, 16  ;;  %v658_v21 = vshll.u32 %v3437_v13, 16  ;;  %3015 = vmatprep.subr.bf16.mxu0 %v3449_v31  ;;  %v3469_v41 = vld [vmem:[#allocation2 + $0x38] sm:$0xff]  ;;  %2996 = vmatpush3.bf16.msra.mxu1 %v3161_v36  ;;  %v3472_v43 = vld [vmem:[#allocation2 + $0x40] sm:$0xff] }
  0x58   : > { %v654_v22 = vor.u32 %v652_v4, %v650_v14  ;;  %v639_v23 = vor.u32 %v637_v6, %v635_v15  ;;  %v645_v24 = vrot.slane %v643_v17, 1  ;;  %v795_v34 = vrot.slane %v3421_v1, 1  ;;  %3016 = vmatpush3.bf16.msra.mxu0 %v3449_v31  ;;  %s3210_s17 = smov 16   ;;  %v3481_v50 = vld [vmem:[#allocation2 + $0x48] sm:$0xff]  ;;  %v3163_v4 = vld [vmem:[%s4075_s3 + $0x14] ss:$0 sps:$4 sm:$0xff]  }
  0x59   : > { %v631_v25 = vor.u32 %v630_v19, %v626_v11  ;;  %v660_v26 = vrot.slane %v658_v21, 1  ;;  %v669_v27 = vor.u32 %v667_v10, %v665_v18  ;;  %v794_v35 = vrot.slane %v3429_v7, 1  ;;  %v3496_v62 = vld [vmem:[%s4075_s3 + $0x8] ss:$0 sps:$4 sm:$0xff]   ;;  %v3502_v5 = vld [vmem:[#allocation2 + $0x50] sm:$0xff]  ;;  %v3520_v17 = vld [vmem:[#allocation2 + $0x60] sm:$0xff] }
  0x5a   : > { %751 = vrot.lane.b32.xlu1 %v654_v22, %s3209_s18  ;;  %747 = vrot.lane.b32.xlu0 %v639_v23, %s3209_s18  ;;  %v646_v29 = vor.u32 %v645_v24, %v641_v16  ;;  %vm793_vm9 = vcmask 1046528   ;;  %v798_v39 = vrot.slane %v3419_v0, 1  ;;  %v797_v40 = vrot.slane %v3431_v8, 1 }
  0x5b   : > { %v636_v28 = vsel %vm624_vm8, %v631_v25, %v635_v15  ;;  %v661_v30 = vor.u32 %v660_v26, %v656_v20  ;;  %v796_v38 = vsel %vm793_vm9, %v794_v35, %v795_v34  ;;  %v673_v42 = vshll.u32 %v3462_v37, 16  ;;  %v3536_v25 = vld [vmem:[#allocation2 + $0x68] sm:$0xff] }
  0x5c   : > { %v651_v32 = vsel %vm624_vm8, %v646_v29, %v650_v14  ;;  %v801_v44 = vrot.slane %v3423_v2, 1  ;;  %v800_v45 = vrot.slane %v3437_v13, 1  ;;  %v678_v46 = vshll.u32 %v3469_v41, 16  ;;  %v3513_v14 = vld [vmem:[#allocation2 + $0x58] sm:$0xff] }
  0x5d   : > { %v666_v33 = vsel %vm624_vm8, %v661_v30, %v665_v18  ;;  %v799_v47 = vsel %vm793_vm9, %v797_v40, %v798_v39  ;;  %v671_v48 = vshrl.u32 %v3462_v37, 16  ;;  %v675_v49 = vrot.slane %v673_v42, 1  ;;  %v3526_v18 = vld [vmem:[%s4075_s3 + $0x18] sm:$0xff]   ;;  %v3550_v42 = vld [vmem:[#allocation2 + $0x70] sm:$0xff] }
  0x5e   : > { %755 = vrot.lane.b32.xlu1 %v669_v27, %s3209_s18  ;;  %745 = vrot.lane.b32.xlu0 %v636_v28, %s3209_s18  ;;  %v688_v51 = vshll.u32 %v3472_v43, 16  ;;  %v680_v52 = vrot.slane %v678_v46, 1  ;;  %v682_v53 = vshrl.u32 %v3469_v41, 16  ;;  %v693_v54 = vshll.u32 %v3481_v50, 16 }
  0x5f   : > { %v802_v55 = vsel %vm793_vm9, %v800_v45, %v801_v44  ;;  %v676_v56 = vor.u32 %v675_v49, %v671_v48  ;;  %v686_v57 = vshrl.u32 %v3472_v43, 16  ;;  %v697_v61 = vshrl.u32 %v3481_v50, 16  ;;  %v3557_v48 = vld [vmem:[#allocation2 + $0x78] sm:$0xff] }
  0x60   : > { %v690_v58 = vrot.slane %v688_v51, 1  ;;  %v684_v59 = vor.u32 %v682_v53, %v680_v52  ;;  %v695_v60 = vrot.slane %v693_v54, 1  ;;  %vm1128_vm10 = vcmask 1043456  }
  0x61   : > { %v681_v63 = vsel %vm624_vm8, %v676_v56, %v680_v52  ;;  %v804_v9 = vrot.slane %v3469_v41, 1  ;;  %v803_v10 = vrot.slane %v3462_v37, 1  ;;  %v3510_v11 = vsel %vm1128_vm10, %v3496_v62, 0  ;;  %3092 = vmatprep.subr.msk.bf16.mxu0 %vm1128_vm10, %v3496_v62  ;;  %3091 = vmatprep.subr.msk.bf16.mxu1 %vm1128_vm10, %v3163_v4 }
  0x62   : > { %749 = vrot.lane.b32.xlu1 %v651_v32, %s3209_s18  ;;  %753 = vrot.lane.b32.xlu0 %v666_v33, %s3209_s18  ;;  %v691_v3 = vor.u32 %v690_v58, %v686_v57  ;;  %v699_v6 = vor.u32 %v697_v61, %v695_v60  ;;  %v703_v15 = vshll.u32 %v3502_v5, 16  ;;  %v1130_v16 = vsel %vm1128_vm10, %v3163_v4, 0  ;;  %v3567_v57 = vld [vmem:[#allocation2 + $0x80] sm:$0xff] }
  0x63   : > { %3018 = vmatpush3.bf16.msra.mxu0 %v3510_v11  ;;  %2998 = vmatpush3.bf16.msra.mxu1 %v1130_v16  ;;  %v805_v19 = vsel %vm793_vm9, %v803_v10, %v804_v9  ;;  %v807_v20 = vrot.slane %v3481_v50, 1  ;;  %v708_v21 = vshll.u32 %v3513_v14, 16  ;;  %v806_v22 = vrot.slane %v3472_v43, 1 }
  0x64   : > { %v696_v12 = vsel %vm624_vm8, %v691_v3, %v695_v60  ;;  %3055 = vmatprep.subr.bf16.mxu1 %v3449_v31  ;;  %v701_v23 = vshrl.u32 %v3502_v5, 16  ;;  %v705_v24 = vrot.slane %v703_v15, 1  ;;  %v718_v26 = vshll.u32 %v3520_v17, 16  ;;  %3035 = vmatprep.subr.bf16.mxu0 %v3526_v18 }
  0x65   : > { %v710_v27 = vrot.slane %v708_v21, 1  ;;  %v712_v28 = vshrl.u32 %v3513_v14, 16  ;;  %v723_v29 = vshll.u32 %v3536_v25, 16  ;;  %v808_v30 = vsel %vm793_vm9, %v806_v22, %v807_v20 }
  0x66   : > { %820 = vrot.lane.b32.xlu1 %v795_v34, %s3210_s17  ;;  %818 = vrot.lane.b32.xlu0 %v796_v38, %s3210_s17  ;;  %v706_v32 = vor.u32 %v705_v24, %v701_v23  ;;  %v716_v33 = vshrl.u32 %v3520_v17, 16  ;;  %v720_v34 = vrot.slane %v718_v26, 1  ;;  %v727_v38 = vshrl.u32 %v3536_v25, 16  ;;  %v3589_v24 = vld [vmem:[#allocation2 + $0x98] sm:$0xff] }
  0x67   : > { %v714_v35 = vor.u32 %v712_v28, %v710_v27  ;;  %v725_v36 = vrot.slane %v723_v29, 1  ;;  %v810_v46 = vrot.slane %v3513_v14, 1  ;;  %v733_v49 = vshll.u32 %v3550_v42, 16 }
  0x68   : > { %v721_v40 = vor.u32 %v720_v34, %v716_v33  ;;  %v813_v51 = vrot.slane %v3536_v25, 1  ;;  %v738_v52 = vshll.u32 %v3557_v48, 16  ;;  %v812_v54 = vrot.slane %v3520_v17, 1 }
  0x69   : > { %v735_v56 = vrot.slane %v733_v49, 1  ;;  %v1042_v3 = vshll.u32 %v3567_v57, 16  ;;  %v1040_v15 = vshrl.u32 %v3567_v57, 16  ;;  %v1349_v29 = vshll.u32 %v3589_v24, 16 }
  0x6a   : > { %824 = vrot.lane.b32.xlu1 %v798_v39, %s3210_s17  ;;  %822 = vrot.lane.b32.xlu0 %v799_v47, %s3210_s17  ;;  %v711_v39 = vsel %vm624_vm8, %v706_v32, %v710_v27  ;;  %v726_v45 = vsel %vm624_vm8, %v721_v40, %v725_v36  ;;  %v809_v47 = vrot.slane %v3502_v5, 1  ;;  %v740_v58 = vrot.slane %v738_v52, 1 }
  0x6b   : > { %v814_v60 = vsel %vm793_vm9, %v812_v54, %v813_v51  ;;  %v1044_v16 = vrot.slane %v1042_v3, 1  ;;  %v1060_v32 = vrot.slane %v3567_v57, 1  ;;  %vm850_vm11 = vcmask 64512  }
  0x6c   : > { %v811_v53 = vsel %vm793_vm9, %v809_v47, %v810_v46  ;;  %vm883_vm12 = vcmask 130048   ;;  %vm1103_vm13 = vcmask 195584   ;;  %vm1914_vm14 = vcmask 58368  }
  0x6d   : > { %v1045_v23 = vor.u32 %v1044_v16, %v1040_v15  ;;  %vm2619_vm15 = vcmask 1041409   ;;  %vm2621_vm0 = vcmask 1042434   ;;  %vm2623_vm1 = vcmask 1043459  }
  0x6e   : > { %828 = vrot.lane.b32.xlu1 %v801_v44, %s3210_s17  ;;  %826 = vrot.lane.b32.xlu0 %v802_v55, %s3210_s17  ;;  %v729_v44 = vor.u32 %v727_v38, %v725_v36  ;;  %v731_v55 = vshrl.u32 %v3550_v42, 16  ;;  %v1353_v36 = vshrl.u32 %v3589_v24, 16  ;;  %vm2625_vm2 = vcmask 1044484  }
  0x6f   : > { %vm2627_vm3 = vcmask 1045509   ;;  %vm2631_vm5 = vcmask 1047559  }
  0x70   : > { %v736_v61 = vor.u32 %v735_v56, %v731_v55 }
  0x72   : > { %759 = vrot.lane.b32.xlu1 %v684_v59, %s3209_s18  ;;  %757 = vrot.lane.b32.xlu0 %v681_v63, %s3209_s18  ;;  %v742_v59 = vshrl.u32 %v3557_v48, 16  ;;  %v3573_v63 = vld [vmem:[#allocation2 + $0x88] sm:$0xff]  ;;  %v741_v10 = vsel %vm624_vm8, %v736_v61, %v740_v58 }
  0x73   : > { %v1051_v21 = vshrl.u32 %v3573_v63, 16  ;;  %v1061_v28 = vrot.slane %v3573_v63, 1 }
  0x74   : > { %v744_v4 = vor.u32 %v742_v59, %v740_v58 }
  0x75   : > { %v1062_v38 = vsel %vm793_vm9, %v1060_v32, %v1061_v28 }
  0x76   : > { %763 = vrot.lane.b32.xlu1 %v699_v6, %s3209_s18  ;;  %761 = vrot.lane.b32.xlu0 %v696_v12, %s3209_s18  ;;  %v816_v6 = vrot.slane %v3557_v48, 1  ;;  %v815_v12 = vrot.slane %v3550_v42, 1 }
  0x78   : > { %v817_v22 = vsel %vm793_vm9, %v815_v12, %v816_v6 }
  0x7a   : > { %832 = vrot.lane.b32.xlu1 %v804_v9, %s3210_s17  ;;  %830 = vrot.lane.b32.xlu0 %v805_v19, %s3210_s17  ;;  %v1047_v9 = vshll.u32 %v3573_v63, 16  ;;  %v3583_v19 = vld [vmem:[#allocation2 + $0x90] sm:$0xff] }
  0x7b   : > { %v1344_v26 = vshll.u32 %v3583_v19, 16  ;;  %v1342_v33 = vshrl.u32 %v3583_v19, 16 }
  0x7d   : > { %v1346_v34 = vrot.slane %v1344_v26, 1 }
  0x7e   : > { %836 = vrot.lane.b32.xlu1 %v807_v20, %s3210_s17  ;;  %834 = vrot.lane.b32.xlu0 %v808_v30, %s3210_s17  ;;  %v1049_v20 = vrot.slane %v1047_v9, 1 }
  0x80   : > { %v1053_v27 = vor.u32 %v1051_v21, %v1049_v20  ;;  %v1050_v30 = vsel %vm624_vm8, %v1045_v23, %v1049_v20 }
  0x82   : > { %767 = vrot.lane.b32.xlu1 %v714_v35, %s3209_s18  ;;  %765 = vrot.lane.b32.xlu0 %v711_v39, %s3209_s18  ;;  %v1351_v35 = vrot.slane %v1349_v29, 1  ;;  %v1347_v39 = vor.u32 %v1346_v34, %v1342_v33 }
  0x84   : > { %v1355_v40 = vor.u32 %v1353_v36, %v1351_v35 }
  0x86   : > { %771 = vrot.lane.b32.xlu1 %v729_v44, %s3209_s18  ;;  %769 = vrot.lane.b32.xlu0 %v726_v45, %s3209_s18  ;;  %v1352_v44 = vsel %vm624_vm8, %v1347_v39, %v1351_v35  ;;  %v1363_v45 = vrot.slane %v3589_v24, 1 }
  0x8a   : > { %840 = vrot.lane.b32.xlu1 %v810_v46, %s3210_s17  ;;  %838 = vrot.lane.b32.xlu0 %v811_v53, %s3210_s17  ;;  %v1362_v46 = vrot.slane %v3583_v19, 1 }
  0x8c   : > { %v1364_v47 = vsel %vm793_vm9, %v1362_v46, %v1363_v45 }
  0x8e   : > { %844 = vrot.lane.b32.xlu1 %v813_v51, %s3210_s17  ;;  %842 = vrot.lane.b32.xlu0 %v814_v60, %s3210_s17 }
  0x92   : > { %775 = vrot.lane.b32.xlu1 %v744_v4, %s3209_s18  ;;  %773 = vrot.lane.b32.xlu0 %v741_v10, %s3209_s18 }
  0x96   : > { %848 = vrot.lane.b32.xlu1 %v816_v6, %s3210_s17  ;;  %846 = vrot.lane.b32.xlu0 %v817_v22, %s3210_s17 }
  0x9a   : > { %1056 = vrot.lane.b32.xlu1 %v1053_v27, %s3209_s18  ;;  %1054 = vrot.lane.b32.xlu0 %v1050_v30, %s3209_s18 }
  0x9e   : > { %1065 = vrot.lane.b32.xlu1 %v1061_v28, %s3210_s17  ;;  %1063 = vrot.lane.b32.xlu0 %v1062_v38, %s3210_s17 }
  0xa2   : > { %1358 = vrot.lane.b32.xlu1 %v1355_v40, %s3209_s18  ;;  %1356 = vrot.lane.b32.xlu0 %v1352_v44, %s3209_s18 }
  0xa6   : > { %1367 = vrot.lane.b32.xlu1 %v1363_v45, %s3210_s17  ;;  %1365 = vrot.lane.b32.xlu0 %v1364_v47, %s3210_s17 }
  0xcc   : > { %v752_v49 = vpop.permute.xlu1 %751  ;;  %v748_v51 = vpop.permute.xlu0 %747 }
  0xcd   : > { %v854_v56 = vsel %vm850_vm11, %v3421_v1, %v748_v51  ;;  %v858_v12 = vsel %vm850_vm11, %v3419_v0, %v752_v49 }
  0xd0   : > { %v756_v52 = vpop.permute.xlu1 %755  ;;  %v746_v53 = vpop.permute.xlu0 %745 }
  0xd1   : > { %v852_v58 = vsel %vm850_vm11, %v3429_v7, %v746_v53  ;;  %v862_v0 = vsel %vm850_vm11, %v3423_v2, %v756_v52 }
  0xd4   : > { %v750_v54 = vpop.permute.xlu1 %749  ;;  %v754_v55 = vpop.permute.xlu0 %753 }
  0xd5   : > { %v856_v15 = vsel %vm850_vm11, %v3431_v8, %v750_v54  ;;  %v860_v8 = vsel %vm850_vm11, %v3437_v13, %v754_v55 }
  0xd8   : > { %v821_v59 = vpop.permute.xlu1 %820  ;;  %v819_v60 = vpop.permute.xlu0 %818 }
  0xd9   : > { %v887_v61 = vsel %vm883_vm12, %v854_v56, %v821_v59  ;;  %v885_v3 = vsel %vm883_vm12, %v852_v58, %v819_v60  ;;  %v3165_v60 = vld [vmem:[%s4075_s3 + $0x20] ss:$0 sps:$4 sm:$0xff]  }
  0xda   : > { %v923_v4 = vshrl.u32 %v887_v61, 16  ;;  %v926_v6 = vshll.u32 %v887_v61, 16  ;;  %v916_v9 = vshrl.u32 %v885_v3, 16  ;;  %v919_v10 = vshll.u32 %v885_v3, 16 }
  0xdc   : > { %v925_v1 = vrot.slane %v923_v4, 3  ;;  %v928_v16 = vrot.slane %v926_v6, 4  ;;  %v918_v20 = vrot.slane %v916_v9, 3  ;;  %v921_v7 = vrot.slane %v919_v10, 4  ;;  %v825_v21 = vpop.permute.xlu1 %824  ;;  %v823_v22 = vpop.permute.xlu0 %822 }
  0xdd   : > { %v891_v23 = vsel %vm883_vm12, %v858_v12, %v825_v21  ;;  %v889_v26 = vsel %vm883_vm12, %v856_v15, %v823_v22  ;;  %v1409_v12 = vsel %vm1128_vm10, %v3165_v60, 0 }
  0xde   : > { %v938_v27 = vshrl.u32 %v891_v23, 16  ;;  %v941_v28 = vshll.u32 %v891_v23, 16  ;;  %v931_v29 = vshrl.u32 %v889_v26, 16  ;;  %v934_v30 = vshll.u32 %v889_v26, 16 }
  0xdf   : > { %v922_v32 = vor.u32 %v921_v7, %v918_v20  ;;  %v929_v33 = vor.u32 %v928_v16, %v925_v1 }
  0xe0   : > { %v940_v34 = vrot.slane %v938_v27, 3  ;;  %v943_v35 = vrot.slane %v941_v28, 4  ;;  %v933_v36 = vrot.slane %v931_v29, 3  ;;  %v936_v38 = vrot.slane %v934_v30, 4  ;;  %v829_v39 = vpop.permute.xlu1 %828  ;;  %v827_v40 = vpop.permute.xlu0 %826 }
  0xe1   : > { %v895_v44 = vsel %vm883_vm12, %v862_v0, %v829_v39  ;;  %v893_v45 = vsel %vm883_vm12, %v860_v8, %v827_v40  ;;  %v930_v46 = vsel %vm426_vm4, %v922_v32, %v929_v33 }
  0xe2   : > { %v953_v47 = vshrl.u32 %v895_v44, 16  ;;  %v956_v49 = vshll.u32 %v895_v44, 16  ;;  %v946_v2 = vshrl.u32 %v893_v45, 16  ;;  %v949_v51 = vshll.u32 %v893_v45, 16  ;;  %3019 = vmatprep.mubr.msk.bf16.mxu0 %vm1103_vm13, %v930_v46 }
  0xe3   : > { %v937_v13 = vor.u32 %v936_v38, %v933_v36  ;;  %v944_v52 = vor.u32 %v943_v35, %v940_v34 }
  0xe4   : > { %v955_v53 = vrot.slane %v953_v47, 3  ;;  %v958_v54 = vrot.slane %v956_v49, 4  ;;  %v948_v55 = vrot.slane %v946_v2, 3  ;;  %v951_v56 = vrot.slane %v949_v51, 4  ;;  %v760_v58 = vpop.permute.xlu1 %759  ;;  %v758_v59 = vpop.permute.xlu0 %757 }
  0xe5   : > { %v945_v61 = vsel %vm426_vm4, %v937_v13, %v944_v52  ;;  %v864_v15 = vsel %vm850_vm11, %v3462_v37, %v758_v59 }
  0xe6   : > { %v959_v3 = vor.u32 %v958_v54, %v955_v53  ;;  %v952_v4 = vor.u32 %v951_v56, %v948_v55  ;;  %2999 = vmatprep.mubr.msk.bf16.mxu1 %vm1103_vm13, %v945_v61  ;;  %3020 = vmatmul.mubr.msk.bf16.vlgmr.msra.gmra.mrb[0].mxu0 %vm1103_vm13, %v945_v61 }
  0xe7   : > { %3036 = vmatpush3.bf16.msra.mxu0 %v3526_v18  ;;  %v866_v18 = vsel %vm850_vm11, %v3469_v41, %v760_v58 }
  0xe8   : > { %v764_v6 = vpop.permute.xlu1 %763  ;;  %v762_v9 = vpop.permute.xlu0 %761  ;;  %v960_v10 = vsel %vm426_vm4, %v952_v4, %v959_v3  ;;  %3094 = vmatprep.subr.msk.bf16.mxu0 %vm1128_vm10, %v3165_v60 }
  0xe9   : > { %3000 = vmatmul.mubr.msk.bf16.vlgmr.msra.gmra.mrb[0].mxu1 %vm1103_vm13, %v960_v10  ;;  %3023 = vmatprep.mubr.msk.bf16.mxu0 %vm1103_vm13, %v960_v10  ;;  %v868_v41 = vsel %vm850_vm11, %v3472_v43, %v762_v9 }
  0xea   : > { %3057 = vmatpush3.bf16.msra.mxu1 %v3449_v31 }
  0xeb   : > { %3038 = vmatpush3.bf16.msra.mxu0 %v1409_v12  ;;  %3093 = vmatprep.subr.msk.bf16.mxu1 %vm1128_vm10, %v3496_v62  ;;  %v870_v62 = vsel %vm850_vm11, %v3481_v50, %v764_v6 }
  0xec   : > { %v833_v1 = vpop.permute.xlu1 %832  ;;  %v831_v16 = vpop.permute.xlu0 %830 }
  0xed   : > { %v899_v20 = vsel %vm883_vm12, %v866_v18, %v833_v1  ;;  %v897_v7 = vsel %vm883_vm12, %v864_v15, %v831_v16 }
  0xee   : > { %v968_v21 = vshrl.u32 %v899_v20, 16  ;;  %v971_v22 = vshll.u32 %v899_v20, 16  ;;  %v961_v23 = vshrl.u32 %v897_v7, 16  ;;  %v964_v31 = vshll.u32 %v897_v7, 16  ;;  %3058 = vmatpush3.bf16.msra.mxu1 %v3510_v11 }
  0xf0   : > { %v970_v26 = vrot.slane %v968_v21, 3  ;;  %v973_v37 = vrot.slane %v971_v22, 4  ;;  %v963_v27 = vrot.slane %v961_v23, 3  ;;  %v966_v28 = vrot.slane %v964_v31, 4  ;;  %v837_v29 = vpop.permute.xlu1 %836  ;;  %v835_v30 = vpop.permute.xlu0 %834 }
  0xf1   : > { %v903_v0 = vsel %vm883_vm12, %v870_v62, %v837_v29  ;;  %v901_v8 = vsel %vm883_vm12, %v868_v41, %v835_v30 }
  0xf2   : > { %v974_v32 = vor.u32 %v973_v37, %v970_v26  ;;  %v967_v33 = vor.u32 %v966_v28, %v963_v27  ;;  %v983_v34 = vshrl.u32 %v903_v0, 16  ;;  %v986_v11 = vshll.u32 %v903_v0, 16 }
  0xf3   : > { %v976_v35 = vshrl.u32 %v901_v8, 16  ;;  %v979_v36 = vshll.u32 %v901_v8, 16 }
  0xf4   : > { %v985_v50 = vrot.slane %v983_v34, 3  ;;  %v988_v38 = vrot.slane %v986_v11, 4  ;;  %v768_v39 = vpop.permute.xlu1 %767  ;;  %v766_v43 = vpop.permute.xlu0 %765  ;;  %v975_v40 = vsel %vm426_vm4, %v967_v33, %v974_v32 }
  0xf5   : > { %v978_v44 = vrot.slane %v976_v35, 3  ;;  %v981_v45 = vrot.slane %v979_v36, 4  ;;  %3003 = vmatprep.mubr.msk.bf16.mxu1 %vm1103_vm13, %v975_v40  ;;  %3024 = vmatmul.mubr.msk.bf16.gmra.mrb[4].mxu0 %vm1103_vm13, %v975_v40  ;;  %v874_v13 = vsel %vm850_vm11, %v3513_v14, %v768_v39  ;;  %v872_v52 = vsel %vm850_vm11, %v3502_v5, %v766_v43 }
  0xf6   : > { %v989_v46 = vor.u32 %v988_v38, %v985_v50  ;;  %3039 = vmatprep.mubr.msk.bf16.mxu0 %vm1103_vm13, %v960_v10 }
  0xf7   : > { %v982_v47 = vor.u32 %v981_v45, %v978_v44 }
  0xf8   : > { %v772_v49 = vpop.permute.xlu1 %771  ;;  %v770_v2 = vpop.permute.xlu0 %769 }
  0xf9   : > { %v3666_v51 = vsel %vm426_vm4, %v982_v47, %v989_v46  ;;  %v878_v14 = vsel %vm850_vm11, %v3536_v25, %v772_v49  ;;  %v876_v5 = vsel %vm850_vm11, %v3520_v17, %v770_v2 }
  0xfa   : > { %3004 = vmatmul.mubr.msk.bf16.gmra.mrb[4].mxu1 %vm1103_vm13, %v3666_v51 }
  0xfc   : > { %v841_v53 = vpop.permute.xlu1 %840  ;;  %v839_v54 = vpop.permute.xlu0 %838 }
  0xfd   : > { %v907_v55 = vsel %vm883_vm12, %v874_v13, %v841_v53  ;;  %v905_v56 = vsel %vm883_vm12, %v872_v52, %v839_v54  ;;  %3040 = vmatmul.mubr.msk.bf16.vlgmr.msra.gmra.mrb[0].mxu0 %vm1103_vm13, %v975_v40 }
  0xfe   : > { %v998_v58 = vshrl.u32 %v907_v55, 16  ;;  %v1001_v59 = vshll.u32 %v907_v55, 16  ;;  %v991_v60 = vshrl.u32 %v905_v56, 16  ;;  %v994_v61 = vshll.u32 %v905_v56, 16  ;;  %3043 = vmatprep.mubr.msk.bf16.mxu0 %vm1103_vm13, %v3666_v51 }
 0x100   : > { %v1000_v3 = vrot.slane %v998_v58, 3  ;;  %v1003_v4 = vrot.slane %v1001_v59, 4  ;;  %v993_v6 = vrot.slane %v991_v60, 3  ;;  %v996_v9 = vrot.slane %v994_v61, 4  ;;  %v845_v10 = vpop.permute.xlu1 %844  ;;  %v843_v12 = vpop.permute.xlu0 %842 }
 0x101   : > { %v911_v18 = vsel %vm883_vm12, %v878_v14, %v845_v10  ;;  %v909_v15 = vsel %vm883_vm12, %v876_v5, %v843_v12 }
 0x102   : > { %v1004_v1 = vor.u32 %v1003_v4, %v1000_v3  ;;  %v997_v16 = vor.u32 %v996_v9, %v993_v6  ;;  %v1013_v20 = vshrl.u32 %v911_v18, 16  ;;  %v1016_v7 = vshll.u32 %v911_v18, 16 }
 0x103   : > { %v1006_v21 = vshrl.u32 %v909_v15, 16  ;;  %v1009_v22 = vshll.u32 %v909_v15, 16 }
 0x104   : > { %v1015_v25 = vrot.slane %v1013_v20, 3  ;;  %v1018_v23 = vrot.slane %v1016_v7, 4  ;;  %v776_v31 = vpop.permute.xlu1 %775  ;;  %v774_v17 = vpop.permute.xlu0 %773  ;;  %v3686_v62 = vsel %vm426_vm4, %v997_v16, %v1004_v1 }
 0x105   : > { %v1008_v41 = vrot.slane %v1006_v21, 3  ;;  %v1011_v26 = vrot.slane %v1009_v22, 4  ;;  %3007 = vmatprep.mubr.msk.bf16.mxu1 %vm1103_vm13, %v3686_v62  ;;  %3044 = vmatmul.mubr.msk.bf16.gmra.mrb[4].mxu0 %vm1103_vm13, %v3686_v62  ;;  %v882_v28 = vsel %vm850_vm11, %v3557_v48, %v776_v31  ;;  %v880_v29 = vsel %vm850_vm11, %v3550_v42, %v774_v17 }
 0x106   : > { %v1019_v37 = vor.u32 %v1018_v23, %v1015_v25 }
 0x107   : > { %v1012_v27 = vor.u32 %v1011_v26, %v1008_v41  ;;  %v3211_v26 = vmov 1983009808  }
 0x108   : > { %v849_v30 = vpop.permute.xlu1 %848  ;;  %v847_v0 = vpop.permute.xlu0 %846 }
 0x109   : > { %v915_v8 = vsel %vm883_vm12, %v882_v28, %v849_v30  ;;  %v913_v32 = vsel %vm883_vm12, %v880_v29, %v847_v0  ;;  %v1020_v33 = vsel %vm426_vm4, %v1012_v27, %v1019_v37  ;;  %v1580_v37 = vunpack.c.l.s4 %v3211_v26 }
 0x10a   : > { %v1028_v34 = vshrl.u32 %v915_v8, 16  ;;  %v1031_v11 = vshll.u32 %v915_v8, 16  ;;  %v1021_v35 = vshrl.u32 %v913_v32, 16  ;;  %v1024_v36 = vshll.u32 %v913_v32, 16  ;;  %3008 = vmatmul.mubr.msk.bf16.gmra.mrb[8].mxu1 %vm1103_vm13, %v1020_v33  ;;  %3047 = vmatprep.mubr.msk.bf16.mxu0 %vm1103_vm13, %v1020_v33  ;;  %v3738_v32 = vld [vmem:[%s4076_s4] ss:$0 sm:$0xff] }
 0x10b   : > { %v1582_v27 = vlaneseq }
 0x10c   : > { %v1030_v48 = vrot.slane %v1028_v34, 3  ;;  %v1033_v50 = vrot.slane %v1031_v11, 4  ;;  %v1023_v38 = vrot.slane %v1021_v35, 3  ;;  %v1026_v42 = vrot.slane %v1024_v36, 4  ;;  %v1057_v39 = vpop.permute.xlu1 %1056  ;;  %v1055_v43 = vpop.permute.xlu0 %1054 }
 0x10d   : > { %v1070_v45 = vsel %vm850_vm11, %v3573_v63, %v1057_v39  ;;  %v1068_v46 = vsel %vm850_vm11, %v3567_v57, %v1055_v43  ;;  %v1583_v0 = vshrl.u32 %v1582_v27, 7 }
 0x10e   : > { %v1034_v40 = vor.u32 %v1033_v50, %v1030_v48  ;;  %v1027_v44 = vor.u32 %v1026_v42, %v1023_v38 }
 0x110   : > { %v1066_v47 = vpop.permute.xlu1 %1065  ;;  %v1064_v49 = vpop.permute.xlu0 %1063  ;;  %v1035_v2 = vsel %vm426_vm4, %v1027_v44, %v1034_v40 }
 0x111   : > { %v1074_v13 = vsel %vm883_vm12, %v1070_v45, %v1066_v47  ;;  %v1072_v52 = vsel %vm883_vm12, %v1068_v46, %v1064_v49  ;;  %3011 = vmatprep.mubr.msk.bf16.mxu1 %vm1103_vm13, %v1035_v2  ;;  %3048 = vmatmul.mubr.msk.bf16.gmra.mrb[8].mxu0 %vm1103_vm13, %v1035_v2 }
 0x112   : > { %v1082_v53 = vshrl.u32 %v1074_v13, 16  ;;  %v1085_v54 = vshll.u32 %v1074_v13, 16  ;;  %v1075_v55 = vshrl.u32 %v1072_v52, 16  ;;  %v1078_v56 = vshll.u32 %v1072_v52, 16 }
 0x114   : > { %v1084_v63 = vrot.slane %v1082_v53, 3  ;;  %v1087_v58 = vrot.slane %v1085_v54, 4  ;;  %v1077_v59 = vrot.slane %v1075_v55, 3  ;;  %v1080_v57 = vrot.slane %v1078_v56, 4  ;;  %v1359_v60 = vpop.permute.xlu1 %1358  ;;  %v1357_v61 = vpop.permute.xlu0 %1356 }
 0x115   : > { %v1372_v3 = vsel %vm850_vm11, %v3589_v24, %v1359_v60  ;;  %v1370_v4 = vsel %vm850_vm11, %v3583_v19, %v1357_v61 }
 0x116   : > { %v1088_v14 = vor.u32 %v1087_v58, %v1084_v63  ;;  %v1081_v5 = vor.u32 %v1080_v57, %v1077_v59 }
 0x118   : > { %v1089_v6 = vsel %vm426_vm4, %v1081_v5, %v1088_v14  ;;  %v1368_v9 = vpop.permute.xlu1 %1367  ;;  %v1366_v10 = vpop.permute.xlu0 %1365 }
 0x119   : > { %3012 = vmatmul.mubr.msk.bf16.gmra.mrb[12].mxu1 %vm1103_vm13, %v1089_v6  ;;  %3051 = vmatprep.mubr.msk.bf16.mxu0 %vm1103_vm13, %v1089_v6  ;;  %v1376_v12 = vsel %vm883_vm12, %v1372_v3, %v1368_v9  ;;  %v1374_v18 = vsel %vm883_vm12, %v1370_v4, %v1366_v10 }
 0x11a   : > { %v1384_v15 = vshrl.u32 %v1376_v12, 16  ;;  %v1387_v1 = vshll.u32 %v1376_v12, 16  ;;  %3027 = vmatprep.mubr.msk.bf16.mxu1 %vm1103_vm13, %v3666_v51  ;;  %v1377_v24 = vshrl.u32 %v1374_v18, 16  ;;  %v1380_v16 = vshll.u32 %v1374_v18, 16 }
 0x11c   : > { %v1386_v19 = vrot.slane %v1384_v15, 3  ;;  %v1389_v20 = vrot.slane %v1387_v1, 4  ;;  %v1379_v7 = vrot.slane %v1377_v24, 3  ;;  %v1382_v21 = vrot.slane %v1380_v16, 4 }
 0x11e   : > { %v1390_v22 = vor.u32 %v1389_v20, %v1386_v19  ;;  %v1383_v25 = vor.u32 %v1382_v21, %v1379_v7 }
 0x120   : > { %v1391_v23 = vsel %vm426_vm4, %v1383_v25, %v1390_v22  ;;  %vm2629_vm4 = vcmask 1046534  }
 0x121   : > { %3028 = vmatmul.mubr.msk.bf16.vlgmr.msra.gmra.mrb[8].mxu1 %vm1103_vm13, %v3686_v62  ;;  %3052 = vmatmul.mubr.msk.bf16.gmra.mrb[12].mxu0 %vm1103_vm13, %v1391_v23  ;;  %v1581_v62 = vunpack.c.0.s8 %v1580_v37 }
 0x122   : > { %3031 = vmatprep.mubr.msk.bf16.mxu1 %vm1103_vm13, %v1020_v33 }
 0x123   : > { %v3741_v50 = vsub.s32 %v1581_v62, %v1583_v0 }
 0x129   : > { %3032 = vmatmul.mubr.msk.bf16.gmra.mrb[12].mxu1 %vm1103_vm13, %v1035_v2 }
 0x1bc   : > { %v3001_v51 = vpop.f32.mrb[0].mxu1 }
 0x1bd   : > { %v1166_v31 = vpop.f32.mrb[1].mxu1 }
 0x1be   : > { %v3002_v17 = vpop.f32.mrb[2].mxu1 }
 0x1bf   : > { %v1169_v41 = vpop.f32.mrb[3].mxu1 }
 0x1cd   : > { %v3727_v28 = vpop.f32.mrb[4].mxu1 }
 0x1ce   : > { %v3729_v29 = vpop.f32.mrb[5].mxu1 }
 0x1cf   : > { %v3731_v30 = vpop.f32.mrb[6].mxu1 }
 0x1d0   : > { %v3733_v8 = vpop.f32.mrb[7].mxu1  ;;  %v3041_v33 = vpop.f32.mrb[0].mxu0 }
 0x1d1   : > { %v3059_v34 = vadd.f32 %v3041_v33, %v3001_v51  ;;  %v1445_v11 = vpop.f32.mrb[1].mxu0 }
 0x1d2   : > { %v3060_v35 = vadd.f32 %v1445_v11, %v1166_v31  ;;  %v3042_v36 = vpop.f32.mrb[2].mxu0 }
 0x1d3   : > { %v1532_v48 = vadd.f32 %v3059_v34, %v3738_v32  ;;  %v3061_v38 = vadd.f32 %v3042_v36, %v3002_v17  ;;  %v1448_v42 = vpop.f32.mrb[3].mxu0 }
 0x1d4   : > { %v1530_v39 = vadd.f32 %v3060_v35, %v3738_v32  ;;  %v3062_v43 = vadd.f32 %v1448_v42, %v1169_v41 }
 0x1d5   : > { %v1548_v40 = vmax.f32 %v1532_v48, 0.0  ;;  %v1533_v44 = vadd.f32 %v3061_v38, %v3738_v32 }
 0x1d6   : > { %v1546_v45 = vmax.f32 %v1530_v39, 0.0  ;;  %v1531_v46 = vadd.f32 %v3062_v43, %v3738_v32 }
 0x1d7   : > { %v1612_v47 = vcombine.high %v1548_v40, %v1548_v40  ;;  %v1619_v49 = vrot.slane %v1548_v40, %v3741_v50  ;;  %v3747_v2 = vmax.f32 %v1533_v44, 0.0 }
 0x1d8   : > { %v1578_v13 = vcombine.high %v1546_v45, %v1546_v45  ;;  %v1585_v52 = vrot.slane %v1546_v45, %v3741_v50  ;;  %v3750_v53 = vmax.f32 %v1531_v46, 0.0  ;;  %v3752_v54 = vpop.f32.mrb[4].mxu0 }
 0x1d9   : > { %v1626_v55 = vrot.slane %v1612_v47, %v3741_v50  ;;  %v1627_v56 = vcombine.high %v1619_v49, %v1619_v49  ;;  %v1971_v63 = vsel %vm1914_vm14, %v1619_v49, -inf  ;;  %v1629_v58 = vcombine.high %v3747_v2, %v3747_v2  ;;  %v3758_v59 = vpop.f32.mrb[5].mxu0 }
 0x1da   : > { %v1972_v57 = vrot.slane %v1971_v63, 4  ;;  %v1592_v60 = vrot.slane %v1578_v13, %v3741_v50  ;;  %v1593_v61 = vcombine.high %v1585_v52, %v1585_v52  ;;  %v1915_v14 = vsel %vm1914_vm14, %v1585_v52, -inf  ;;  %v3762_v5 = vpop.f32.mrb[6].mxu0 }
 0x1db   : > { %v1628_v3 = vcombine.high %v1626_v55, %v1626_v55  ;;  %v1978_v4 = vsel %vm1914_vm14, %v1627_v56, -inf  ;;  %v1985_v6 = vsel %vm1914_vm14, %v1626_v55, -inf  ;;  %v1916_v9 = vrot.slane %v1915_v14, 4  ;;  %v3766_v10 = vpop.f32.mrb[7].mxu0 }
 0x1dc   : > { %v1973_v12 = vmax.f32 %v1971_v63, %v1972_v57  ;;  %v1979_v18 = vrot.slane %v1978_v4, 4  ;;  %v1986_v15 = vrot.slane %v1985_v6, 4  ;;  %v1594_v1 = vcombine.high %v1592_v60, %v1592_v60 }
 0x1dd   : > { %v1992_v24 = vsel %vm1914_vm14, %v1628_v3, -inf  ;;  %v1917_v16 = vmax.f32 %v1915_v14, %v1916_v9  ;;  %v1922_v19 = vsel %vm1914_vm14, %v1593_v61, -inf  ;;  %v1929_v20 = vsel %vm1914_vm14, %v1592_v60, -inf }
 0x1de   : > { %v1974_v7 = vrot.slane %v1973_v12, 2  ;;  %v1980_v21 = vmax.f32 %v1978_v4, %v1979_v18  ;;  %v1987_v22 = vmax.f32 %v1985_v6, %v1986_v15  ;;  %v1993_v25 = vrot.slane %v1992_v24, 4 }
 0x1df   : > { %v1918_v23 = vrot.slane %v1917_v16, 2  ;;  %v1923_v51 = vrot.slane %v1922_v19, 4  ;;  %v1930_v31 = vrot.slane %v1929_v20, 4  ;;  %v1936_v17 = vsel %vm1914_vm14, %v1594_v1, -inf }
 0x1e0   : > { %v1975_v41 = vmax.f32 %v1973_v12, %v1974_v7  ;;  %v1981_v26 = vrot.slane %v1980_v21, 2  ;;  %v1988_v37 = vrot.slane %v1987_v22, 2  ;;  %v1994_v27 = vmax.f32 %v1992_v24, %v1993_v25 }
 0x1e1   : > { %v1919_v62 = vmax.f32 %v1917_v16, %v1918_v23  ;;  %v1924_v0 = vmax.f32 %v1922_v19, %v1923_v51  ;;  %v1931_v33 = vmax.f32 %v1929_v20, %v1930_v31  ;;  %v1937_v34 = vrot.slane %v1936_v17, 4 }
 0x1e2   : > { %v1976_v11 = vrot.slane %v1975_v41, 1  ;;  %v1982_v35 = vmax.f32 %v1980_v21, %v1981_v26  ;;  %v1989_v36 = vmax.f32 %v1987_v22, %v1988_v37  ;;  %v1995_v48 = vrot.slane %v1994_v27, 2 }
 0x1e3   : > { %v1920_v38 = vrot.slane %v1919_v62, 1  ;;  %v1925_v42 = vrot.slane %v1924_v0, 2  ;;  %v1932_v39 = vrot.slane %v1931_v33, 2  ;;  %v1938_v43 = vmax.f32 %v1936_v17, %v1937_v34 }
 0x1e4   : > { %v1977_v40 = vmax.f32 %v1975_v41, %v1976_v11  ;;  %v1983_v44 = vrot.slane %v1982_v35, 1  ;;  %v1990_v45 = vrot.slane %v1989_v36, 1  ;;  %v1996_v46 = vmax.f32 %v1994_v27, %v1995_v48  ;;  %v3772_v47 = vpop.f32.mrb[8].mxu0 }
 0x1e5   : > { %v1921_v49 = vmax.f32 %v1919_v62, %v1920_v38  ;;  %v1926_v13 = vmax.f32 %v1924_v0, %v1925_v42  ;;  %v1933_v52 = vmax.f32 %v1931_v33, %v1932_v39  ;;  %v1939_v55 = vrot.slane %v1938_v43, 2  ;;  %v3774_v56 = vpop.f32.mrb[9].mxu0 }
 0x1e6   : > { %v1984_v63 = vmax.f32 %v1982_v35, %v1983_v44  ;;  %v1991_v57 = vmax.f32 %v1989_v36, %v1990_v45  ;;  %v1997_v60 = vrot.slane %v1996_v46, 1  ;;  %v2364_v61 = vsel %vm850_vm11, %v1977_v40, -inf  ;;  %v3777_v14 = vpop.f32.mrb[10].mxu0 }
 0x1e7   : > { %v1927_v3 = vrot.slane %v1926_v13, 1  ;;  %v1934_v4 = vrot.slane %v1933_v52, 1  ;;  %v1940_v6 = vmax.f32 %v1938_v43, %v1939_v55  ;;  %v2363_v9 = vsel %vm850_vm11, %v1921_v49, -inf  ;;  %v3780_v12 = vpop.f32.mrb[11].mxu0 }
 0x1e8   : > { %v1998_v18 = vmax.f32 %v1996_v46, %v1997_v60  ;;  %v2367_v15 = vsel %vm850_vm11, %v1984_v63, -inf  ;;  %v2370_v1 = vsel %vm850_vm11, %v1991_v57, -inf  ;;  %v2365_v24 = vmax.f32 %v2363_v9, %v2364_v61 }
 0x1e9   : > { %v1928_v16 = vmax.f32 %v1926_v13, %v1927_v3  ;;  %v1935_v19 = vmax.f32 %v1933_v52, %v1934_v4  ;;  %v1941_v20 = vrot.slane %v1940_v6, 1  ;;  %v1636_v7 = vrot.slane %v3747_v2, %v3741_v50 }
 0x1ea   : > { %v2373_v21 = vsel %vm850_vm11, %v1998_v18, -inf  ;;  %v2933_v22 = vpack.c.bf16 %v2365_v24, %v2365_v24  ;;  %v1643_v25 = vrot.slane %v1629_v58, %v3741_v50  ;;  %v1595_v23 = vcombine.high %v3750_v53, %v3750_v53 }
 0x1eb   : > { %v1942_v51 = vmax.f32 %v1940_v6, %v1941_v20  ;;  %v2366_v31 = vsel %vm850_vm11, %v1928_v16, -inf  ;;  %v2369_v17 = vsel %vm850_vm11, %v1935_v19, -inf  ;;  %v1644_v41 = vcombine.high %v1636_v7, %v1636_v7 }
 0x1ec   : > { %v2368_v26 = vmax.f32 %v2366_v31, %v2367_v15  ;;  %v2371_v37 = vmax.f32 %v2369_v17, %v2370_v1  ;;  %v2587_v27 = vunpack.c.l.b16 %v2933_v22  ;;  %v1645_v62 = vcombine.high %v1643_v25, %v1643_v25 }
 0x1ed   : > { %v2372_v0 = vsel %vm850_vm11, %v1942_v51, -inf  ;;  %v1999_v33 = vsel %vm1914_vm14, %v1636_v7, -inf  ;;  %v2006_v2 = vsel %vm1914_vm14, %v1644_v41, -inf  ;;  %v2013_v58 = vsel %vm1914_vm14, %v1643_v25, -inf }
 0x1ee   : > { %v2374_v34 = vmax.f32 %v2372_v0, %v2373_v21  ;;  %v2934_v11 = vpack.c.bf16 %v2368_v26, %v2368_v26  ;;  %v2935_v35 = vpack.c.bf16 %v2371_v37, %v2371_v37  ;;  %v2000_v36 = vrot.slane %v1999_v33, 4 }
 0x1ef   : > { %v2007_v48 = vrot.slane %v2006_v2, 4  ;;  %v2014_v38 = vrot.slane %v2013_v58, 4  ;;  %v2020_v42 = vsel %vm1914_vm14, %v1645_v62, -inf  ;;  %v1602_v39 = vrot.slane %v3750_v53, %v3741_v50 }
 0x1f0   : > { %v2936_v43 = vpack.c.bf16 %v2374_v34, %v2374_v34  ;;  %v2588_v40 = vunpack.c.l.b16 %v2934_v11  ;;  %v2589_v44 = vunpack.c.l.b16 %v2935_v35  ;;  %v2001_v45 = vmax.f32 %v1999_v33, %v2000_v36 }
 0x1f1   : > { %v2008_v46 = vmax.f32 %v2006_v2, %v2007_v48  ;;  %v2015_v49 = vmax.f32 %v2013_v58, %v2014_v38  ;;  %v2021_v13 = vrot.slane %v2020_v42, 4  ;;  %v1609_v52 = vrot.slane %v1595_v23, %v3741_v50 }
 0x1f2   : > { %v2590_v55 = vunpack.c.l.b16 %v2936_v43  ;;  %v2620_v63 = vsel %vm2619_vm15, %v2588_v40, %v2587_v27  ;;  %v2002_v57 = vrot.slane %v2001_v45, 2  ;;  %v1610_v60 = vcombine.high %v1602_v39, %v1602_v39 }
 0x1f3   : > { %v2622_v61 = vsel %vm2621_vm0, %v2589_v44, %v2620_v63  ;;  %v2009_v3 = vrot.slane %v2008_v46, 2  ;;  %v2016_v4 = vrot.slane %v2015_v49, 2  ;;  %v2022_v53 = vmax.f32 %v2020_v42, %v2021_v13 }
 0x1f4   : > { %v2003_v6 = vmax.f32 %v2001_v45, %v2002_v57  ;;  %v1611_v9 = vcombine.high %v1609_v52, %v1609_v52  ;;  %v1943_v18 = vsel %vm1914_vm14, %v1602_v39, -inf  ;;  %v1950_v15 = vsel %vm1914_vm14, %v1610_v60, -inf  ;;  %v3807_v1 = vpop.f32.mrb[8].mxu1  ;;  %v3809_v24 = vpop.f32.mrb[12].mxu0 }
 0x1f5   : > { %v2010_v16 = vmax.f32 %v2008_v46, %v2009_v3  ;;  %v2017_v19 = vmax.f32 %v2015_v49, %v2016_v4  ;;  %v2023_v20 = vrot.slane %v2022_v53, 2  ;;  %v1944_v7 = vrot.slane %v1943_v18, 4  ;;  %v3811_v21 = vpop.f32.mrb[9].mxu1  ;;  %v3813_v22 = vpop.f32.mrb[13].mxu0 }
 0x1f6   : > { %v2004_v25 = vrot.slane %v2003_v6, 1  ;;  %v1951_v23 = vrot.slane %v1950_v15, 4  ;;  %v1957_v51 = vsel %vm1914_vm14, %v1609_v52, -inf  ;;  %v1964_v31 = vsel %vm1914_vm14, %v1611_v9, -inf  ;;  %v3817_v17 = vpop.f32.mrb[10].mxu1  ;;  %v3819_v41 = vpop.f32.mrb[14].mxu0 }
 0x1f7   : > { %v2011_v26 = vrot.slane %v2010_v16, 1  ;;  %v2018_v37 = vrot.slane %v2017_v19, 1  ;;  %v2024_v27 = vmax.f32 %v2022_v53, %v2023_v20  ;;  %v1945_v62 = vmax.f32 %v1943_v18, %v1944_v7  ;;  %v3821_v0 = vpop.f32.mrb[11].mxu1  ;;  %v3823_v33 = vpop.f32.mrb[15].mxu0 }
 0x1f8   : > { %v2005_v2 = vmax.f32 %v2003_v6, %v2004_v25  ;;  %v1952_v58 = vmax.f32 %v1950_v15, %v1951_v23  ;;  %v1958_v34 = vrot.slane %v1957_v51, 4  ;;  %v1965_v11 = vrot.slane %v1964_v31, 4 }
 0x1f9   : > { %v2012_v35 = vmax.f32 %v2010_v16, %v2011_v26  ;;  %v2019_v36 = vmax.f32 %v2017_v19, %v2018_v37  ;;  %v2025_v48 = vrot.slane %v2024_v27, 1  ;;  %v1946_v38 = vrot.slane %v1945_v62, 2 }
 0x1fa   : > { %v2376_v42 = vsel %vm850_vm11, %v2005_v2, -inf  ;;  %v1953_v39 = vrot.slane %v1952_v58, 2  ;;  %v1959_v43 = vmax.f32 %v1957_v51, %v1958_v34  ;;  %v1966_v40 = vmax.f32 %v1964_v31, %v1965_v11 }
 0x1fb   : > { %v2026_v44 = vmax.f32 %v2024_v27, %v2025_v48  ;;  %v2379_v45 = vsel %vm850_vm11, %v2012_v35, -inf  ;;  %v2382_v46 = vsel %vm850_vm11, %v2019_v36, -inf  ;;  %v1947_v49 = vmax.f32 %v1945_v62, %v1946_v38 }
 0x1fc   : > { %v1954_v13 = vmax.f32 %v1952_v58, %v1953_v39  ;;  %v1960_v52 = vrot.slane %v1959_v43, 2  ;;  %v1967_v63 = vrot.slane %v1966_v40, 2  ;;  %v2624_v57 = vsel %vm2623_vm1, %v2590_v55, %v2622_v61  ;;  %v3829_v60 = vpop.f32.mrb[12].mxu1 }
 0x1fd   : > { %v2385_v3 = vsel %vm850_vm11, %v2026_v44, -inf  ;;  %v1948_v4 = vrot.slane %v1947_v49, 1  ;;  %v3063_v53 = vadd.f32 %v3752_v54, %v3727_v28  ;;  %v3064_v6 = vadd.f32 %v3758_v59, %v3729_v29  ;;  %v3836_v9 = vpop.f32.mrb[13].mxu1 }
 0x1fe   : > { %v1955_v18 = vrot.slane %v1954_v13, 1  ;;  %v1961_v15 = vmax.f32 %v1959_v43, %v1960_v52  ;;  %v1968_v16 = vmax.f32 %v1966_v40, %v1967_v63  ;;  %v3065_v55 = vadd.f32 %v3762_v5, %v3731_v30  ;;  %v3840_v61 = vpop.f32.mrb[14].mxu1 }
 0x1ff   : > { %v1949_v19 = vmax.f32 %v1947_v49, %v1948_v4  ;;  %v1536_v20 = vadd.f32 %v3063_v53, %v3738_v32  ;;  %v1534_v7 = vadd.f32 %v3064_v6, %v3738_v32  ;;  %v3066_v28 = vadd.f32 %v3766_v10, %v3733_v8  ;;  %v3846_v29 = vpop.f32.mrb[15].mxu1 }
 0x200   : > { %v1956_v54 = vmax.f32 %v1954_v13, %v1955_v18  ;;  %v1962_v59 = vrot.slane %v1961_v15, 1  ;;  %v1969_v25 = vrot.slane %v1968_v16, 1  ;;  %v3849_v23 = vadd.f32 %v3065_v55, %v3738_v32 }
 0x201   : > { %v2375_v30 = vsel %vm850_vm11, %v1949_v19, -inf  ;;  %v1552_v5 = vmax.f32 %v1536_v20, 0.0  ;;  %v1550_v51 = vmax.f32 %v1534_v7, 0.0  ;;  %v3853_v31 = vadd.f32 %v3066_v28, %v3738_v32 }
 0x202   : > { %v1963_v26 = vmax.f32 %v1961_v15, %v1962_v59  ;;  %v1970_v37 = vmax.f32 %v1968_v16, %v1969_v25  ;;  %v2377_v8 = vmax.f32 %v2375_v30, %v2376_v42  ;;  %v2378_v10 = vsel %vm850_vm11, %v1956_v54, -inf }
 0x203   : > { %v2380_v27 = vmax.f32 %v2378_v10, %v2379_v45  ;;  %v1680_v62 = vcombine.high %v1552_v5, %v1552_v5  ;;  %v1687_v2 = vrot.slane %v1552_v5, %v3741_v50  ;;  %v1646_v58 = vcombine.high %v1550_v51, %v1550_v51 }
 0x204   : > { %v2381_v34 = vsel %vm850_vm11, %v1963_v26, -inf  ;;  %v2384_v11 = vsel %vm850_vm11, %v1970_v37, -inf  ;;  %v2937_v35 = vpack.c.bf16 %v2377_v8, %v2377_v8  ;;  %v1653_v36 = vrot.slane %v1550_v51, %v3741_v50 }
 0x205   : > { %v2383_v48 = vmax.f32 %v2381_v34, %v2382_v46  ;;  %v2386_v38 = vmax.f32 %v2384_v11, %v2385_v3  ;;  %v2938_v39 = vpack.c.bf16 %v2380_v27, %v2380_v27  ;;  %v1694_v43 = vrot.slane %v1680_v62, %v3741_v50 }
 0x206   : > { %v2591_v42 = vunpack.c.l.b16 %v2937_v35  ;;  %v1695_v40 = vcombine.high %v1687_v2, %v1687_v2  ;;  %v2083_v44 = vsel %vm1914_vm14, %v1687_v2, -inf  ;;  %v1660_v45 = vrot.slane %v1646_v58, %v3741_v50 }
 0x207   : > { %v2939_v49 = vpack.c.bf16 %v2383_v48, %v2383_v48  ;;  %v2940_v13 = vpack.c.bf16 %v2386_v38, %v2386_v38  ;;  %v2592_v52 = vunpack.c.l.b16 %v2938_v39  ;;  %v1696_v63 = vcombine.high %v1694_v43, %v1694_v43 }
 0x208   : > { %v2626_v4 = vsel %vm2625_vm2, %v2591_v42, %v2624_v57  ;;  %v2084_v53 = vrot.slane %v2083_v44, 4  ;;  %v2090_v6 = vsel %vm1914_vm14, %v1695_v40, -inf  ;;  %v2097_v46 = vsel %vm1914_vm14, %v1694_v43, -inf }
 0x209   : > { %v2593_v3 = vunpack.c.l.b16 %v2939_v49  ;;  %v2594_v18 = vunpack.c.l.b16 %v2940_v13  ;;  %v2628_v15 = vsel %vm2627_vm3, %v2592_v52, %v2626_v4  ;;  %v2091_v16 = vrot.slane %v2090_v6, 4 }
 0x20a   : > { %v2085_v55 = vmax.f32 %v2083_v44, %v2084_v53  ;;  %v2098_v19 = vrot.slane %v2097_v46, 4  ;;  %v2104_v20 = vsel %vm1914_vm14, %v1696_v63, -inf  ;;  %v1661_v7 = vcombine.high %v1653_v36, %v1653_v36 }
 0x20b   : > { %v2630_v28 = vsel %vm2629_vm4, %v2593_v3, %v2628_v15  ;;  %v2092_v54 = vmax.f32 %v2090_v6, %v2091_v16  ;;  %v2105_v57 = vrot.slane %v2104_v20, 4  ;;  %v1662_v59 = vcombine.high %v1660_v45, %v1660_v45 }
 0x20c   : > { %v2632_v25 = vsel %vm2631_vm5, %v2594_v18, %v2630_v28  ;;  %v2086_v30 = vrot.slane %v2085_v55, 2  ;;  %v2099_v5 = vmax.f32 %v2097_v46, %v2098_v19  ;;  %v2027_v51 = vsel %vm1914_vm14, %v1653_v36, -inf }
 0x20d   : > { %v2654_v26 = vpack.c.b16 %v2632_v25, %v2632_v25  ;;  %v2093_v37 = vrot.slane %v2092_v54, 2  ;;  %v2106_v8 = vmax.f32 %v2104_v20, %v2105_v57  ;;  %v2028_v10 = vrot.slane %v2027_v51, 4 }
 0x20e   : > { %v2087_v27 = vmax.f32 %v2085_v55, %v2086_v30  ;;  %v2100_v62 = vrot.slane %v2099_v5, 2  ;;  %v2034_v2 = vsel %vm1914_vm14, %v1661_v7, -inf  ;;  %v2041_v58 = vsel %vm1914_vm14, %v1660_v45, -inf }
 0x20f   : > { %2662 = vst.msk [vmem:[%s3392_s27] sm:$0xf] %vm541_vm7, %v2654_v26  ;;  %v2094_v34 = vmax.f32 %v2092_v54, %v2093_v37  ;;  %v2107_v11 = vrot.slane %v2106_v8, 2  ;;  %v2029_v35 = vmax.f32 %v2027_v51, %v2028_v10  ;;  %v2035_v48 = vrot.slane %v2034_v2, 4 }
 0x210   : > { %v2088_v38 = vrot.slane %v2087_v27, 1  ;;  %v2101_v39 = vmax.f32 %v2099_v5, %v2100_v62  ;;  %v2042_v43 = vrot.slane %v2041_v58, 4  ;;  %v2048_v36 = vsel %vm1914_vm14, %v1662_v59, -inf }
 0x211   : > { %v2095_v42 = vrot.slane %v2094_v34, 1  ;;  %v2108_v40 = vmax.f32 %v2106_v8, %v2107_v11  ;;  %v2030_v44 = vrot.slane %v2029_v35, 2  ;;  %v2036_v49 = vmax.f32 %v2034_v2, %v2035_v48 }
 0x212   : > { %v2089_v13 = vmax.f32 %v2087_v27, %v2088_v38  ;;  %v2102_v52 = vrot.slane %v2101_v39, 1  ;;  %v2043_v63 = vmax.f32 %v2041_v58, %v2042_v43  ;;  %v2049_v4 = vrot.slane %v2048_v36, 4 }
 0x213   : > { %v2096_v45 = vmax.f32 %v2094_v34, %v2095_v42  ;;  %v2109_v53 = vrot.slane %v2108_v40, 1  ;;  %v2031_v6 = vmax.f32 %v2029_v35, %v2030_v44  ;;  %v2037_v46 = vrot.slane %v2036_v49, 2 }
 0x214   : > { %v2103_v3 = vmax.f32 %v2101_v39, %v2102_v52  ;;  %v2388_v18 = vsel %vm850_vm11, %v2089_v13, -inf  ;;  %v2044_v15 = vrot.slane %v2043_v63, 2  ;;  %v2050_v16 = vmax.f32 %v2048_v36, %v2049_v4 }
 0x215   : > { %v2110_v55 = vmax.f32 %v2108_v40, %v2109_v53  ;;  %v2391_v19 = vsel %vm850_vm11, %v2096_v45, -inf  ;;  %v2032_v20 = vrot.slane %v2031_v6, 1  ;;  %v2038_v7 = vmax.f32 %v2036_v49, %v2037_v46 }
 0x216   : > { %v2394_v28 = vsel %vm850_vm11, %v2103_v3, -inf  ;;  %v2045_v54 = vmax.f32 %v2043_v63, %v2044_v15  ;;  %v2051_v57 = vrot.slane %v2050_v16, 2  ;;  %v1553_v59 = vmax.f32 %v3849_v23, 0.0 }
 0x217   : > { %v2397_v25 = vsel %vm850_vm11, %v2110_v55, -inf  ;;  %v2033_v30 = vmax.f32 %v2031_v6, %v2032_v20  ;;  %v2039_v5 = vrot.slane %v2038_v7, 1  ;;  %v1551_v51 = vmax.f32 %v3853_v31, 0.0 }
 0x218   : > { %v2046_v26 = vrot.slane %v2045_v54, 1  ;;  %v2052_v37 = vmax.f32 %v2050_v16, %v2051_v57  ;;  %v1697_v8 = vcombine.high %v1553_v59, %v1553_v59  ;;  %v1704_v10 = vrot.slane %v1553_v59, %v3741_v50 }
 0x219   : > { %v2040_v27 = vmax.f32 %v2038_v7, %v2039_v5  ;;  %v2387_v62 = vsel %vm850_vm11, %v2033_v30, -inf  ;;  %v1663_v2 = vcombine.high %v1551_v51, %v1551_v51  ;;  %v1670_v58 = vrot.slane %v1551_v51, %v3741_v50 }
 0x21a   : > { %v2047_v34 = vmax.f32 %v2045_v54, %v2046_v26  ;;  %v2053_v11 = vrot.slane %v2052_v37, 1  ;;  %v2389_v23 = vmax.f32 %v2387_v62, %v2388_v18  ;;  %v1711_v35 = vrot.slane %v1697_v8, %v3741_v50 }
 0x21b   : > { %v2390_v48 = vsel %vm850_vm11, %v2040_v27, -inf  ;;  %v1712_v38 = vcombine.high %v1704_v10, %v1704_v10  ;;  %v2111_v31 = vsel %vm1914_vm14, %v1704_v10, -inf  ;;  %v1677_v39 = vrot.slane %v1663_v2, %v3741_v50 }
 0x21c   : > { %v2054_v43 = vmax.f32 %v2052_v37, %v2053_v11  ;;  %v2392_v36 = vmax.f32 %v2390_v48, %v2391_v19  ;;  %v2393_v42 = vsel %vm850_vm11, %v2047_v34, -inf  ;;  %v2941_v40 = vpack.c.bf16 %v2389_v23, %v2389_v23 }
 0x21d   : > { %v2395_v44 = vmax.f32 %v2393_v42, %v2394_v28  ;;  %v1713_v49 = vcombine.high %v1711_v35, %v1711_v35  ;;  %v2112_v13 = vrot.slane %v2111_v31, 4  ;;  %v2118_v52 = vsel %vm1914_vm14, %v1712_v38, -inf }
 0x21e   : > { %v2396_v63 = vsel %vm850_vm11, %v2054_v43, -inf  ;;  %v2942_v4 = vpack.c.bf16 %v2392_v36, %v2392_v36  ;;  %v2595_v45 = vunpack.c.l.b16 %v2941_v40  ;;  %v2119_v53 = vrot.slane %v2118_v52, 4 }
 0x21f   : > { %v2398_v6 = vmax.f32 %v2396_v63, %v2397_v25  ;;  %v2943_v46 = vpack.c.bf16 %v2395_v44, %v2395_v44  ;;  %v2113_v3 = vmax.f32 %v2111_v31, %v2112_v13  ;;  %v2125_v18 = vsel %vm1914_vm14, %v1711_v35, -inf }
 0x220   : > { %v2596_v15 = vunpack.c.l.b16 %v2942_v4  ;;  %v2120_v16 = vmax.f32 %v2118_v52, %v2119_v53  ;;  %v2126_v55 = vrot.slane %v2125_v18, 4  ;;  %v2132_v19 = vsel %vm1914_vm14, %v1713_v49, -inf }
 0x221   : > { %v2944_v20 = vpack.c.bf16 %v2398_v6, %v2398_v6  ;;  %v2597_v7 = vunpack.c.l.b16 %v2943_v46  ;;  %v2114_v28 = vrot.slane %v2113_v3, 2  ;;  %v2133_v54 = vrot.slane %v2132_v19, 4 }
 0x222   : > { %v2633_v57 = vsel %vm2619_vm15, %v2596_v15, %v2595_v45  ;;  %v2121_v59 = vrot.slane %v2120_v16, 2  ;;  %v2127_v30 = vmax.f32 %v2125_v18, %v2126_v55  ;;  %v1678_v5 = vcombine.high %v1670_v58, %v1670_v58 }
 0x223   : > { %v2598_v51 = vunpack.c.l.b16 %v2944_v20  ;;  %v2634_v25 = vsel %vm2621_vm0, %v2597_v7, %v2633_v57  ;;  %v2115_v26 = vmax.f32 %v2113_v3, %v2114_v28  ;;  %v2134_v37 = vmax.f32 %v2132_v19, %v2133_v54 }
 0x224   : > { %v2122_v8 = vmax.f32 %v2120_v16, %v2121_v59  ;;  %v2128_v10 = vrot.slane %v2127_v30, 2  ;;  %v1679_v27 = vcombine.high %v1677_v39, %v1677_v39  ;;  %v2055_v62 = vsel %vm1914_vm14, %v1670_v58, -inf }
 0x225   : > { %v2116_v2 = vrot.slane %v2115_v26, 1  ;;  %v2135_v34 = vrot.slane %v2134_v37, 2  ;;  %v2056_v11 = vrot.slane %v2055_v62, 4  ;;  %v2062_v23 = vsel %vm1914_vm14, %v1678_v5, -inf }
 0x226   : > { %v2123_v35 = vrot.slane %v2122_v8, 1  ;;  %v2129_v48 = vmax.f32 %v2127_v30, %v2128_v10  ;;  %v2063_v38 = vrot.slane %v2062_v23, 4  ;;  %v2069_v31 = vsel %vm1914_vm14, %v1677_v39, -inf }
 0x227   : > { %v2117_v43 = vmax.f32 %v2115_v26, %v2116_v2  ;;  %v2136_v36 = vmax.f32 %v2134_v37, %v2135_v34  ;;  %v2057_v42 = vmax.f32 %v2055_v62, %v2056_v11  ;;  %v2070_v40 = vrot.slane %v2069_v31, 4 }
 0x228   : > { %v2124_v44 = vmax.f32 %v2122_v8, %v2123_v35  ;;  %v2130_v49 = vrot.slane %v2129_v48, 1  ;;  %v2064_v13 = vmax.f32 %v2062_v23, %v2063_v38  ;;  %v2076_v52 = vsel %vm1914_vm14, %v1679_v27, -inf }
 0x229   : > { %v2137_v58 = vrot.slane %v2136_v36, 1  ;;  %v2400_v63 = vsel %vm850_vm11, %v2117_v43, -inf  ;;  %v2058_v4 = vrot.slane %v2057_v42, 2  ;;  %v2071_v45 = vmax.f32 %v2069_v31, %v2070_v40 }
 0x22a   : > { %v2131_v53 = vmax.f32 %v2129_v48, %v2130_v49  ;;  %v2403_v6 = vsel %vm850_vm11, %v2124_v44, -inf  ;;  %v2065_v46 = vrot.slane %v2064_v13, 2  ;;  %v2077_v3 = vrot.slane %v2076_v52, 4 }
 0x22b   : > { %v2138_v39 = vmax.f32 %v2136_v36, %v2137_v58  ;;  %v2059_v18 = vmax.f32 %v2057_v42, %v2058_v4  ;;  %v2072_v15 = vrot.slane %v2071_v45, 2  ;;  %v2635_v16 = vsel %vm2623_vm1, %v2598_v51, %v2634_v25 }
 0x22c   : > { %v2406_v55 = vsel %vm850_vm11, %v2131_v53, -inf  ;;  %v2066_v19 = vmax.f32 %v2064_v13, %v2065_v46  ;;  %v2078_v20 = vmax.f32 %v2076_v52, %v2077_v3  ;;  %v3067_v7 = vadd.f32 %v3772_v47, %v3807_v1 }
 0x22d   : > { %v2409_v28 = vsel %vm850_vm11, %v2138_v39, -inf  ;;  %v2060_v54 = vrot.slane %v2059_v18, 1  ;;  %v2073_v57 = vmax.f32 %v2071_v45, %v2072_v15  ;;  %v3068_v59 = vadd.f32 %v3774_v56, %v3811_v21 }
 0x22e   : > { %v2067_v30 = vrot.slane %v2066_v19, 1  ;;  %v2079_v5 = vrot.slane %v2078_v20, 2  ;;  %v1540_v26 = vadd.f32 %v3067_v7, %v3738_v32  ;;  %v3069_v51 = vadd.f32 %v3777_v14, %v3817_v17 }
 0x22f   : > { %v2061_v25 = vmax.f32 %v2059_v18, %v2060_v54  ;;  %v2074_v37 = vrot.slane %v2073_v57, 1  ;;  %v1538_v8 = vadd.f32 %v3068_v59, %v3738_v32  ;;  %v3070_v47 = vadd.f32 %v3780_v12, %v3821_v0 }
 0x230   : > { %v2068_v1 = vmax.f32 %v2066_v19, %v2067_v30  ;;  %v2080_v10 = vmax.f32 %v2078_v20, %v2079_v5  ;;  %v1556_v27 = vmax.f32 %v1540_v26, 0.0  ;;  %v3916_v62 = vadd.f32 %v3069_v51, %v3738_v32 }
 0x231   : > { %v2075_v56 = vmax.f32 %v2073_v57, %v2074_v37  ;;  %v2399_v21 = vsel %vm850_vm11, %v2061_v25, -inf  ;;  %v1554_v2 = vmax.f32 %v1538_v8, 0.0  ;;  %v3920_v34 = vadd.f32 %v3070_v47, %v3738_v32 }
 0x232   : > { %v2081_v14 = vrot.slane %v2080_v10, 1  ;;  %v2401_v17 = vmax.f32 %v2399_v21, %v2400_v63  ;;  %v2402_v11 = vsel %vm850_vm11, %v2068_v1, -inf  ;;  %v1748_v23 = vcombine.high %v1556_v27, %v1556_v27 }
 0x233   : > { %v2404_v35 = vmax.f32 %v2402_v11, %v2403_v6  ;;  %v2405_v12 = vsel %vm850_vm11, %v2075_v56, -inf  ;;  %v1755_v0 = vrot.slane %v1556_v27, %v3741_v50  ;;  %v1714_v48 = vcombine.high %v1554_v2, %v1554_v2 }
 0x234   : > { %v2082_v38 = vmax.f32 %v2080_v10, %v2081_v14  ;;  %v2407_v31 = vmax.f32 %v2405_v12, %v2406_v55  ;;  %v2945_v43 = vpack.c.bf16 %v2401_v17, %v2401_v17  ;;  %v1762_v36 = vrot.slane %v1748_v23, %v3741_v50 }
 0x235   : > { %v2946_v42 = vpack.c.bf16 %v2404_v35, %v2404_v35  ;;  %v1763_v40 = vcombine.high %v1755_v0, %v1755_v0  ;;  %v2195_v32 = vsel %vm1914_vm14, %v1755_v0, -inf  ;;  %v1721_v44 = vrot.slane %v1554_v2, %v3741_v50 }
 0x236   : > { %v2408_v49 = vsel %vm850_vm11, %v2082_v38, -inf  ;;  %v2947_v13 = vpack.c.bf16 %v2407_v31, %v2407_v31  ;;  %v2599_v52 = vunpack.c.l.b16 %v2945_v43  ;;  %v1764_v58 = vcombine.high %v1762_v36, %v1762_v36 }
 0x237   : > { %v2410_v63 = vmax.f32 %v2408_v49, %v2409_v28  ;;  %v2600_v4 = vunpack.c.l.b16 %v2946_v42  ;;  %v2196_v45 = vrot.slane %v2195_v32, 4  ;;  %v2202_v53 = vsel %vm1914_vm14, %v1763_v40, -inf }
 0x238   : > { %v2601_v6 = vunpack.c.l.b16 %v2947_v13  ;;  %v2636_v46 = vsel %vm2625_vm2, %v2599_v52, %v2635_v16  ;;  %v2203_v3 = vrot.slane %v2202_v53, 4  ;;  %v2209_v39 = vsel %vm1914_vm14, %v1762_v36, -inf }
 0x239   : > { %v2948_v18 = vpack.c.bf16 %v2410_v63, %v2410_v63  ;;  %v2637_v15 = vsel %vm2627_vm3, %v2600_v4, %v2636_v46  ;;  %v2197_v55 = vmax.f32 %v2195_v32, %v2196_v45  ;;  %v2210_v19 = vrot.slane %v2209_v39, 4 }
 0x23a   : > { %v2638_v20 = vsel %vm2629_vm4, %v2601_v6, %v2637_v15  ;;  %v2204_v7 = vmax.f32 %v2202_v53, %v2203_v3  ;;  %v2216_v28 = vsel %vm1914_vm14, %v1764_v58, -inf  ;;  %v1728_v54 = vrot.slane %v1714_v48, %v3741_v50 }
 0x23b   : > { %v2602_v57 = vunpack.c.l.b16 %v2948_v18  ;;  %v2198_v59 = vrot.slane %v2197_v55, 2  ;;  %v2211_v30 = vmax.f32 %v2209_v39, %v2210_v19  ;;  %v2217_v5 = vrot.slane %v2216_v28, 4 }
 0x23c   : > { %v2205_v16 = vrot.slane %v2204_v7, 2  ;;  %v1729_v26 = vcombine.high %v1721_v44, %v1721_v44  ;;  %v1730_v51 = vcombine.high %v1728_v54, %v1728_v54  ;;  %v2139_v25 = vsel %vm1914_vm14, %v1721_v44, -inf }
 0x23d   : > { %v2639_v37 = vsel %vm2631_vm5, %v2602_v57, %v2638_v20  ;;  %v2199_v8 = vmax.f32 %v2197_v55, %v2198_v59  ;;  %v2212_v47 = vrot.slane %v2211_v30, 2  ;;  %v2218_v1 = vmax.f32 %v2216_v28, %v2217_v5 }
 0x23e   : > { %v2655_v10 = vpack.c.b16 %v2639_v37, %v2639_v37  ;;  %v2206_v27 = vmax.f32 %v2204_v7, %v2205_v16  ;;  %v2140_v56 = vrot.slane %v2139_v25, 4  ;;  %v2146_v21 = vsel %vm1914_vm14, %v1729_v26, -inf }
 0x23f   : > { %v2200_v2 = vrot.slane %v2199_v8, 1  ;;  %v2213_v14 = vmax.f32 %v2211_v30, %v2212_v47  ;;  %v2219_v17 = vrot.slane %v2218_v1, 2  ;;  %v2147_v11 = vrot.slane %v2146_v21, 4 }
 0x240   : > { %2663 = vst.msk [vmem:[%s3392_s27 + $0x4] sm:$0xf] %vm541_vm7, %v2655_v10  ;;  %v2207_v23 = vrot.slane %v2206_v27, 1  ;;  %v2141_v35 = vmax.f32 %v2139_v25, %v2140_v56  ;;  %v2153_v12 = vsel %vm1914_vm14, %v1728_v54, -inf  ;;  %v2160_v0 = vsel %vm1914_vm14, %v1730_v51, -inf }
 0x241   : > { %v2201_v48 = vmax.f32 %v2199_v8, %v2200_v2  ;;  %v2214_v38 = vrot.slane %v2213_v14, 1  ;;  %v2220_v31 = vmax.f32 %v2218_v1, %v2219_v17  ;;  %v2148_v43 = vmax.f32 %v2146_v21, %v2147_v11 }
 0x242   : > { %v2208_v36 = vmax.f32 %v2206_v27, %v2207_v23  ;;  %v2142_v42 = vrot.slane %v2141_v35, 2  ;;  %v2154_v40 = vrot.slane %v2153_v12, 4  ;;  %v2161_v32 = vrot.slane %v2160_v0, 4 }
 0x243   : > { %v2215_v44 = vmax.f32 %v2213_v14, %v2214_v38  ;;  %v2221_v49 = vrot.slane %v2220_v31, 1  ;;  %v2412_v13 = vsel %vm850_vm11, %v2201_v48, -inf  ;;  %v2149_v52 = vrot.slane %v2148_v43, 2 }
 0x244   : > { %v2415_v58 = vsel %vm850_vm11, %v2208_v36, -inf  ;;  %v2143_v63 = vmax.f32 %v2141_v35, %v2142_v42  ;;  %v2155_v4 = vmax.f32 %v2153_v12, %v2154_v40  ;;  %v2162_v45 = vmax.f32 %v2160_v0, %v2161_v32 }
 0x245   : > { %v2222_v53 = vmax.f32 %v2220_v31, %v2221_v49  ;;  %v2418_v6 = vsel %vm850_vm11, %v2215_v44, -inf  ;;  %v2150_v46 = vmax.f32 %v2148_v43, %v2149_v52  ;;  %v1557_v3 = vmax.f32 %v3916_v62, 0.0 }
 0x246   : > { %v2144_v39 = vrot.slane %v2143_v63, 1  ;;  %v2156_v18 = vrot.slane %v2155_v4, 2  ;;  %v2163_v15 = vrot.slane %v2162_v45, 2  ;;  %v1555_v55 = vmax.f32 %v3920_v34, 0.0 }
 0x247   : > { %v2421_v19 = vsel %vm850_vm11, %v2222_v53, -inf  ;;  %v2151_v20 = vrot.slane %v2150_v46, 1  ;;  %v1765_v7 = vcombine.high %v1557_v3, %v1557_v3  ;;  %v1772_v28 = vrot.slane %v1557_v3, %v3741_v50 }
 0x248   : > { %v2145_v54 = vmax.f32 %v2143_v63, %v2144_v39  ;;  %v2157_v57 = vmax.f32 %v2155_v4, %v2156_v18  ;;  %v2164_v59 = vmax.f32 %v2162_v45, %v2163_v15  ;;  %v1731_v30 = vcombine.high %v1555_v55, %v1555_v55 }
 0x249   : > { %v2152_v5 = vmax.f32 %v2150_v46, %v2151_v20  ;;  %v1779_v16 = vrot.slane %v1765_v7, %v3741_v50  ;;  %v1780_v26 = vcombine.high %v1772_v28, %v1772_v28  ;;  %v2223_v62 = vsel %vm1914_vm14, %v1772_v28, -inf }
 0x24a   : > { %v2158_v51 = vrot.slane %v2157_v57, 1  ;;  %v2165_v25 = vrot.slane %v2164_v59, 1  ;;  %v2411_v34 = vsel %vm850_vm11, %v2145_v54, -inf  ;;  %v2224_v37 = vrot.slane %v2223_v62, 4 }
 0x24b   : > { %v2413_v8 = vmax.f32 %v2411_v34, %v2412_v13  ;;  %v2414_v47 = vsel %vm850_vm11, %v2152_v5, -inf  ;;  %v1781_v1 = vcombine.high %v1779_v16, %v1779_v16  ;;  %v2230_v10 = vsel %vm1914_vm14, %v1780_v26, -inf }
 0x24c   : > { %v2159_v27 = vmax.f32 %v2157_v57, %v2158_v51  ;;  %v2166_v56 = vmax.f32 %v2164_v59, %v2165_v25  ;;  %v2416_v21 = vmax.f32 %v2414_v47, %v2415_v58  ;;  %v2225_v2 = vmax.f32 %v2223_v62, %v2224_v37 }
 0x24d   : > { %v2949_v14 = vpack.c.bf16 %v2413_v8, %v2413_v8  ;;  %v2231_v17 = vrot.slane %v2230_v10, 4  ;;  %v2237_v11 = vsel %vm1914_vm14, %v1779_v16, -inf  ;;  %v2244_v23 = vsel %vm1914_vm14, %v1781_v1, -inf }
 0x24e   : > { %v2417_v35 = vsel %vm850_vm11, %v2159_v27, -inf  ;;  %v2420_v12 = vsel %vm850_vm11, %v2166_v56, -inf  ;;  %v2950_v0 = vpack.c.bf16 %v2416_v21, %v2416_v21  ;;  %v2226_v48 = vrot.slane %v2225_v2, 2 }
 0x24f   : > { %v2419_v38 = vmax.f32 %v2417_v35, %v2418_v6  ;;  %v2422_v31 = vmax.f32 %v2420_v12, %v2421_v19  ;;  %v2603_v43 = vunpack.c.l.b16 %v2949_v14  ;;  %v2232_v36 = vmax.f32 %v2230_v10, %v2231_v17 }
 0x250   : > { %v2604_v42 = vunpack.c.l.b16 %v2950_v0  ;;  %v2227_v40 = vmax.f32 %v2225_v2, %v2226_v48  ;;  %v2238_v32 = vrot.slane %v2237_v11, 4  ;;  %v2245_v44 = vrot.slane %v2244_v23, 4 }
 0x251   : > { %v2951_v49 = vpack.c.bf16 %v2419_v38, %v2419_v38  ;;  %v2952_v13 = vpack.c.bf16 %v2422_v31, %v2422_v31  ;;  %v2233_v52 = vrot.slane %v2232_v36, 2  ;;  %v1738_v58 = vrot.slane %v1555_v55, %v3741_v50 }
 0x252   : > { %v2640_v63 = vsel %vm2619_vm15, %v2604_v42, %v2603_v43  ;;  %v2228_v4 = vrot.slane %v2227_v40, 1  ;;  %v2239_v45 = vmax.f32 %v2237_v11, %v2238_v32  ;;  %v2246_v53 = vmax.f32 %v2244_v23, %v2245_v44  ;;  %v3980_v43 = vld [vmem:[%s4076_s4] ss:$0 sm:$0xff] }
 0x253   : > { %v2605_v46 = vunpack.c.l.b16 %v2951_v49  ;;  %v2606_v3 = vunpack.c.l.b16 %v2952_v13  ;;  %v2234_v6 = vmax.f32 %v2232_v36, %v2233_v52  ;;  %v1745_v39 = vrot.slane %v1731_v30, %v3741_v50 }
 0x254   : > { %v2229_v18 = vmax.f32 %v2227_v40, %v2228_v4  ;;  %v2240_v15 = vrot.slane %v2239_v45, 2  ;;  %v2247_v19 = vrot.slane %v2246_v53, 2  ;;  %v1746_v20 = vcombine.high %v1738_v58, %v1738_v58 }
 0x255   : > { %v2641_v7 = vsel %vm2621_vm0, %v2605_v46, %v2640_v63  ;;  %v2235_v28 = vrot.slane %v2234_v6, 1  ;;  %v1747_v54 = vcombine.high %v1745_v39, %v1745_v39  ;;  %v2167_v55 = vsel %vm1914_vm14, %v1738_v58, -inf }
 0x256   : > { %v2241_v57 = vmax.f32 %v2239_v45, %v2240_v15  ;;  %v2248_v59 = vmax.f32 %v2246_v53, %v2247_v19  ;;  %v2168_v5 = vrot.slane %v2167_v55, 4  ;;  %v2174_v26 = vsel %vm1914_vm14, %v1746_v20, -inf }
 0x257   : > { %v2236_v16 = vmax.f32 %v2234_v6, %v2235_v28  ;;  %v2181_v62 = vsel %vm1914_vm14, %v1745_v39, -inf  ;;  %v2188_v30 = vsel %vm1914_vm14, %v1747_v54, -inf  ;;  %v2175_v37 = vrot.slane %v2174_v26, 4 }
 0x258   : > { %v2242_v51 = vrot.slane %v2241_v57, 1  ;;  %v2249_v25 = vrot.slane %v2248_v59, 1  ;;  %v2169_v34 = vmax.f32 %v2167_v55, %v2168_v5  ;;  %v2424_v8 = vsel %vm850_vm11, %v2229_v18, -inf }
 0x259   : > { %v2182_v47 = vrot.slane %v2181_v62, 4  ;;  %v2189_v1 = vrot.slane %v2188_v30, 4  ;;  %v3969_v10 = vsel %vm2623_vm1, %v2606_v3, %v2641_v7  ;;  %v2427_v56 = vsel %vm850_vm11, %v2236_v16, -inf }
 0x25a   : > { %v2243_v27 = vmax.f32 %v2241_v57, %v2242_v51  ;;  %v2170_v21 = vrot.slane %v2169_v34, 2  ;;  %v2176_v2 = vmax.f32 %v2174_v26, %v2175_v37  ;;  %v3071_v11 = vadd.f32 %v3809_v24, %v3829_v60 }
 0x25b   : > { %v2183_v14 = vmax.f32 %v2181_v62, %v2182_v47  ;;  %v2190_v17 = vmax.f32 %v2188_v30, %v2189_v1  ;;  %v3072_v23 = vadd.f32 %v3813_v22, %v3836_v9  ;;  %v2250_v35 = vmax.f32 %v2248_v59, %v2249_v25 }
 0x25c   : > { %v2430_v12 = vsel %vm850_vm11, %v2243_v27, -inf  ;;  %v2171_v0 = vmax.f32 %v2169_v34, %v2170_v21  ;;  %v2177_v48 = vrot.slane %v2176_v2, 2  ;;  %v1544_v36 = vadd.f32 %v3980_v43, %v3071_v11 }
 0x25d   : > { %v2184_v38 = vrot.slane %v2183_v14, 2  ;;  %v2191_v31 = vrot.slane %v2190_v17, 2  ;;  %v1542_v42 = vadd.f32 %v3980_v43, %v3072_v23  ;;  %v3073_v22 = vadd.f32 %v3819_v41, %v3840_v61 }
 0x25e   : > { %v2172_v24 = vrot.slane %v2171_v0, 1  ;;  %v2178_v60 = vmax.f32 %v2176_v2, %v2177_v48  ;;  %v3988_v9 = vadd.f32 %v3823_v33, %v3846_v29  ;;  %v1560_v44 = vmax.f32 %v1544_v36, 0.0 }
 0x25f   : > { %v2185_v40 = vmax.f32 %v2183_v14, %v2184_v38  ;;  %v2192_v32 = vmax.f32 %v2190_v17, %v2191_v31  ;;  %v1558_v49 = vmax.f32 %v1542_v42, 0.0  ;;  %v2433_v13 = vsel %vm850_vm11, %v2250_v35, -inf }
 0x260   : > { %v2173_v52 = vmax.f32 %v2171_v0, %v2172_v24  ;;  %v2179_v58 = vrot.slane %v2178_v60, 1  ;;  %v3992_v63 = vadd.f32 %v3980_v43, %v3073_v22  ;;  %v1816_v53 = vcombine.high %v1560_v44, %v1560_v44 }
 0x261   : > { %v2186_v4 = vrot.slane %v2185_v40, 1  ;;  %v2193_v45 = vrot.slane %v2192_v32, 1  ;;  %v1823_v41 = vrot.slane %v1560_v44, %v3741_v50  ;;  %v1782_v29 = vcombine.high %v1558_v49, %v1558_v49 }
 0x262   : > { %v2180_v61 = vmax.f32 %v2178_v60, %v2179_v58  ;;  %v2423_v33 = vsel %vm850_vm11, %v2173_v52, -inf  ;;  %v1789_v46 = vrot.slane %v1558_v49, %v3741_v50  ;;  %v1830_v18 = vrot.slane %v1816_v53, %v3741_v50 }
 0x263   : > { %v2187_v3 = vmax.f32 %v2185_v40, %v2186_v4  ;;  %v2194_v6 = vmax.f32 %v2192_v32, %v2193_v45  ;;  %v2425_v39 = vmax.f32 %v2423_v33, %v2424_v8  ;;  %v1831_v19 = vcombine.high %v1823_v41, %v1823_v41 }
 0x264   : > { %v2426_v15 = vsel %vm850_vm11, %v2180_v61, -inf  ;;  %v2307_v20 = vsel %vm1914_vm14, %v1823_v41, -inf  ;;  %v1796_v7 = vrot.slane %v1782_v29, %v3741_v50  ;;  %v1832_v16 = vcombine.high %v1830_v18, %v1830_v18 }
 0x265   : > { %v2428_v28 = vmax.f32 %v2426_v15, %v2427_v56  ;;  %v2429_v54 = vsel %vm850_vm11, %v2187_v3, -inf  ;;  %v2432_v55 = vsel %vm850_vm11, %v2194_v6, -inf  ;;  %v2953_v57 = vpack.c.bf16 %v2425_v39, %v2425_v39 }
 0x266   : > { %v2431_v59 = vmax.f32 %v2429_v54, %v2430_v12  ;;  %v2434_v5 = vmax.f32 %v2432_v55, %v2433_v13  ;;  %v2308_v26 = vrot.slane %v2307_v20, 4  ;;  %v2314_v51 = vsel %vm1914_vm14, %v1831_v19, -inf }
 0x267   : > { %v2954_v62 = vpack.c.bf16 %v2428_v28, %v2428_v28  ;;  %v2607_v30 = vunpack.c.l.b16 %v2953_v57  ;;  %v2321_v25 = vsel %vm1914_vm14, %v1830_v18, -inf  ;;  %v2315_v47 = vrot.slane %v2314_v51, 4 }
 0x268   : > { %v2955_v34 = vpack.c.bf16 %v2431_v59, %v2431_v59  ;;  %v2956_v37 = vpack.c.bf16 %v2434_v5, %v2434_v5  ;;  %v2309_v8 = vmax.f32 %v2307_v20, %v2308_v26  ;;  %v2322_v56 = vrot.slane %v2321_v25, 4 }
 0x269   : > { %v2608_v1 = vunpack.c.l.b16 %v2954_v62  ;;  %v2643_v27 = vsel %vm2625_vm2, %v2607_v30, %v3969_v10  ;;  %v2328_v21 = vsel %vm1914_vm14, %v1832_v16, -inf  ;;  %v2316_v11 = vmax.f32 %v2314_v51, %v2315_v47 }
 0x26a   : > { %v2609_v2 = vunpack.c.l.b16 %v2955_v34  ;;  %v2610_v14 = vunpack.c.l.b16 %v2956_v37  ;;  %v2310_v17 = vrot.slane %v2309_v8, 2  ;;  %v2323_v35 = vmax.f32 %v2321_v25, %v2322_v56 }
 0x26b   : > { %v2644_v23 = vsel %vm2627_vm3, %v2608_v1, %v2643_v27  ;;  %v2329_v12 = vrot.slane %v2328_v21, 4  ;;  %v1797_v0 = vcombine.high %v1789_v46, %v1789_v46  ;;  %v2317_v31 = vrot.slane %v2316_v11, 2 }
 0x26c   : > { %v2645_v48 = vsel %vm2629_vm4, %v2609_v2, %v2644_v23  ;;  %v2311_v38 = vmax.f32 %v2309_v8, %v2310_v17  ;;  %v1798_v36 = vcombine.high %v1796_v7, %v1796_v7  ;;  %v2324_v42 = vrot.slane %v2323_v35, 2 }
 0x26d   : > { %v2646_v10 = vsel %vm2631_vm5, %v2610_v14, %v2645_v48  ;;  %v2330_v24 = vmax.f32 %v2328_v21, %v2329_v12  ;;  %v2251_v60 = vsel %vm1914_vm14, %v1789_v46, -inf  ;;  %v2318_v32 = vmax.f32 %v2316_v11, %v2317_v31 }
 0x26e   : > { %v2656_v22 = vpack.c.b16 %v2646_v10, %v2646_v10  ;;  %v2312_v40 = vrot.slane %v2311_v38, 1  ;;  %v2252_v44 = vrot.slane %v2251_v60, 4  ;;  %v2325_v49 = vmax.f32 %v2323_v35, %v2324_v42 }
 0x26f   : > { %v2331_v13 = vrot.slane %v2330_v24, 2  ;;  %v2258_v52 = vsel %vm1914_vm14, %v1797_v0, -inf  ;;  %v2265_v58 = vsel %vm1914_vm14, %v1796_v7, -inf  ;;  %v2319_v45 = vrot.slane %v2318_v32, 1 }
 0x270   : > { %2664 = vst.msk [vmem:[%s3392_s27 + $0x8] sm:$0xf] %vm541_vm7, %v2656_v22  ;;  %v2313_v4 = vmax.f32 %v2311_v38, %v2312_v40  ;;  %v2253_v53 = vmax.f32 %v2251_v60, %v2252_v44  ;;  %v2259_v41 = vrot.slane %v2258_v52, 4  ;;  %v2326_v61 = vrot.slane %v2325_v49, 1 }
 0x271   : > { %v2332_v33 = vmax.f32 %v2330_v24, %v2331_v13  ;;  %v2266_v29 = vrot.slane %v2265_v58, 4  ;;  %v2272_v46 = vsel %vm1914_vm14, %v1798_v36, -inf  ;;  %v2320_v3 = vmax.f32 %v2318_v32, %v2319_v45 }
 0x272   : > { %v2254_v6 = vrot.slane %v2253_v53, 2  ;;  %v2260_v39 = vmax.f32 %v2258_v52, %v2259_v41  ;;  %v1543_v18 = vadd.f32 %v3980_v43, %v3988_v9  ;;  %v2327_v15 = vmax.f32 %v2325_v49, %v2326_v61 }
 0x273   : > { %v2333_v19 = vrot.slane %v2332_v33, 1  ;;  %v2267_v20 = vmax.f32 %v2265_v58, %v2266_v29  ;;  %v2273_v7 = vrot.slane %v2272_v46, 4  ;;  %v2436_v28 = vsel %vm850_vm11, %v2313_v4, -inf }
 0x274   : > { %v2255_v54 = vmax.f32 %v2253_v53, %v2254_v6  ;;  %v2261_v55 = vrot.slane %v2260_v39, 2  ;;  %v1561_v57 = vmax.f32 %v3992_v63, 0.0  ;;  %v2439_v5 = vsel %vm850_vm11, %v2320_v3, -inf }
 0x275   : > { %v2334_v59 = vmax.f32 %v2332_v33, %v2333_v19  ;;  %v2268_v16 = vrot.slane %v2267_v20, 2  ;;  %v2274_v26 = vmax.f32 %v2272_v46, %v2273_v7  ;;  %v2442_v9 = vsel %vm850_vm11, %v2327_v15, -inf }
 0x276   : > { %v2256_v62 = vrot.slane %v2255_v54, 1  ;;  %v2262_v30 = vmax.f32 %v2260_v39, %v2261_v55  ;;  %v1833_v51 = vcombine.high %v1561_v57, %v1561_v57  ;;  %v1840_v43 = vrot.slane %v1561_v57, %v3741_v50 }
 0x277   : > { %v2445_v25 = vsel %vm850_vm11, %v2334_v59, -inf  ;;  %v2269_v34 = vmax.f32 %v2267_v20, %v2268_v16  ;;  %v2275_v37 = vrot.slane %v2274_v26, 2  ;;  %v1559_v2 = vmax.f32 %v1543_v18, 0.0 }
 0x278   : > { %v2257_v8 = vmax.f32 %v2255_v54, %v2256_v62  ;;  %v2263_v47 = vrot.slane %v2262_v30, 1  ;;  %v1847_v63 = vrot.slane %v1833_v51, %v3741_v50  ;;  %v1848_v1 = vcombine.high %v1840_v43, %v1840_v43 }
 0x279   : > { %v2270_v27 = vrot.slane %v2269_v34, 1  ;;  %v2276_v56 = vmax.f32 %v2274_v26, %v2275_v37  ;;  %v2335_v21 = vsel %vm1914_vm14, %v1840_v43, -inf  ;;  %v1799_v49 = vcombine.high %v1559_v2, %v1559_v2 }
 0x27a   : > { %v2264_v14 = vmax.f32 %v2262_v30, %v2263_v47  ;;  %v2435_v17 = vsel %vm850_vm11, %v2257_v8, -inf  ;;  %v1849_v11 = vcombine.high %v1847_v63, %v1847_v63  ;;  %v2336_v23 = vrot.slane %v2335_v21, 4 }
 0x27b   : > { %v2271_v35 = vmax.f32 %v2269_v34, %v2270_v27  ;;  %v2277_v12 = vrot.slane %v2276_v56, 1  ;;  %v2437_v0 = vmax.f32 %v2435_v17, %v2436_v28  ;;  %v2342_v48 = vsel %vm1914_vm14, %v1848_v1, -inf }
 0x27c   : > { %v2438_v38 = vsel %vm850_vm11, %v2264_v14, -inf  ;;  %v2337_v31 = vmax.f32 %v2335_v21, %v2336_v23  ;;  %v2343_v36 = vrot.slane %v2342_v48, 4  ;;  %v2349_v10 = vsel %vm1914_vm14, %v1847_v63, -inf }
 0x27d   : > { %v2278_v42 = vmax.f32 %v2276_v56, %v2277_v12  ;;  %v2440_v24 = vmax.f32 %v2438_v38, %v2439_v5  ;;  %v2441_v60 = vsel %vm850_vm11, %v2271_v35, -inf  ;;  %v2957_v22 = vpack.c.bf16 %v2437_v0, %v2437_v0 }
 0x27e   : > { %v2443_v40 = vmax.f32 %v2441_v60, %v2442_v9  ;;  %v2344_v32 = vmax.f32 %v2342_v48, %v2343_v36  ;;  %v2350_v44 = vrot.slane %v2349_v10, 4  ;;  %v2338_v58 = vrot.slane %v2337_v31, 2 }
 0x27f   : > { %v2444_v13 = vsel %vm850_vm11, %v2278_v42, -inf  ;;  %v2958_v52 = vpack.c.bf16 %v2440_v24, %v2440_v24  ;;  %v2356_v4 = vsel %vm1914_vm14, %v1849_v11, -inf  ;;  %v2611_v41 = vunpack.c.l.b16 %v2957_v22 }
 0x280   : > { %v2446_v45 = vmax.f32 %v2444_v13, %v2445_v25  ;;  %v2959_v53 = vpack.c.bf16 %v2443_v40, %v2443_v40  ;;  %v2345_v61 = vrot.slane %v2344_v32, 2  ;;  %v2351_v29 = vmax.f32 %v2349_v10, %v2350_v44 }
 0x281   : > { %v2612_v33 = vunpack.c.l.b16 %v2958_v52  ;;  %v2357_v46 = vrot.slane %v2356_v4, 4  ;;  %v1806_v3 = vrot.slane %v1559_v2, %v3741_v50  ;;  %v1813_v20 = vrot.slane %v1799_v49, %v3741_v50 }
 0x282   : > { %v2960_v6 = vpack.c.bf16 %v2446_v45, %v2446_v45  ;;  %v2613_v39 = vunpack.c.l.b16 %v2959_v53  ;;  %v2352_v15 = vrot.slane %v2351_v29, 2  ;;  %v2339_v28 = vmax.f32 %v2337_v31, %v2338_v58 }
 0x283   : > { %v2647_v18 = vsel %vm2619_vm15, %v2612_v33, %v2611_v41  ;;  %v2358_v19 = vmax.f32 %v2356_v4, %v2357_v46  ;;  %v2346_v54 = vmax.f32 %v2344_v32, %v2345_v61  ;;  %v1814_v57 = vcombine.high %v1806_v3, %v1806_v3 }
 0x284   : > { %v2648_v7 = vsel %vm2621_vm0, %v2613_v39, %v2647_v18  ;;  %v1815_v59 = vcombine.high %v1813_v20, %v1813_v20  ;;  %v2614_v5 = vunpack.c.l.b16 %v2960_v6  ;;  %v2353_v16 = vmax.f32 %v2351_v29, %v2352_v15 }
 0x285   : > { %v2359_v55 = vrot.slane %v2358_v19, 2  ;;  %v2279_v26 = vsel %vm1914_vm14, %v1806_v3, -inf  ;;  %v2293_v62 = vsel %vm1914_vm14, %v1813_v20, -inf  ;;  %v2286_v43 = vsel %vm1914_vm14, %v1814_v57, -inf }
 0x286   : > { %v2280_v51 = vrot.slane %v2279_v26, 4  ;;  %v2287_v9 = vrot.slane %v2286_v43, 4  ;;  %v2294_v25 = vrot.slane %v2293_v62, 4  ;;  %v2300_v50 = vsel %vm1914_vm14, %v1815_v59, -inf }
 0x287   : > { %v2360_v30 = vmax.f32 %v2358_v19, %v2359_v55  ;;  %v2340_v34 = vrot.slane %v2339_v28, 1  ;;  %v2347_v37 = vrot.slane %v2346_v54, 1  ;;  %v2301_v47 = vrot.slane %v2300_v50, 4 }
 0x288   : > { %v2281_v8 = vmax.f32 %v2279_v26, %v2280_v51  ;;  %v2354_v63 = vrot.slane %v2353_v16, 1  ;;  %v2288_v1 = vmax.f32 %v2286_v43, %v2287_v9  ;;  %v2295_v27 = vmax.f32 %v2293_v62, %v2294_v25 }
 0x289   : > { %v2649_v56 = vsel %vm2623_vm1, %v2614_v5, %v2648_v7  ;;  %v2361_v21 = vrot.slane %v2360_v30, 1  ;;  %v2302_v14 = vmax.f32 %v2300_v50, %v2301_v47  ;;  %v2341_v23 = vmax.f32 %v2339_v28, %v2340_v34 }
 0x28a   : > { %v2282_v2 = vrot.slane %v2281_v8, 2  ;;  %v2289_v17 = vrot.slane %v2288_v1, 2  ;;  %v2296_v11 = vrot.slane %v2295_v27, 2  ;;  %v2348_v0 = vmax.f32 %v2346_v54, %v2347_v37 }
 0x28b   : > { %v2303_v12 = vrot.slane %v2302_v14, 2  ;;  %v2355_v48 = vmax.f32 %v2353_v16, %v2354_v63  ;;  %v2362_v36 = vmax.f32 %v2360_v30, %v2361_v21  ;;  %v2448_v22 = vsel %vm850_vm11, %v2341_v23, -inf }
 0x28c   : > { %v2283_v35 = vmax.f32 %v2281_v8, %v2282_v2  ;;  %v2290_v38 = vmax.f32 %v2288_v1, %v2289_v17  ;;  %v2297_v31 = vmax.f32 %v2295_v27, %v2296_v11  ;;  %v2451_v44 = vsel %vm850_vm11, %v2348_v0, -inf }
 0x28d   : > { %v2304_v42 = vmax.f32 %v2302_v14, %v2303_v12  ;;  %v2454_v49 = vsel %vm850_vm11, %v2355_v48, -inf  ;;  %v2457_v58 = vsel %vm850_vm11, %v2362_v36, -inf }
 0x28e   : > { %v2284_v10 = vrot.slane %v2283_v35, 1  ;;  %v2291_v24 = vrot.slane %v2290_v38, 1  ;;  %v2298_v60 = vrot.slane %v2297_v31, 1 }
 0x28f   : > { %v2305_v32 = vrot.slane %v2304_v42, 1 }
 0x290   : > { %v2285_v40 = vmax.f32 %v2283_v35, %v2284_v10  ;;  %v2292_v13 = vmax.f32 %v2290_v38, %v2291_v24  ;;  %v2299_v52 = vmax.f32 %v2297_v31, %v2298_v60 }
 0x291   : > { %v2306_v4 = vmax.f32 %v2304_v42, %v2305_v32 }
 0x292   : > { %v2447_v45 = vsel %vm850_vm11, %v2285_v40, -inf  ;;  %v2450_v41 = vsel %vm850_vm11, %v2292_v13, -inf  ;;  %v2453_v61 = vsel %vm850_vm11, %v2299_v52, -inf }
 0x293   : > { %v2449_v53 = vmax.f32 %v2447_v45, %v2448_v22  ;;  %v2452_v33 = vmax.f32 %v2450_v41, %v2451_v44  ;;  %v2455_v29 = vmax.f32 %v2453_v61, %v2454_v49  ;;  %v2456_v46 = vsel %vm850_vm11, %v2306_v4, -inf }
 0x294   : > { %v2458_v3 = vmax.f32 %v2456_v46, %v2457_v58 }
 0x295   : > { %v2961_v6 = vpack.c.bf16 %v2449_v53, %v2449_v53  ;;  %v2962_v39 = vpack.c.bf16 %v2452_v33, %v2452_v33  ;;  %v2963_v18 = vpack.c.bf16 %v2455_v29, %v2455_v29 }
 0x296   : > { %v2964_v15 = vpack.c.bf16 %v2458_v3, %v2458_v3 }
 0x297   : > { %v2615_v19 = vunpack.c.l.b16 %v2961_v6  ;;  %v2616_v20 = vunpack.c.l.b16 %v2962_v39  ;;  %v2617_v7 = vunpack.c.l.b16 %v2963_v18 }
 0x298   : > { %v2618_v54 = vunpack.c.l.b16 %v2964_v15 }
 0x299   : > { %v2650_v28 = vsel %vm2625_vm2, %v2615_v19, %v2649_v56 }
 0x29a   : > { %v2651_v55 = vsel %vm2627_vm3, %v2616_v20, %v2650_v28 }
 0x29b   : > { %v2652_v57 = vsel %vm2629_vm4, %v2617_v7, %v2651_v55 }
 0x29c   : > { %v2653_v59 = vsel %vm2631_vm5, %v2618_v54, %v2652_v57 }
 0x29d   : > { %v2657_v5 = vpack.c.b16 %v2653_v59, %v2653_v59 }
 0x29f   : > { %2665 = vst.msk [vmem:[%s3392_s27 + $0xc] sm:$0xf] %vm541_vm7, %v2657_v5 }
 0x2a0 PF: > { %s15_s22 = sadd.s32 1, %s3205_s22   ;;  %s4083_s18 = smov %s3197_s20 }
 0x2a1   : > { %p12_p1 = scmp.ge.s32.totalorder %s15_s22, 6   ;;  %s4084_s19 = smov %s3201_s21 }
 0x2a2   : > { %s4085_s20 = smov %s4088_s23  ;;  %s4086_s21 = smov %s4092_s24 }
 0x2a3   :  { %14 = sbr.rel (!%p12_p1) target bundleno = 3 (0x3), region = 97 }

</bundles_post_ra>
